<compile_context>
chip_gen: v5e
topology: v5e:2x2
jax: 0.10.0
libtpu: 0.0.40
codegen_flags: <defaults>
</compile_context>

<pallas_src>
import functools

import jax
import jax.numpy as jnp
from jax import lax
from jax.experimental import pallas as pl
from jax.experimental.pallas import tpu as pltpu


# ----------------------------------------------------------------------------
# Kernel: one separated-conv stage
#   prelude (affine + ReLU) -> zero-padded VMEM plane
#   -> K*K folded depthwise(x)pointwise MXU matmuls -> conv output
#   -> per-image BN partial statistics (sum, sum of squares)
# ----------------------------------------------------------------------------
def _sep_stage_kernel(x_ref, wcomb_ref, scale_ref, shift_ref,
                      y_ref, stats_ref,
                      xpad_ref, acc_ref,
                      *, K, S, P, H, W, Ho, Wo):
    # x_ref     : (1, H, W, Cin)    unpadded stage input (one image)
    # wcomb_ref : (K*K, Cin, Cout)  folded depthwise (x) pointwise weights
    # scale_ref : (1, Cin)          prelude affine scale (BN-apply or identity)
    # shift_ref : (1, Cin)          prelude affine shift
    # y_ref     : (1, Ho, Wo, Cout) conv output
    # stats_ref : (1, 2, Cout)      [sum, sum-of-squares] over this image
    # xpad_ref  : (H+2P, W+2P, Cin) VMEM scratch: zero-padded prelude output
    # acc_ref   : (Ho*Wo, Cout)     VMEM f32 accumulator
    Cin = x_ref.shape[-1]
    Cout = y_ref.shape[-1]

    # Prelude: fused BN-apply (or identity) + ReLU, written into the padded
    # VMEM scratch (pad AFTER the prelude so the border is an exact zero).
    scale = scale_ref[...].reshape(1, 1, Cin)
    shift = shift_ref[...].reshape(1, 1, Cin)
    z = jnp.maximum(x_ref[0].astype(jnp.float32) * scale + shift, 0.0)
    xpad_ref[...] = jnp.zeros_like(xpad_ref)
    xpad_ref[P:P + H, P:P + W, :] = z

    # Depthwise + pointwise conv as K*K MXU matmuls into the accumulator.
    acc_ref[...] = jnp.zeros_like(acc_ref)
    for kh in range(K):                      # static, unrolled
        for kw in range(K):
            if S == 1:
                patch = xpad_ref[kh:kh + Ho, kw:kw + Wo, :]
            else:
                win = xpad_ref[kh:kh + (Ho - 1) * S + 1,
                               kw:kw + (Wo - 1) * S + 1, :]
                patch = lax.slice(win, (0, 0, 0), win.shape, (S, S, 1))
            acc_ref[...] += jnp.dot(patch.reshape(Ho * Wo, Cin),
                                    wcomb_ref[kh * K + kw],
                                    preferred_element_type=jnp.float32)

    acc = acc_ref[...]
    y_ref[0] = acc.reshape(Ho, Wo, Cout).astype(y_ref.dtype)

    # Per-image BatchNorm partial statistics (combined across N in XLA).
    s_sum = jnp.sum(acc, axis=0, keepdims=True)          # (1, Cout)
    s_sq = jnp.sum(acc * acc, axis=0, keepdims=True)     # (1, Cout)
    stats_ref[0] = jnp.concatenate([s_sum, s_sq], axis=0)


# ----------------------------------------------------------------------------
# Stage launcher
# ----------------------------------------------------------------------------
def _run_stage(x_nhwc, wcomb, scale, shift, *, K, S, P):
    N, H, W, Cin = x_nhwc.shape
    Cout = wcomb.shape[-1]
    Ho = (H + 2 * P - K) // S + 1
    Wo = (W + 2 * P - K) // S + 1
    Hp, Wp = H + 2 * P, W + 2 * P

    kernel = functools.partial(_sep_stage_kernel, K=K, S=S, P=P,
                               H=H, W=W, Ho=Ho, Wo=Wo)
    y, stats = pl.pallas_call(
        kernel,
        out_shape=(
            jax.ShapeDtypeStruct((N, Ho, Wo, Cout), jnp.float32),
            jax.ShapeDtypeStruct((N, 2, Cout), jnp.float32),
        ),
        grid=(N,),
        in_specs=[
            pl.BlockSpec((1, H, W, Cin), lambda n: (n, 0, 0, 0)),
            pl.BlockSpec((K * K, Cin, Cout), lambda n: (0, 0, 0)),
            pl.BlockSpec((1, Cin), lambda n: (0, 0)),
            pl.BlockSpec((1, Cin), lambda n: (0, 0)),
        ],
        out_specs=(
            pl.BlockSpec((1, Ho, Wo, Cout), lambda n: (n, 0, 0, 0)),
            pl.BlockSpec((1, 2, Cout), lambda n: (n, 0, 0)),
        ),
        scratch_shapes=[
            pltpu.VMEM((Hp, Wp, Cin), jnp.float32),    # padded prelude plane
            pltpu.VMEM((Ho * Wo, Cout), jnp.float32),  # f32 conv accumulator
        ],
        compiler_params=pltpu.CompilerParams(
            dimension_semantics=("parallel",),          # v7x: 2 TCs share N
            vmem_limit_bytes=32 * 1024 * 1024,
        ),
    )(x_nhwc, wcomb, scale, shift)
    return y, stats, Ho, Wo


# ----------------------------------------------------------------------------
# Wrapper helpers
# ----------------------------------------------------------------------------
def _fold_weights(w_dw, w_pw):
    """Fold depthwise (C,1,K,K) + pointwise (Cout,Cin,1,1) -> (K*K,Cin,Cout)."""
    K = w_dw.shape[-1]
    Cin = w_dw.shape[0]
    Cout = w_pw.shape[0]
    wdw = jnp.transpose(w_dw[:, 0, :, :], (1, 2, 0)).astype(jnp.float32)  # (K,K,Cin)
    wpw = jnp.transpose(w_pw[:, :, 0, 0], (1, 0)).astype(jnp.float32)     # (Cin,Cout)
    wcomb = wdw[:, :, :, None] * wpw[None, None, :, :]                    # (K,K,Cin,Cout)
    return wcomb.reshape(K * K, Cin, Cout)


def _bn_scale_shift(stats, count, gamma, beta, eps):
    """Combine per-image partial stats into a BN scale/shift (training mode)."""
    s = jnp.sum(stats[:, 0, :], axis=0)
    sq = jnp.sum(stats[:, 1, :], axis=0)
    mean = s / count
    var = jnp.maximum(sq / count - mean * mean, 0.0)   # biased variance
    scale = gamma * lax.rsqrt(var + eps)
    shift = beta - mean * scale
    return scale, shift


# ----------------------------------------------------------------------------
# SeparatedConv forward
# ----------------------------------------------------------------------------
def separated_conv_forward(x_nchw, w_dw1, w_pw1, gamma1, beta1,
                           w_dw2, w_pw2, gamma2, beta2, *,
                           stride, padding, eps=1e-5):
    """Forward pass of SeparatedConv (PyTorch training-mode semantics).

    x_nchw : (N, C_in, H, W)
    w_dw1  : (C_in, 1, K, K)       depthwise conv1 weight
    w_pw1  : (C_in, C_in, 1, 1)    pointwise conv2 weight
    gamma1, beta1 : (C_in,)        BN1 affine
    w_dw2  : (C_in, 1, K, K)       depthwise conv3 weight (stride 1)
    w_pw2  : (C_out, C_in, 1, 1)   pointwise conv4 weight
    gamma2, beta2 : (C_out,)       BN3 affine
    """
    N, C, H, W = x_nchw.shape
    K = w_dw1.shape[-1]
    Cout = w_pw2.shape[0]

    x_nhwc = jnp.transpose(x_nchw, (0, 2, 3, 1)).astype(jnp.float32)
    wcomb1 = _fold_weights(w_dw1, w_pw1)    # (K*K, C, C)
    wcomb2 = _fold_weights(w_dw2, w_pw2)    # (K*K, C, Cout)

    # Stage 1: ReLU -> dw conv (stride) -> 1x1 conv, + BN1 partial stats.
    ident_scale = jnp.ones((1, C), jnp.float32)
    ident_shift = jnp.zeros((1, C), jnp.float32)
    y1, st1, H1, W1 = _run_stage(x_nhwc, wcomb1, ident_scale, ident_shift,
                                 K=K, S=stride, P=padding)
    scale1, shift1 = _bn_scale_shift(st1, N * H1 * W1,
                                     gamma1.astype(jnp.float32),
                                     beta1.astype(jnp.float32), eps)

    # Stage 2: BN1-apply + ReLU fused into the prelude -> dw conv (stride 1)
    #          -> 1x1 conv (C -> Cout), + BN3 partial stats.
    y2, st2, H2, W2 = _run_stage(y1, wcomb2,
                                 scale1.reshape(1, C), shift1.reshape(1, C),
                                 K=K, S=1, P=padding)
    scale2, shift2 = _bn_scale_shift(st2, N * H2 * W2,
                                     gamma2.astype(jnp.float32),
                                     beta2.astype(jnp.float32), eps)

    # Final BN3 affine + NHWC -> NCHW: one fused XLA elementwise/transpose pass.
    out = jnp.transpose(y2, (0, 3, 1, 2)) * scale2.reshape(1, Cout, 1, 1) \
        + shift2.reshape(1, Cout, 1, 1)
    return out


# ----------------------------------------------------------------------------
# Pure-JAX reference (mirrors the PyTorch module in training mode)
# ----------------------------------------------------------------------------
def _reference(x, w_dw1, w_pw1, gamma1, beta1, w_dw2, w_pw2, gamma2, beta2, *,
               stride, padding, eps=1e-5):
    dn = ("NCHW", "OIHW", "NCHW")

    def bn(y, g, b):
        m = jnp.mean(y, axis=(0, 2, 3), keepdims=True)
        v = jnp.mean((y - m) ** 2, axis=(0, 2, 3), keepdims=True)
        return (y - m) * lax.rsqrt(v + eps) * g.reshape(1, -1, 1, 1) \
            + b.reshape(1, -1, 1, 1)

    y = jnp.maximum(x, 0.0)
    y = lax.conv_general_dilated(y, w_dw1, (stride, stride),
                                 [(padding, padding)] * 2,
                                 dimension_numbers=dn,
                                 feature_group_count=x.shape[1])
    y = lax.conv_general_dilated(y, w_pw1, (1, 1), [(0, 0), (0, 0)],
                                 dimension_numbers=dn)
    y = bn(y, gamma1, beta1)
    y = jnp.maximum(y, 0.0)
    y = lax.conv_general_dilated(y, w_dw2, (1, 1),
                                 [(padding, padding)] * 2,
                                 dimension_numbers=dn,
                                 feature_group_count=y.shape[1])
    y = lax.conv_general_dilated(y, w_pw2, (1, 1), [(0, 0), (0, 0)],
                                 dimension_numbers=dn)
    y = bn(y, gamma2, beta2)
    return y


if __name__ == "__main__":
    # desc = {channel_in: 4, channel_out: 4, kernel_size: 3, stride: 1,
    #         padding: 1, affine: True}
    N, C_in, C_out, H, W = 2, 4, 4, 16, 16
    K, stride, padding = 3, 1, 1

    key = jax.random.PRNGKey(0)
    keys = jax.random.split(key, 9)
    x = jax.random.normal(keys[0], (N, C_in, H, W), jnp.float32)
    w_dw1 = 0.3 * jax.random.normal(keys[1], (C_in, 1, K, K), jnp.float32)
    w_pw1 = 0.3 * jax.random.normal(keys[2], (C_in, C_in, 1, 1), jnp.float32)
    gamma1 = 1.0 + 0.1 * jax.random.normal(keys[3], (C_in,), jnp.float32)
    beta1 = 0.1 * jax.random.normal(keys[4], (C_in,), jnp.float32)
    w_dw2 = 0.3 * jax.random.normal(keys[5], (C_in, 1, K, K), jnp.float32)
    w_pw2 = 0.3 * jax.random.normal(keys[6], (C_out, C_in, 1, 1), jnp.float32)
    gamma2 = 1.0 + 0.1 * jax.random.normal(keys[7], (C_out,), jnp.float32)
    beta2 = 0.1 * jax.random.normal(keys[8], (C_out,), jnp.float32)

    fwd = jax.jit(functools.partial(separated_conv_forward,
                                    stride=stride, padding=padding))
    out = fwd(x, w_dw1, w_pw1, gamma1, beta1, w_dw2, w_pw2, gamma2, beta2)
    out = jax.block_until_ready(out)

    ref = _reference(x, w_dw1, w_pw1, gamma1, beta1,
                     w_dw2, w_pw2, gamma2, beta2,
                     stride=stride, padding=padding)
    assert out.shape == ref.shape == (N, C_out, H, W), (out.shape, ref.shape)
    max_err = float(jnp.max(jnp.abs(out - ref)))
    assert jnp.allclose(out, ref, atol=2e-3, rtol=2e-3), max_err

    print("KERNEL_OK")
</pallas_src>

<mosaic_0001>
module attributes {stable_mosaic.version = 11 : i64} {
  func.func @_sep_stage_kernel(%arg0: i32, %arg1: memref<1x16x16x4xf32, #tpu.memory_space<vmem>>, %arg2: memref<9x4x4xf32, #tpu.memory_space<vmem>>, %arg3: memref<1x4xf32, #tpu.memory_space<vmem>>, %arg4: memref<1x4xf32, #tpu.memory_space<vmem>>, %arg5: memref<1x16x16x4xf32, #tpu.memory_space<vmem>>, %arg6: memref<1x2x4xf32, #tpu.memory_space<vmem>>, %arg7: memref<18x18x4xf32, #tpu.memory_space<vmem>>, %arg8: memref<256x4xf32, #tpu.memory_space<vmem>>) attributes {dimension_semantics = [#tpu.dimension_semantics<parallel>], iteration_bounds = array<i64: 2>, scalar_prefetch = 0 : i64, scratch_operands = 2 : i64, tpu.core_type = #tpu.core_type<tc>, window_params = [{transform_indices = @transform_0, window_bounds = array<i64: 1, 16, 16, 4>}, {pipeline_mode = #tpu.pipeline_mode<synchronous>, transform_indices = @transform_1, window_bounds = array<i64: 9, 4, 4>}, {pipeline_mode = #tpu.pipeline_mode<synchronous>, transform_indices = @transform_2, window_bounds = array<i64: 1, 4>}, {pipeline_mode = #tpu.pipeline_mode<synchronous>, transform_indices = @transform_3, window_bounds = array<i64: 1, 4>}, {transform_indices = @transform_4, window_bounds = array<i64: 1, 16, 16, 4>}, {transform_indices = @transform_5, window_bounds = array<i64: 1, 2, 4>}]} {
    %c0 = arith.constant 0 : index
    %c0_0 = arith.constant 0 : index
    %0 = vector.load %arg3[%c0, %c0_0] : memref<1x4xf32, #tpu.memory_space<vmem>>, vector<1x4xf32>
    %1 = vector.shape_cast %0 : vector<1x4xf32> to vector<1x1x4xf32>
    %c0_1 = arith.constant 0 : index
    %c0_2 = arith.constant 0 : index
    %2 = vector.load %arg4[%c0_1, %c0_2] : memref<1x4xf32, #tpu.memory_space<vmem>>, vector<1x4xf32>
    %3 = vector.shape_cast %2 : vector<1x4xf32> to vector<1x1x4xf32>
    %c0_3 = arith.constant 0 : index
    %c0_4 = arith.constant 0 : index
    %c0_5 = arith.constant 0 : index
    %c0_6 = arith.constant 0 : index
    %4 = vector.load %arg1[%c0_3, %c0_4, %c0_5, %c0_6] : memref<1x16x16x4xf32, #tpu.memory_space<vmem>>, vector<1x16x16x4xf32>
    %5 = vector.shape_cast %4 : vector<1x16x16x4xf32> to vector<16x16x4xf32>
    %6 = vector.broadcast %1 : vector<1x1x4xf32> to vector<16x16x4xf32>
    %7 = arith.mulf %5, %6 : vector<16x16x4xf32>
    %8 = vector.broadcast %3 : vector<1x1x4xf32> to vector<16x16x4xf32>
    %9 = arith.addf %7, %8 : vector<16x16x4xf32>
    %cst = arith.constant 0.000000e+00 : f32
    %10 = vector.broadcast %cst : f32 to vector<16x16x4xf32>
    %11 = arith.maximumf %9, %10 : vector<16x16x4xf32>
    %cst_7 = arith.constant 0.000000e+00 : f32
    %12 = vector.broadcast %cst_7 : f32 to vector<18x18x4xf32>
    %c0_8 = arith.constant 0 : index
    %c0_9 = arith.constant 0 : index
    %c0_10 = arith.constant 0 : index
    %13 = vector.load %arg7[%c0_8, %c0_9, %c0_10] : memref<18x18x4xf32, #tpu.memory_space<vmem>>, vector<18x18x4xf32>
    tpu.vector_store %arg7[%c0_8, %c0_9, %c0_10], %12 {strides = array<i32>} : memref<18x18x4xf32, #tpu.memory_space<vmem>>, vector<18x18x4xf32>,
    %c1 = arith.constant 1 : index
    %c1_11 = arith.constant 1 : index
    %c0_12 = arith.constant 0 : index
    %14 = vector.load %arg7[%c1, %c1_11, %c0_12] : memref<18x18x4xf32, #tpu.memory_space<vmem>>, vector<16x16x4xf32>
    tpu.vector_store %arg7[%c1, %c1_11, %c0_12], %11 {strides = array<i32>} : memref<18x18x4xf32, #tpu.memory_space<vmem>>, vector<16x16x4xf32>,
    %cst_13 = arith.constant 0.000000e+00 : f32
    %15 = vector.broadcast %cst_13 : f32 to vector<256x4xf32>
    %c0_14 = arith.constant 0 : index
    %c0_15 = arith.constant 0 : index
    %16 = vector.load %arg8[%c0_14, %c0_15] : memref<256x4xf32, #tpu.memory_space<vmem>>, vector<256x4xf32>
    tpu.vector_store %arg8[%c0_14, %c0_15], %15 {strides = array<i32>} : memref<256x4xf32, #tpu.memory_space<vmem>>, vector<256x4xf32>,
    %c0_16 = arith.constant 0 : index
    %c0_17 = arith.constant 0 : index
    %c0_18 = arith.constant 0 : index
    %17 = vector.load %arg7[%c0_16, %c0_17, %c0_18] : memref<18x18x4xf32, #tpu.memory_space<vmem>>, vector<16x16x4xf32>
    %c0_19 = arith.constant 0 : index
    %c0_20 = arith.constant 0 : index
    %18 = vector.load %arg8[%c0_19, %c0_20] : memref<256x4xf32, #tpu.memory_space<vmem>>, vector<256x4xf32>
    %19 = vector.shape_cast %17 : vector<16x16x4xf32> to vector<256x4xf32>
    %c0_21 = arith.constant 0 : index
    %c0_22 = arith.constant 0 : index
    %c0_23 = arith.constant 0 : index
    %20 = vector.load %arg2[%c0_21, %c0_22, %c0_23] : memref<9x4x4xf32, #tpu.memory_space<vmem>>, vector<1x4x4xf32>
    %21 = vector.shape_cast %20 : vector<1x4x4xf32> to vector<4x4xf32>
    %cst_24 = arith.constant dense<0.000000e+00> : vector<256x4xf32>
    %22 = tpu.matmul %19, %21, %cst_24 {dimension_numbers = #tpu.dot_dimension_numbers<[1], [0], [0], [1], [0, 0, 1, 1], [], []>} : vector<256x4xf32>, vector<4x4xf32>, vector<256x4xf32> -> vector<256x4xf32>
    %23 = arith.addf %18, %22 : vector<256x4xf32>
    %c0_25 = arith.constant 0 : index
    %c0_26 = arith.constant 0 : index
    %24 = vector.load %arg8[%c0_25, %c0_26] : memref<256x4xf32, #tpu.memory_space<vmem>>, vector<256x4xf32>
    tpu.vector_store %arg8[%c0_25, %c0_26], %23 {strides = array<i32>} : memref<256x4xf32, #tpu.memory_space<vmem>>, vector<256x4xf32>,
    %c0_27 = arith.constant 0 : index
    %c1_28 = arith.constant 1 : index
    %c0_29 = arith.constant 0 : index
    %25 = vector.load %arg7[%c0_27, %c1_28, %c0_29] : memref<18x18x4xf32, #tpu.memory_space<vmem>>, vector<16x16x4xf32>
    %c0_30 = arith.constant 0 : index
    %c0_31 = arith.constant 0 : index
    %26 = vector.load %arg8[%c0_30, %c0_31] : memref<256x4xf32, #tpu.memory_space<vmem>>, vector<256x4xf32>
    %27 = vector.shape_cast %25 : vector<16x16x4xf32> to vector<256x4xf32>
    %c1_32 = arith.constant 1 : index
    %c0_33 = arith.constant 0 : index
    %c0_34 = arith.constant 0 : index
    %28 = vector.load %arg2[%c1_32, %c0_33, %c0_34] : memref<9x4x4xf32, #tpu.memory_space<vmem>>, vector<1x4x4xf32>
    %29 = vector.shape_cast %28 : vector<1x4x4xf32> to vector<4x4xf32>
    %cst_35 = arith.constant dense<0.000000e+00> : vector<256x4xf32>
    %30 = tpu.matmul %27, %29, %cst_35 {dimension_numbers = #tpu.dot_dimension_numbers<[1], [0], [0], [1], [0, 0, 1, 1], [], []>} : vector<256x4xf32>, vector<4x4xf32>, vector<256x4xf32> -> vector<256x4xf32>
    %31 = arith.addf %26, %30 : vector<256x4xf32>
    %c0_36 = arith.constant 0 : index
    %c0_37 = arith.constant 0 : index
    %32 = vector.load %arg8[%c0_36, %c0_37] : memref<256x4xf32, #tpu.memory_space<vmem>>, vector<256x4xf32>
    tpu.vector_store %arg8[%c0_36, %c0_37], %31 {strides = array<i32>} : memref<256x4xf32, #tpu.memory_space<vmem>>, vector<256x4xf32>,
    %c0_38 = arith.constant 0 : index
    %c2 = arith.constant 2 : index
    %c0_39 = arith.constant 0 : index
    %33 = vector.load %arg7[%c0_38, %c2, %c0_39] : memref<18x18x4xf32, #tpu.memory_space<vmem>>, vector<16x16x4xf32>
    %c0_40 = arith.constant 0 : index
    %c0_41 = arith.constant 0 : index
    %34 = vector.load %arg8[%c0_40, %c0_41] : memref<256x4xf32, #tpu.memory_space<vmem>>, vector<256x4xf32>
    %35 = vector.shape_cast %33 : vector<16x16x4xf32> to vector<256x4xf32>
    %c2_42 = arith.constant 2 : index
    %c0_43 = arith.constant 0 : index
    %c0_44 = arith.constant 0 : index
    %36 = vector.load %arg2[%c2_42, %c0_43, %c0_44] : memref<9x4x4xf32, #tpu.memory_space<vmem>>, vector<1x4x4xf32>
    %37 = vector.shape_cast %36 : vector<1x4x4xf32> to vector<4x4xf32>
    %cst_45 = arith.constant dense<0.000000e+00> : vector<256x4xf32>
    %38 = tpu.matmul %35, %37, %cst_45 {dimension_numbers = #tpu.dot_dimension_numbers<[1], [0], [0], [1], [0, 0, 1, 1], [], []>} : vector<256x4xf32>, vector<4x4xf32>, vector<256x4xf32> -> vector<256x4xf32>
    %39 = arith.addf %34, %38 : vector<256x4xf32>
    %c0_46 = arith.constant 0 : index
    %c0_47 = arith.constant 0 : index
    %40 = vector.load %arg8[%c0_46, %c0_47] : memref<256x4xf32, #tpu.memory_space<vmem>>, vector<256x4xf32>
    tpu.vector_store %arg8[%c0_46, %c0_47], %39 {strides = array<i32>} : memref<256x4xf32, #tpu.memory_space<vmem>>, vector<256x4xf32>,
    %c1_48 = arith.constant 1 : index
    %c0_49 = arith.constant 0 : index
    %c0_50 = arith.constant 0 : index
    %41 = vector.load %arg7[%c1_48, %c0_49, %c0_50] : memref<18x18x4xf32, #tpu.memory_space<vmem>>, vector<16x16x4xf32>
    %c0_51 = arith.constant 0 : index
    %c0_52 = arith.constant 0 : index
    %42 = vector.load %arg8[%c0_51, %c0_52] : memref<256x4xf32, #tpu.memory_space<vmem>>, vector<256x4xf32>
    %43 = vector.shape_cast %41 : vector<16x16x4xf32> to vector<256x4xf32>
    %c3 = arith.constant 3 : index
    %c0_53 = arith.constant 0 : index
    %c0_54 = arith.constant 0 : index
    %44 = vector.load %arg2[%c3, %c0_53, %c0_54] : memref<9x4x4xf32, #tpu.memory_space<vmem>>, vector<1x4x4xf32>
    %45 = vector.shape_cast %44 : vector<1x4x4xf32> to vector<4x4xf32>
    %cst_55 = arith.constant dense<0.000000e+00> : vector<256x4xf32>
    %46 = tpu.matmul %43, %45, %cst_55 {dimension_numbers = #tpu.dot_dimension_numbers<[1], [0], [0], [1], [0, 0, 1, 1], [], []>} : vector<256x4xf32>, vector<4x4xf32>, vector<256x4xf32> -> vector<256x4xf32>
    %47 = arith.addf %42, %46 : vector<256x4xf32>
    %c0_56 = arith.constant 0 : index
    %c0_57 = arith.constant 0 : index
    %48 = vector.load %arg8[%c0_56, %c0_57] : memref<256x4xf32, #tpu.memory_space<vmem>>, vector<256x4xf32>
    tpu.vector_store %arg8[%c0_56, %c0_57], %47 {strides = array<i32>} : memref<256x4xf32, #tpu.memory_space<vmem>>, vector<256x4xf32>,
    %c1_58 = arith.constant 1 : index
    %c1_59 = arith.constant 1 : index
    %c0_60 = arith.constant 0 : index
    %49 = vector.load %arg7[%c1_58, %c1_59, %c0_60] : memref<18x18x4xf32, #tpu.memory_space<vmem>>, vector<16x16x4xf32>
    %c0_61 = arith.constant 0 : index
    %c0_62 = arith.constant 0 : index
    %50 = vector.load %arg8[%c0_61, %c0_62] : memref<256x4xf32, #tpu.memory_space<vmem>>, vector<256x4xf32>
    %51 = vector.shape_cast %49 : vector<16x16x4xf32> to vector<256x4xf32>
    %c4 = arith.constant 4 : index
    %c0_63 = arith.constant 0 : index
    %c0_64 = arith.constant 0 : index
    %52 = vector.load %arg2[%c4, %c0_63, %c0_64] : memref<9x4x4xf32, #tpu.memory_space<vmem>>, vector<1x4x4xf32>
    %53 = vector.shape_cast %52 : vector<1x4x4xf32> to vector<4x4xf32>
    %cst_65 = arith.constant dense<0.000000e+00> : vector<256x4xf32>
    %54 = tpu.matmul %51, %53, %cst_65 {dimension_numbers = #tpu.dot_dimension_numbers<[1], [0], [0], [1], [0, 0, 1, 1], [], []>} : vector<256x4xf32>, vector<4x4xf32>, vector<256x4xf32> -> vector<256x4xf32>
    %55 = arith.addf %50, %54 : vector<256x4xf32>
    %c0_66 = arith.constant 0 : index
    %c0_67 = arith.constant 0 : index
    %56 = vector.load %arg8[%c0_66, %c0_67] : memref<256x4xf32, #tpu.memory_space<vmem>>, vector<256x4xf32>
    tpu.vector_store %arg8[%c0_66, %c0_67], %55 {strides = array<i32>} : memref<256x4xf32, #tpu.memory_space<vmem>>, vector<256x4xf32>,
    %c1_68 = arith.constant 1 : index
    %c2_69 = arith.constant 2 : index
    %c0_70 = arith.constant 0 : index
    %57 = vector.load %arg7[%c1_68, %c2_69, %c0_70] : memref<18x18x4xf32, #tpu.memory_space<vmem>>, vector<16x16x4xf32>
    %c0_71 = arith.constant 0 : index
    %c0_72 = arith.constant 0 : index
    %58 = vector.load %arg8[%c0_71, %c0_72] : memref<256x4xf32, #tpu.memory_space<vmem>>, vector<256x4xf32>
    %59 = vector.shape_cast %57 : vector<16x16x4xf32> to vector<256x4xf32>
    %c5 = arith.constant 5 : index
    %c0_73 = arith.constant 0 : index
    %c0_74 = arith.constant 0 : index
    %60 = vector.load %arg2[%c5, %c0_73, %c0_74] : memref<9x4x4xf32, #tpu.memory_space<vmem>>, vector<1x4x4xf32>
    %61 = vector.shape_cast %60 : vector<1x4x4xf32> to vector<4x4xf32>
    %cst_75 = arith.constant dense<0.000000e+00> : vector<256x4xf32>
    %62 = tpu.matmul %59, %61, %cst_75 {dimension_numbers = #tpu.dot_dimension_numbers<[1], [0], [0], [1], [0, 0, 1, 1], [], []>} : vector<256x4xf32>, vector<4x4xf32>, vector<256x4xf32> -> vector<256x4xf32>
    %63 = arith.addf %58, %62 : vector<256x4xf32>
    %c0_76 = arith.constant 0 : index
    %c0_77 = arith.constant 0 : index
    %64 = vector.load %arg8[%c0_76, %c0_77] : memref<256x4xf32, #tpu.memory_space<vmem>>, vector<256x4xf32>
    tpu.vector_store %arg8[%c0_76, %c0_77], %63 {strides = array<i32>} : memref<256x4xf32, #tpu.memory_space<vmem>>, vector<256x4xf32>,
    %c2_78 = arith.constant 2 : index
    %c0_79 = arith.constant 0 : index
    %c0_80 = arith.constant 0 : index
    %65 = vector.load %arg7[%c2_78, %c0_79, %c0_80] : memref<18x18x4xf32, #tpu.memory_space<vmem>>, vector<16x16x4xf32>
    %c0_81 = arith.constant 0 : index
    %c0_82 = arith.constant 0 : index
    %66 = vector.load %arg8[%c0_81, %c0_82] : memref<256x4xf32, #tpu.memory_space<vmem>>, vector<256x4xf32>
    %67 = vector.shape_cast %65 : vector<16x16x4xf32> to vector<256x4xf32>
    %c6 = arith.constant 6 : index
    %c0_83 = arith.constant 0 : index
    %c0_84 = arith.constant 0 : index
    %68 = vector.load %arg2[%c6, %c0_83, %c0_84] : memref<9x4x4xf32, #tpu.memory_space<vmem>>, vector<1x4x4xf32>
    %69 = vector.shape_cast %68 : vector<1x4x4xf32> to vector<4x4xf32>
    %cst_85 = arith.constant dense<0.000000e+00> : vector<256x4xf32>
    %70 = tpu.matmul %67, %69, %cst_85 {dimension_numbers = #tpu.dot_dimension_numbers<[1], [0], [0], [1], [0, 0, 1, 1], [], []>} : vector<256x4xf32>, vector<4x4xf32>, vector<256x4xf32> -> vector<256x4xf32>
    %71 = arith.addf %66, %70 : vector<256x4xf32>
    %c0_86 = arith.constant 0 : index
    %c0_87 = arith.constant 0 : index
    %72 = vector.load %arg8[%c0_86, %c0_87] : memref<256x4xf32, #tpu.memory_space<vmem>>, vector<256x4xf32>
    tpu.vector_store %arg8[%c0_86, %c0_87], %71 {strides = array<i32>} : memref<256x4xf32, #tpu.memory_space<vmem>>, vector<256x4xf32>,
    %c2_88 = arith.constant 2 : index
    %c1_89 = arith.constant 1 : index
    %c0_90 = arith.constant 0 : index
    %73 = vector.load %arg7[%c2_88, %c1_89, %c0_90] : memref<18x18x4xf32, #tpu.memory_space<vmem>>, vector<16x16x4xf32>
    %c0_91 = arith.constant 0 : index
    %c0_92 = arith.constant 0 : index
    %74 = vector.load %arg8[%c0_91, %c0_92] : memref<256x4xf32, #tpu.memory_space<vmem>>, vector<256x4xf32>
    %75 = vector.shape_cast %73 : vector<16x16x4xf32> to vector<256x4xf32>
    %c7 = arith.constant 7 : index
    %c0_93 = arith.constant 0 : index
    %c0_94 = arith.constant 0 : index
    %76 = vector.load %arg2[%c7, %c0_93, %c0_94] : memref<9x4x4xf32, #tpu.memory_space<vmem>>, vector<1x4x4xf32>
    %77 = vector.shape_cast %76 : vector<1x4x4xf32> to vector<4x4xf32>
    %cst_95 = arith.constant dense<0.000000e+00> : vector<256x4xf32>
    %78 = tpu.matmul %75, %77, %cst_95 {dimension_numbers = #tpu.dot_dimension_numbers<[1], [0], [0], [1], [0, 0, 1, 1], [], []>} : vector<256x4xf32>, vector<4x4xf32>, vector<256x4xf32> -> vector<256x4xf32>
    %79 = arith.addf %74, %78 : vector<256x4xf32>
    %c0_96 = arith.constant 0 : index
    %c0_97 = arith.constant 0 : index
    %80 = vector.load %arg8[%c0_96, %c0_97] : memref<256x4xf32, #tpu.memory_space<vmem>>, vector<256x4xf32>
    tpu.vector_store %arg8[%c0_96, %c0_97], %79 {strides = array<i32>} : memref<256x4xf32, #tpu.memory_space<vmem>>, vector<256x4xf32>,
    %c2_98 = arith.constant 2 : index
    %c2_99 = arith.constant 2 : index
    %c0_100 = arith.constant 0 : index
    %81 = vector.load %arg7[%c2_98, %c2_99, %c0_100] : memref<18x18x4xf32, #tpu.memory_space<vmem>>, vector<16x16x4xf32>
    %c0_101 = arith.constant 0 : index
    %c0_102 = arith.constant 0 : index
    %82 = vector.load %arg8[%c0_101, %c0_102] : memref<256x4xf32, #tpu.memory_space<vmem>>, vector<256x4xf32>
    %83 = vector.shape_cast %81 : vector<16x16x4xf32> to vector<256x4xf32>
    %c8 = arith.constant 8 : index
    %c0_103 = arith.constant 0 : index
    %c0_104 = arith.constant 0 : index
    %84 = vector.load %arg2[%c8, %c0_103, %c0_104] : memref<9x4x4xf32, #tpu.memory_space<vmem>>, vector<1x4x4xf32>
    %85 = vector.shape_cast %84 : vector<1x4x4xf32> to vector<4x4xf32>
    %cst_105 = arith.constant dense<0.000000e+00> : vector<256x4xf32>
    %86 = tpu.matmul %83, %85, %cst_105 {dimension_numbers = #tpu.dot_dimension_numbers<[1], [0], [0], [1], [0, 0, 1, 1], [], []>} : vector<256x4xf32>, vector<4x4xf32>, vector<256x4xf32> -> vector<256x4xf32>
    %87 = arith.addf %82, %86 : vector<256x4xf32>
    %c0_106 = arith.constant 0 : index
    %c0_107 = arith.constant 0 : index
    %88 = vector.load %arg8[%c0_106, %c0_107] : memref<256x4xf32, #tpu.memory_space<vmem>>, vector<256x4xf32>
    tpu.vector_store %arg8[%c0_106, %c0_107], %87 {strides = array<i32>} : memref<256x4xf32, #tpu.memory_space<vmem>>, vector<256x4xf32>,
    %c0_108 = arith.constant 0 : index
    %c0_109 = arith.constant 0 : index
    %89 = vector.load %arg8[%c0_108, %c0_109] : memref<256x4xf32, #tpu.memory_space<vmem>>, vector<256x4xf32>
    %90 = vector.shape_cast %89 : vector<256x4xf32> to vector<16x16x4xf32>
    %c0_110 = arith.constant 0 : index
    %c0_111 = arith.constant 0 : index
    %c0_112 = arith.constant 0 : index
    %c0_113 = arith.constant 0 : index
    %91 = vector.load %arg5[%c0_110, %c0_111, %c0_112, %c0_113] : memref<1x16x16x4xf32, #tpu.memory_space<vmem>>, vector<1x16x16x4xf32>
    %92 = vector.shape_cast %91 : vector<1x16x16x4xf32> to vector<16x16x4xf32>
    %93 = vector.shape_cast %90 : vector<16x16x4xf32> to vector<1x16x16x4xf32>
    tpu.vector_store %arg5[%c0_110, %c0_111, %c0_112, %c0_113], %93 {strides = array<i32>} : memref<1x16x16x4xf32, #tpu.memory_space<vmem>>, vector<1x16x16x4xf32>,
    %cst_114 = arith.constant dense<0.000000e+00> : vector<4xf32>
    %94 = vector.multi_reduction <add>, %89, %cst_114 [0] : vector<256x4xf32> to vector<4xf32>
    %95 = vector.shape_cast %94 : vector<4xf32> to vector<1x4xf32>
    %96 = arith.mulf %89, %89 : vector<256x4xf32>
    %cst_115 = arith.constant dense<0.000000e+00> : vector<4xf32>
    %97 = vector.multi_reduction <add>, %96, %cst_115 [0] : vector<256x4xf32> to vector<4xf32>
    %98 = vector.shape_cast %97 : vector<4xf32> to vector<1x4xf32>
    %99 = tpu.concatenate %95, %98 in 0 : vector<1x4xf32>, vector<1x4xf32> -> vector<2x4xf32>
    %c0_116 = arith.constant 0 : index
    %c0_117 = arith.constant 0 : index
    %c0_118 = arith.constant 0 : index
    %100 = vector.load %arg6[%c0_116, %c0_117, %c0_118] : memref<1x2x4xf32, #tpu.memory_space<vmem>>, vector<1x2x4xf32>
    %101 = vector.shape_cast %100 : vector<1x2x4xf32> to vector<2x4xf32>
    %102 = vector.shape_cast %99 : vector<2x4xf32> to vector<1x2x4xf32>
    tpu.vector_store %arg6[%c0_116, %c0_117, %c0_118], %102 {strides = array<i32>} : memref<1x2x4xf32, #tpu.memory_space<vmem>>, vector<1x2x4xf32>,
    return
  }
  func.func @transform_0(%arg0: i32) -> (i32, i32, i32, i32) {
    %c0_i32 = arith.constant 0 : i32
    %c0_i32_0 = arith.constant 0 : i32
    %c0_i32_1 = arith.constant 0 : i32
    %c0_i32_2 = arith.constant 0 : i32
    return %arg0, %c0_i32, %c0_i32_0, %c0_i32_1 : i32, i32, i32, i32
  }
  func.func @transform_1(%arg0: i32) -> (i32, i32, i32) {
    %c0_i32 = arith.constant 0 : i32
    %c0_i32_0 = arith.constant 0 : i32
    %c0_i32_1 = arith.constant 0 : i32
    %c0_i32_2 = arith.constant 0 : i32
    return %c0_i32, %c0_i32_0, %c0_i32_1 : i32, i32, i32
  }
  func.func @transform_2(%arg0: i32) -> (i32, i32) {
    %c0_i32 = arith.constant 0 : i32
    %c0_i32_0 = arith.constant 0 : i32
    %c0_i32_1 = arith.constant 0 : i32
    return %c0_i32, %c0_i32_0 : i32, i32
  }
  func.func @transform_3(%arg0: i32) -> (i32, i32) {
    %c0_i32 = arith.constant 0 : i32
    %c0_i32_0 = arith.constant 0 : i32
    %c0_i32_1 = arith.constant 0 : i32
    return %c0_i32, %c0_i32_0 : i32, i32
  }
  func.func @transform_4(%arg0: i32) -> (i32, i32, i32, i32) {
    %c0_i32 = arith.constant 0 : i32
    %c0_i32_0 = arith.constant 0 : i32
    %c0_i32_1 = arith.constant 0 : i32
    %c0_i32_2 = arith.constant 0 : i32
    return %arg0, %c0_i32, %c0_i32_0, %c0_i32_1 : i32, i32, i32, i32
  }
  func.func @transform_5(%arg0: i32) -> (i32, i32, i32) {
    %c0_i32 = arith.constant 0 : i32
    %c0_i32_0 = arith.constant 0 : i32
    %c0_i32_1 = arith.constant 0 : i32
    return %arg0, %c0_i32, %c0_i32_0 : i32, i32, i32
  }
}

</mosaic_0001>

<bundles_post_ra>
// kernel: separated_conv_forward.2
= control target key start
LH: loop header
LB: loop body
LE: loop exit
PB: predicated region body
PF: predicated region fallthrough
CT: control target
= control target key end

     0   :  { %s4269_s18 = smov 0   ;;  %s5561_s0 = inlined_call_operand.vmem [shape: f32[2,16,16,4], index: 0, kind: input, shape index: {}]   ;;  %s5562_s1 = inlined_call_operand.vmem [shape: f32[9,4,4], index: 1, kind: input, shape index: {}]   ;;  %s5563_s2 = inlined_call_operand.vmem [shape: f32[1,4], index: 2, kind: input, shape index: {}]   ;;  %s5564_s3 = inlined_call_operand.vmem [shape: f32[1,4], index: 3, kind: input, shape index: {}]   ;;  %s5565_s4 = inlined_call_operand.vmem [shape: f32[2,16,16,4], index: 4, kind: output, shape index: {0}]   ;;  %s5566_s5 = inlined_call_operand.vmem [shape: f32[2,2,4], index: 5, kind: output, shape index: {1}]  }
   0x1 LB: > { %s3895_s19 = sadd.s32 4294967295, %s4236_s18   ;;  %p3899_p0 = scmp.ge.s32.totalorder %s4236_s18, 1  ;;  %s4236_s18 = sphi %s4269_s18, %s16_s18  }
   0x2   : > { %p190_p1 = scmp.lt.s32.totalorder %s4236_s18, 3 }
   0x4   : > { %p191_p2 = pnand %p3899_p0, %p190_p1 }
   0x5   : > { %p222_p3 = scmp.lt.s32.totalorder (!%p191_p2), %s3895_s19, 1 }
   0x6   : > { %194 = sbr.rel (%p191_p2) target bundleno = 851 (0x353), region = 36 }
   0xb   : > { %v557_v0 = vld [vmem:[%s5562_s1] sm:$0xf]  ;;  %vm654_vm0 = vcmask 1043456   ;;  %s5568_s19 = smov (!%p222_p3, %s3895_s19), 1  ;;  %vm372_vm1 = vcmask 31744   ;;  %v4238_v2 = vmov 0.0  }
   0xc   : > { %4214 = vmatpush.msk.msra.mxu1 %vm654_vm0, %v557_v0  ;;  %4215 = vmatpush.msk.msra.mxu2 %vm654_vm0, %v557_v0  ;;  %v4289_v1 = vld [vmem:[%s5563_s2] ss:$0 sm:$0xff]  ;;  %386 = vst.msk [vmem:[#allocation2 + $0x60] sm:$0xff] %vm372_vm1, %v4238_v2  ;;  %s4212_s24 = sshll.u32 %s5568_s19, 8  ;;  %v3938_v9 = vld [vmem:[%s5562_s1 + $0x4] sm:$0xf] }
   0xd   : > { %4216 = vmatpush.msk.msra.mxu3 %vm654_vm0, %v557_v0  ;;  %3905 = vmatpush.msk.msra.mxu0 %vm654_vm0, %v557_v0  ;;  %387 = vst.msk [vmem:[#allocation2 + $0x68] sm:$0xff] %vm372_vm1, %v4238_v2  ;;  %s4301_s27 = scalar_lea.vmem %s5561_s0, %s4212_s24  ;;  %v4306_v3 = vld [vmem:[%s5564_s3] ss:$0 sm:$0xff]  ;;  %v3972_v10 = vld [vmem:[%s5562_s1 + $0x8] sm:$0xf]  ;;  %vm375_vm2 = vcmask 25600   ;;  %s5160_s30 = scalar_lea.vmem %s5565_s4, %s4212_s24 }
   0xe   : > { %373 = vst.msk [vmem:[#allocation2] sm:$0xff] %vm372_vm1, %v4238_v2  ;;  %v244_v4 = vld [vmem:[%s4301_s27 + $0x30] sm:$0xff]  ;;  %3939 = vmatpush.msk.msrb.mxu1 %vm654_vm0, %v3938_v9  ;;  %3973 = vmatpush.msk.msrb.mxu2 %vm654_vm0, %v3972_v10  ;;  %v245_v12 = vld [vmem:[%s4301_s27 + $0x38] sm:$0xff]  ;;  %v4006_v18 = vld [vmem:[%s5562_s1 + $0xc] sm:$0xf]  ;;  %s3904_s24 = sshll.u32 %s5568_s19, 1 }
   0xf   : > { %374 = vst.msk [vmem:[#allocation2 + $0x8] sm:$0xff] %vm372_vm1, %v4238_v2  ;;  %v279_v5 = vmul.f32 %v4289_v1, %v244_v4  ;;  %v252_v11 = vld [vmem:[%s4301_s27 + $0x70] sm:$0xff]  ;;  %v280_v14 = vmul.f32 %v4289_v1, %v245_v12  ;;  %4007 = vmatpush.msk.msrb.mxu3 %vm654_vm0, %v4006_v18  ;;  %v253_v20 = vld [vmem:[%s4301_s27 + $0x78] sm:$0xff]  ;;  %v246_v23 = vld [vmem:[%s4301_s27 + $0x40] sm:$0xff]  ;;  %vm3806_vm3 = vcmask 1040384   ;;  %s235_s8 = scalar_lea.vmem %s5566_s5, %s3904_s24 }
  0x10   : > { %377 = vst.msk [vmem:[#allocation2 + $0x18] sm:$0xff] %vm372_vm1, %v4238_v2  ;;  %v287_v13 = vmul.f32 %v4289_v1, %v252_v11  ;;  %v260_v21 = vld [vmem:[%s4301_s27 + $0xb0] sm:$0xff]  ;;  %v288_v24 = vmul.f32 %v4289_v1, %v253_v20  ;;  %v254_v25 = vld [vmem:[%s4301_s27 + $0x80] sm:$0xff]  ;;  %v261_v28 = vld [vmem:[%s4301_s27 + $0xb8] sm:$0xff]  ;;  %v281_v29 = vmul.f32 %v4289_v1, %v246_v23 }
  0x11   : > { %378 = vst.msk [vmem:[#allocation2 + $0x20] sm:$0xff] %vm372_vm1, %v4238_v2  ;;  %v314_v6 = vadd.f32 %v4306_v3, %v279_v5  ;;  %v315_v16 = vadd.f32 %v4306_v3, %v280_v14  ;;  %v295_v27 = vmul.f32 %v4289_v1, %v260_v21  ;;  %v247_v30 = vld [vmem:[%s4301_s27 + $0x48] sm:$0xff]  ;;  %v289_v31 = vmul.f32 %v4289_v1, %v254_v25  ;;  %v262_v36 = vld [vmem:[%s4301_s27 + $0xc0] sm:$0xff]  ;;  %v4040_v39 = vld [vmem:[%s5562_s1 + $0x10] sm:$0xf] }
  0x12   : > { %380 = vst.msk [vmem:[#allocation2 + $0x30] sm:$0xff] %vm372_vm1, %v4238_v2  ;;  %v322_v15 = vadd.f32 %v4306_v3, %v287_v13  ;;  %v255_v32 = vld [vmem:[%s4301_s27 + $0x88] sm:$0xff]  ;;  %v323_v33 = vadd.f32 %v4306_v3, %v288_v24  ;;  %v296_v34 = vmul.f32 %v4289_v1, %v261_v28  ;;  %v282_v38 = vmul.f32 %v4289_v1, %v247_v30  ;;  %v248_v40 = vld [vmem:[%s4301_s27 + $0x50] sm:$0xff]  ;;  %v249_v50 = vld [vmem:[%s4301_s27 + $0x58] sm:$0xff] }
  0x13   : > { %381 = vst.msk [vmem:[#allocation2 + $0x38] sm:$0xff] %vm372_vm1, %v4238_v2  ;;  %v346_v7 = vmax.f32 %v314_v6, 0.0  ;;  %v347_v19 = vmax.f32 %v315_v16, 0.0  ;;  %v330_v37 = vadd.f32 %v4306_v3, %v295_v27  ;;  %v316_v41 = vadd.f32 %v4306_v3, %v281_v29  ;;  %4041 = vmatpush.msk.msrb.mxu0 %vm654_vm0, %v4040_v39  ;;  %v256_v43 = vld [vmem:[%s4301_s27 + $0x90] sm:$0xff]  ;;  %v263_v46 = vld [vmem:[%s4301_s27 + $0xc8] sm:$0xff]  ;;  %v257_v54 = vld [vmem:[%s4301_s27 + $0x98] sm:$0xff] }
  0x14   : > { %383 = vst.msk [vmem:[#allocation2 + $0x48] sm:$0xff] %vm372_vm1, %v4238_v2  ;;  %v354_v17 = vmax.f32 %v322_v15, 0.0  ;;  %v290_v42 = vmul.f32 %v4289_v1, %v255_v32  ;;  %v324_v44 = vadd.f32 %v4306_v3, %v289_v31  ;;  %v297_v45 = vmul.f32 %v4289_v1, %v262_v36  ;;  %v238_v58 = vld [vmem:[%s4301_s27] sm:$0xff]  ;;  %v264_v62 = vld [vmem:[%s4301_s27 + $0xd0] sm:$0xff]  ;;  %v265_v18 = vld [vmem:[%s4301_s27 + $0xd8] sm:$0xff] }
  0x15   : > { %384 = vst.msk [vmem:[#allocation2 + $0x50] sm:$0xff] %vm372_vm1, %v4238_v2  ;;  %v493_v35 = vld [vmem:[#allocation2] sm:$0xff]  ;;  %v355_v47 = vmax.f32 %v323_v33, 0.0  ;;  %v331_v48 = vadd.f32 %v4306_v3, %v296_v34  ;;  %v283_v49 = vmul.f32 %v4289_v1, %v248_v40  ;;  %v362_v51 = vmax.f32 %v330_v37, 0.0  ;;  %v251_v27 = vld [vmem:[%s4301_s27 + $0x68] sm:$0xff] }
  0x16   : > { %435 = vst.msk [vmem:[#allocation2 + $0x61] sm:$0xff] %vm372_vm1, %v346_v7  ;;  %3906 = vmatmul.msk.f32.vlgmr.msra.gmra.mxu0 %vm372_vm1, %v493_v35  ;;  %v317_v52 = vadd.f32 %v4306_v3, %v282_v38  ;;  %v291_v53 = vmul.f32 %v4289_v1, %v256_v43  ;;  %v348_v55 = vmax.f32 %v316_v41, 0.0  ;;  %v325_v56 = vadd.f32 %v4306_v3, %v290_v42  ;;  %v494_v4 = vld [vmem:[#allocation2 + $0x8] sm:$0xff]  ;;  %v250_v6 = vld [vmem:[%s4301_s27 + $0x60] sm:$0xff] }
  0x17   : > { %389 = vst.msk [vmem:[#allocation2 + $0x78] sm:$0xff] %vm372_vm1, %v4238_v2  ;;  %v298_v57 = vmul.f32 %v4289_v1, %v263_v46  ;;  %v356_v59 = vmax.f32 %v324_v44, 0.0  ;;  %v332_v60 = vadd.f32 %v4306_v3, %v297_v45  ;;  %v284_v61 = vmul.f32 %v4289_v1, %v249_v50  ;;  %v258_v10 = vld [vmem:[%s4301_s27 + $0xa0] sm:$0xff]  ;;  %v259_v41 = vld [vmem:[%s4301_s27 + $0xa8] sm:$0xff] }
  0x18   : > { %390 = vst.msk [vmem:[#allocation2 + $0x80] sm:$0xff] %vm372_vm1, %v4238_v2  ;;  %v363_v63 = vmax.f32 %v331_v48, 0.0  ;;  %v318_v0 = vadd.f32 %v4306_v3, %v283_v49  ;;  %v292_v5 = vmul.f32 %v4289_v1, %v257_v54  ;;  %v326_v7 = vadd.f32 %v4306_v3, %v291_v53  ;;  %v266_v48 = vld [vmem:[%s4301_s27 + $0xe0] sm:$0xff] }
  0x19   : > { %392 = vst.msk [vmem:[#allocation2 + $0x90] sm:$0xff] %vm372_vm1, %v4238_v2  ;;  %v273_v9 = vmul.f32 %v4289_v1, %v238_v58  ;;  %v357_v11 = vmax.f32 %v325_v56, 0.0  ;;  %v333_v12 = vadd.f32 %v4306_v3, %v298_v57  ;;  %v299_v13 = vmul.f32 %v4289_v1, %v264_v62 }
  0x1a   : > { %393 = vst.msk [vmem:[#allocation2 + $0x98] sm:$0xff] %vm372_vm1, %v4238_v2  ;;  %v364_v14 = vmax.f32 %v332_v60, 0.0  ;;  %v319_v15 = vadd.f32 %v4306_v3, %v284_v61  ;;  %v285_v16 = vmul.f32 %v4289_v1, %v250_v6  ;;  %v327_v20 = vadd.f32 %v4306_v3, %v292_v5 }
  0x1b   : > { %395 = vst.msk [vmem:[#allocation2 + $0xa8] sm:$0xff] %vm372_vm1, %v4238_v2  ;;  %v293_v21 = vmul.f32 %v4289_v1, %v258_v10  ;;  %v358_v23 = vmax.f32 %v326_v7, 0.0  ;;  %v308_v24 = vadd.f32 %v4306_v3, %v273_v9  ;;  %v365_v28 = vmax.f32 %v333_v12, 0.0 }
  0x1c   : > { %396 = vst.msk [vmem:[#allocation2 + $0xb0] sm:$0xff] %vm372_vm1, %v4238_v2  ;;  %v334_v29 = vadd.f32 %v4306_v3, %v299_v13  ;;  %v300_v30 = vmul.f32 %v4289_v1, %v265_v18  ;;  %v351_v32 = vmax.f32 %v319_v15, 0.0  ;;  %v320_v33 = vadd.f32 %v4306_v3, %v285_v16  ;;  %v4074_v16 = vld [vmem:[%s5562_s1 + $0x14] sm:$0xf] }
  0x1d   : > { %v4340_v8 = vld [vmem:[#allocation2 + $0x60] sm:$0xff]  ;;  %398 = vst.msk [vmem:[#allocation2 + $0xc0] sm:$0xff] %vm372_vm1, %v4238_v2  ;;  %v286_v34 = vmul.f32 %v4289_v1, %v251_v27  ;;  %v359_v36 = vmax.f32 %v327_v20, 0.0  ;;  %v328_v37 = vadd.f32 %v4306_v3, %v293_v21  ;;  %v340_v39 = vmax.f32 %v308_v24, 0.0  ;;  %v4108_v24 = vld [vmem:[%s5562_s1 + $0x18] sm:$0xf] }
  0x1e   : > { %3914 = vmatmul.msk.f32.vlgmr.msra.gmra.mxu1 %vm372_vm1, %v4340_v8  ;;  %399 = vst.msk [vmem:[#allocation2 + $0xc8] sm:$0xff] %vm372_vm1, %v4238_v2  ;;  %3907 = vmatmul.msk.f32.gmra.mxu0 %vm372_vm1, %v494_v4  ;;  %v366_v42 = vmax.f32 %v334_v29, 0.0  ;;  %v335_v43 = vadd.f32 %v4306_v3, %v300_v30  ;;  %v294_v44 = vmul.f32 %v4289_v1, %v259_v41  ;;  %v352_v45 = vmax.f32 %v320_v33, 0.0  ;;  %v267_v4 = vld [vmem:[%s4301_s27 + $0xe8] sm:$0xff] }
  0x1f   : > { %401 = vst.msk [vmem:[#allocation2 + $0xd8] sm:$0xff] %vm372_vm1, %v4238_v2  ;;  %v321_v46 = vadd.f32 %v4306_v3, %v286_v34  ;;  %v360_v49 = vmax.f32 %v328_v37, 0.0  ;;  %4075 = vmatpush.msk.msra.mxu1 %vm654_vm0, %v4074_v16 }
  0x20   : > { %402 = vst.msk [vmem:[#allocation2 + $0xe0] sm:$0xff] %vm372_vm1, %v4238_v2  ;;  %v329_v50 = vadd.f32 %v4306_v3, %v294_v44  ;;  %v367_v56 = vmax.f32 %v335_v43, 0.0  ;;  %v835_v43 = vld [vmem:[#allocation2 + $0x1] sm:$0xff] }
  0x21   : > { %404 = vst.msk [vmem:[#allocation2 + $0xf0] sm:$0xff] %vm372_vm1, %v4238_v2  ;;  %v353_v60 = vmax.f32 %v321_v46, 0.0  ;;  %v4176_v44 = vld [vmem:[%s5562_s1 + $0x20] sm:$0xf] }
  0x22   : > { %405 = vst.msk [vmem:[#allocation2 + $0xf8] sm:$0xff] %vm372_vm1, %v4238_v2  ;;  %v361_v61 = vmax.f32 %v329_v50, 0.0  ;;  %4177 = vmatpush.msk.msra.mxu0 %vm654_vm0, %v4176_v44  ;;  %v1177_v46 = vld [vmem:[#allocation2 + $0x2] sm:$0xff] }
  0x23   : > { %407 = vst.msk [vmem:[#allocation2 + $0x108] sm:$0xff] %vm372_vm1, %v4238_v2 }
  0x24   : > { %408 = vst.msk [vmem:[#allocation2 + $0x110] sm:$0xff] %vm372_vm1, %v4238_v2 }
  0x25   : > { %410 = vst.msk [vmem:[#allocation2 + $0x120] sm:$0xff] %vm372_vm1, %v4238_v2 }
  0x26   : > { %411 = vst.msk [vmem:[#allocation2 + $0x128] sm:$0xff] %vm372_vm1, %v4238_v2 }
  0x27   : > { %413 = vst.msk [vmem:[#allocation2 + $0x138] sm:$0xff] %vm372_vm1, %v4238_v2 }
  0x28   : > { %414 = vst.msk [vmem:[#allocation2 + $0x140] sm:$0xff] %vm372_vm1, %v4238_v2 }
  0x29   : > { %416 = vst.msk [vmem:[#allocation2 + $0x150] sm:$0xff] %vm372_vm1, %v4238_v2 }
  0x2a   : > { %417 = vst.msk [vmem:[#allocation2 + $0x158] sm:$0xff] %vm372_vm1, %v4238_v2 }
  0x2b   : > { %419 = vst.msk [vmem:[#allocation2 + $0x168] sm:$0xff] %vm372_vm1, %v4238_v2 }
  0x2c   : > { %420 = vst.msk [vmem:[#allocation2 + $0x170] sm:$0xff] %vm372_vm1, %v4238_v2 }
  0x2d   : > { %422 = vst.msk [vmem:[#allocation2 + $0x180] sm:$0xff] %vm372_vm1, %v4238_v2 }
  0x2e   : > { %423 = vst.msk [vmem:[#allocation2 + $0x188] sm:$0xff] %vm372_vm1, %v4238_v2 }
  0x2f   : > { %425 = vst.msk [vmem:[#allocation2 + $0x198] sm:$0xff] %vm372_vm1, %v4238_v2 }
  0x30   : > { %426 = vst.msk [vmem:[#allocation2 + $0x1a0] sm:$0xff] %vm372_vm1, %v4238_v2 }
  0x31   : > { %461 = vst.msk [vmem:[#allocation3] sm:$0xff] %vm372_vm1, %v4238_v2 }
  0x32   : > { %462 = vst.msk [vmem:[#allocation3 + $0x8] sm:$0xff] %vm372_vm1, %v4238_v2 }
  0x33   : > { %463 = vst.msk [vmem:[#allocation3 + $0x10] sm:$0xff] %vm372_vm1, %v4238_v2 }
  0x34   : > { %464 = vst.msk [vmem:[#allocation3 + $0x18] sm:$0xff] %vm372_vm1, %v4238_v2 }
  0x35   : > { %465 = vst.msk [vmem:[#allocation3 + $0x20] sm:$0xff] %vm372_vm1, %v4238_v2 }
  0x36   : > { %466 = vst.msk [vmem:[#allocation3 + $0x28] sm:$0xff] %vm372_vm1, %v4238_v2 }
  0x37   : > { %467 = vst.msk [vmem:[#allocation3 + $0x30] sm:$0xff] %vm372_vm1, %v4238_v2 }
  0x38   : > { %468 = vst.msk [vmem:[#allocation3 + $0x38] sm:$0xff] %vm372_vm1, %v4238_v2 }
  0x39   : > { %469 = vst.msk [vmem:[#allocation3 + $0x40] sm:$0xff] %vm372_vm1, %v4238_v2 }
  0x3a   : > { %470 = vst.msk [vmem:[#allocation3 + $0x48] sm:$0xff] %vm372_vm1, %v4238_v2 }
  0x3b   : > { %471 = vst.msk [vmem:[#allocation3 + $0x50] sm:$0xff] %vm372_vm1, %v4238_v2 }
  0x3c   : > { %472 = vst.msk [vmem:[#allocation3 + $0x58] sm:$0xff] %vm372_vm1, %v4238_v2 }
  0x3d   : > { %473 = vst.msk [vmem:[#allocation3 + $0x60] sm:$0xff] %vm372_vm1, %v4238_v2 }
  0x3e   : > { %474 = vst.msk [vmem:[#allocation3 + $0x68] sm:$0xff] %vm372_vm1, %v4238_v2 }
  0x3f   : > { %475 = vst.msk [vmem:[#allocation3 + $0x70] sm:$0xff] %vm372_vm1, %v4238_v2 }
  0x40   : > { %476 = vst.msk [vmem:[#allocation3 + $0x78] sm:$0xff] %vm372_vm1, %v4238_v2 }
  0x41   : > { %477 = vst.msk [vmem:[#allocation3 + $0x80] sm:$0xff] %vm372_vm1, %v4238_v2 }
  0x42   : > { %478 = vst.msk [vmem:[#allocation3 + $0x88] sm:$0xff] %vm372_vm1, %v4238_v2 }
  0x43   : > { %479 = vst.msk [vmem:[#allocation3 + $0x90] sm:$0xff] %vm372_vm1, %v4238_v2 }
  0x44   : > { %480 = vst.msk [vmem:[#allocation3 + $0x98] sm:$0xff] %vm372_vm1, %v4238_v2 }
  0x45   : > { %481 = vst.msk [vmem:[#allocation3 + $0xa0] sm:$0xff] %vm372_vm1, %v4238_v2 }
  0x46   : > { %482 = vst.msk [vmem:[#allocation3 + $0xa8] sm:$0xff] %vm372_vm1, %v4238_v2 }
  0x47   : > { %483 = vst.msk [vmem:[#allocation3 + $0xb0] sm:$0xff] %vm372_vm1, %v4238_v2 }
  0x48   : > { %484 = vst.msk [vmem:[#allocation3 + $0xb8] sm:$0xff] %vm372_vm1, %v4238_v2 }
  0x49   : > { %485 = vst.msk [vmem:[#allocation3 + $0xc0] sm:$0xff] %vm372_vm1, %v4238_v2 }
  0x4a   : > { %486 = vst.msk [vmem:[#allocation3 + $0xc8] sm:$0xff] %vm372_vm1, %v4238_v2 }
  0x4b   : > { %487 = vst.msk [vmem:[#allocation3 + $0xd0] sm:$0xff] %vm372_vm1, %v4238_v2 }
  0x4c   : > { %488 = vst.msk [vmem:[#allocation3 + $0xd8] sm:$0xff] %vm372_vm1, %v4238_v2 }
  0x4d   : > { %489 = vst.msk [vmem:[#allocation3 + $0xe0] sm:$0xff] %vm372_vm1, %v4238_v2 }
  0x4e   : > { %490 = vst.msk [vmem:[#allocation3 + $0xe8] sm:$0xff] %vm372_vm1, %v4238_v2 }
  0x4f   : > { %491 = vst.msk [vmem:[#allocation3 + $0xf0] sm:$0xff] %vm372_vm1, %v4238_v2 }
  0x50   : > { %492 = vst.msk [vmem:[#allocation3 + $0xf8] sm:$0xff] %vm372_vm1, %v4238_v2 }
  0x51   : > { %443 = vst.msk [vmem:[#allocation2 + $0xc1] sm:$0xff] %vm372_vm1, %v354_v17  ;;  %v239_v17 = vld [vmem:[%s4301_s27 + $0x8] sm:$0xff] }
  0x52   : > { %388 = vst.msk [vmem:[#allocation2 + $0x70] sm:$0x3] %vm375_vm2, %v4238_v2  ;;  %v274_v25 = vmul.f32 %v4289_v1, %v239_v17  ;;  %v242_v17 = vld [vmem:[%s4301_s27 + $0x20] sm:$0xff] }
  0x53   : > { %436 = vst.msk [vmem:[#allocation2 + $0x69] sm:$0xff] %vm372_vm1, %v347_v19  ;;  %v350_v19 = vmax.f32 %v318_v0, 0.0  ;;  %v241_v0 = vld [vmem:[%s4301_s27 + $0x18] sm:$0xff]  ;;  %v277_v18 = vmul.f32 %v4289_v1, %v242_v17 }
  0x54   : > { %376 = vst.msk [vmem:[#allocation2 + $0x10] sm:$0x3] %vm375_vm2, %v4238_v2  ;;  %v309_v40 = vadd.f32 %v4306_v3, %v274_v25  ;;  %v276_v6 = vmul.f32 %v4289_v1, %v241_v0 }
  0x55   : > { %379 = vst.msk [vmem:[#allocation2 + $0x28] sm:$0x3] %vm375_vm2, %v4238_v2  ;;  %v312_v21 = vadd.f32 %v4306_v3, %v277_v18 }
  0x56   : > { %382 = vst.msk [vmem:[#allocation2 + $0x40] sm:$0x3] %vm375_vm2, %v4238_v2  ;;  %v341_v54 = vmax.f32 %v309_v40, 0.0  ;;  %v311_v10 = vadd.f32 %v4306_v3, %v276_v6 }
  0x57   : > { %385 = vst.msk [vmem:[#allocation2 + $0x58] sm:$0x3] %vm375_vm2, %v4238_v2  ;;  %v344_v25 = vmax.f32 %v312_v21, 0.0  ;;  %v526_v21 = vld [vmem:[#allocation3 + $0x8] sm:$0xff] }
  0x58   : > { %v4480_v22 = vld [vmem:[#allocation2 + $0xc0] sm:$0xff]  ;;  %391 = vst.msk [vmem:[#allocation2 + $0x88] sm:$0x3] %vm375_vm2, %v4238_v2  ;;  %v343_v13 = vmax.f32 %v311_v10, 0.0 }
  0x59   : > { %3922 = vmatmul.msk.f32.vlgmr.msra.gmra.mxu2 %vm372_vm1, %v4480_v22  ;;  %394 = vst.msk [vmem:[#allocation2 + $0xa0] sm:$0x3] %vm375_vm2, %v4238_v2 }
  0x5a   : > { %v4491_v26 = vld [vmem:[#allocation2 + $0x68] sm:$0xff]  ;;  %397 = vst.msk [vmem:[#allocation2 + $0xb8] sm:$0x3] %vm375_vm2, %v4238_v2  ;;  %4109 = vmatpush.msk.msra.mxu2 %vm654_vm0, %v4108_v24 }
  0x5b   : > { %3915 = vmatmul.msk.f32.gmra.mxu1 %vm372_vm1, %v4491_v26  ;;  %400 = vst.msk [vmem:[#allocation2 + $0xd0] sm:$0x3] %vm375_vm2, %v4238_v2  ;;  %v1178_v50 = vld [vmem:[#allocation2 + $0xa] sm:$0xff] }
  0x5c   : > { %403 = vst.msk [vmem:[#allocation2 + $0xe8] sm:$0x3] %vm375_vm2, %v4238_v2  ;;  %v844_v18 = vld [vmem:[#allocation2 + $0x69] sm:$0xff] }
  0x5d   : > { %406 = vst.msk [vmem:[#allocation2 + $0x100] sm:$0x3] %vm375_vm2, %v4238_v2 }
  0x5e   : > { %409 = vst.msk [vmem:[#allocation2 + $0x118] sm:$0x3] %vm375_vm2, %v4238_v2 }
  0x5f   : > { %412 = vst.msk [vmem:[#allocation2 + $0x130] sm:$0x3] %vm375_vm2, %v4238_v2 }
  0x60   : > { %415 = vst.msk [vmem:[#allocation2 + $0x148] sm:$0x3] %vm375_vm2, %v4238_v2 }
  0x61   : > { %418 = vst.msk [vmem:[#allocation2 + $0x160] sm:$0x3] %vm375_vm2, %v4238_v2 }
  0x62   : > { %421 = vst.msk [vmem:[#allocation2 + $0x178] sm:$0x3] %vm375_vm2, %v4238_v2 }
  0x63   : > { %424 = vst.msk [vmem:[#allocation2 + $0x190] sm:$0x3] %vm375_vm2, %v4238_v2 }
  0x64   : > { %427 = vst.msk [vmem:[#allocation2 + $0x1a8] sm:$0x3] %vm375_vm2, %v4238_v2  ;;  %v349_v2 = vmax.f32 %v317_v52, 0.0  ;;  %v301_v52 = vmul.f32 %v4289_v1, %v266_v48  ;;  %v836_v48 = vld [vmem:[#allocation2 + $0x9] sm:$0xff] }
  0x65   : > { %444 = vst.msk [vmem:[#allocation2 + $0xc9] sm:$0xff] %vm372_vm1, %v355_v47  ;;  %v240_v47 = vld [vmem:[%s4301_s27 + $0x10] sm:$0xff] }
  0x66   : > { %451 = vst.msk [vmem:[#allocation2 + $0x121] sm:$0xff] %vm372_vm1, %v362_v51  ;;  %v275_v51 = vmul.f32 %v4289_v1, %v240_v47  ;;  %v336_v58 = vadd.f32 %v4306_v3, %v301_v52 }
  0x67   : > { %437 = vst.msk [vmem:[#allocation2 + $0x79] sm:$0xff] %vm372_vm1, %v348_v55 }
  0x68   : > { %445 = vst.msk [vmem:[#allocation2 + $0xd9] sm:$0xff] %vm372_vm1, %v356_v59  ;;  %v310_v57 = vadd.f32 %v4306_v3, %v275_v51 }
  0x69   : > { %452 = vst.msk [vmem:[#allocation2 + $0x129] sm:$0xff] %vm372_vm1, %v363_v63  ;;  %v368_v63 = vmax.f32 %v336_v58, 0.0 }
  0x6a   : > { %438 = vst.msk [vmem:[#allocation2 + $0x81] sm:$0xff] %vm372_vm1, %v349_v2  ;;  %v342_v62 = vmax.f32 %v310_v57, 0.0  ;;  %v302_v2 = vmul.f32 %v4289_v1, %v267_v4 }
  0x6b   : > { %446 = vst.msk [vmem:[#allocation2 + $0xe1] sm:$0xff] %vm372_vm1, %v357_v11 }
  0x6c   : > { %v4579_v31 = vld [vmem:[#allocation2 + $0xc8] sm:$0xff]  ;;  %453 = vst.msk [vmem:[#allocation2 + $0x139] sm:$0xff] %vm372_vm1, %v364_v14  ;;  %v337_v11 = vadd.f32 %v4306_v3, %v302_v2 }
  0x6d   : > { %3923 = vmatmul.msk.f32.gmra.mxu2 %vm372_vm1, %v4579_v31  ;;  %v517_v35 = vld [vmem:[#allocation2 + $0x120] sm:$0xff]  ;;  %439 = vst.msk [vmem:[#allocation2 + $0x91] sm:$0xff] %vm372_vm1, %v350_v19 }
  0x6e   : > { %3930 = vmatmul.msk.f32.vlgmr.msra.gmra.mxu3 %vm372_vm1, %v517_v35  ;;  %v4589_v38 = vld [vmem:[#allocation2 + $0x78] sm:$0xff]  ;;  %447 = vst.msk [vmem:[#allocation2 + $0xf1] sm:$0xff] %vm372_vm1, %v358_v23  ;;  %v369_v14 = vmax.f32 %v337_v11, 0.0  ;;  %v843_v2 = vld [vmem:[#allocation2 + $0x61] sm:$0xff]  ;;  %v541_v11 = vld [vmem:[#allocation3 + $0x80] sm:$0xff] }
  0x6f   : > { %3916 = vmatmul.msk.f32.gmra.mxu1 %vm372_vm1, %v4589_v38  ;;  %454 = vst.msk [vmem:[#allocation2 + $0x141] sm:$0xff] %vm372_vm1, %v365_v28  ;;  %v4607_v53 = vld [vmem:[#allocation2 + $0xd8] sm:$0xff]  ;;  %v243_v28 = vld [vmem:[%s4301_s27 + $0x28] sm:$0xff] }
  0x70   : > { %440 = vst.msk [vmem:[#allocation2 + $0x99] sm:$0xff] %vm372_vm1, %v351_v32  ;;  %v518_v55 = vld [vmem:[#allocation2 + $0x128] sm:$0xff]  ;;  %v278_v29 = vmul.f32 %v4289_v1, %v243_v28  ;;  %v535_v28 = vld [vmem:[#allocation3 + $0x50] sm:$0xff] }
  0x71   : > { %448 = vst.msk [vmem:[#allocation2 + $0xf9] sm:$0xff] %vm372_vm1, %v359_v36  ;;  %v4613_v59 = vld [vmem:[#allocation2 + $0x80] sm:$0xff]  ;;  %v4142_v36 = vld [vmem:[%s5562_s1 + $0x1c] sm:$0xf] }
  0x72   : > { %429 = vst.msk [vmem:[#allocation2 + $0x19] sm:$0xff] %vm372_vm1, %v340_v39  ;;  %v4632_v7 = vld [vmem:[#allocation2 + $0xe0] sm:$0xff]  ;;  %v313_v33 = vadd.f32 %v4306_v3, %v278_v29  ;;  %4143 = vmatpush.msk.msra.mxu3 %vm654_vm0, %v4142_v36 }
  0x73   : > { %455 = vst.msk [vmem:[#allocation2 + $0x151] sm:$0xff] %vm372_vm1, %v366_v42  ;;  %v519_v9 = vld [vmem:[#allocation2 + $0x138] sm:$0xff] }
  0x74   : > { %441 = vst.msk [vmem:[#allocation2 + $0xa9] sm:$0xff] %vm372_vm1, %v352_v45  ;;  %v4640_v12 = vld [vmem:[#allocation2 + $0x90] sm:$0xff]  ;;  %v345_v35 = vmax.f32 %v313_v33, 0.0  ;;  %v542_v33 = vld [vmem:[#allocation3 + $0x88] sm:$0xff] }
  0x75   : > { %3924 = vmatmul.msk.f32.gmra.mxu2 %vm372_vm1, %v4607_v53  ;;  %449 = vst.msk [vmem:[#allocation2 + $0x109] sm:$0xff] %vm372_vm1, %v360_v49  ;;  %v4657_v19 = vld [vmem:[#allocation2 + $0xf0] sm:$0xff] }
  0x76   : > { %3931 = vmatmul.msk.f32.gmra.mxu3 %vm372_vm1, %v518_v55  ;;  %430 = vst.msk [vmem:[#allocation2 + $0x21] sm:$0xff] %vm372_vm1, %v341_v54  ;;  %v520_v20 = vld [vmem:[#allocation2 + $0x140] sm:$0xff] }
  0x77   : > { %3917 = vmatmul.msk.f32.gmra.mxu1 %vm372_vm1, %v4613_v59  ;;  %456 = vst.msk [vmem:[#allocation2 + $0x159] sm:$0xff] %vm372_vm1, %v367_v56  ;;  %v4662_v23 = vld [vmem:[#allocation2 + $0x98] sm:$0xff]  ;;  %v533_v56 = vld [vmem:[#allocation3 + $0x40] sm:$0xff] }
  0x78   : > { %442 = vst.msk [vmem:[#allocation2 + $0xb1] sm:$0xff] %vm372_vm1, %v353_v60  ;;  %v4676_v30 = vld [vmem:[#allocation2 + $0xf8] sm:$0xff] }
  0x79   : > { %v4627_v5 = vld [vmem:[#allocation2 + $0x18] sm:$0xff]  ;;  %450 = vst.msk [vmem:[#allocation2 + $0x111] sm:$0xff] %vm372_vm1, %v361_v61 }
  0x7a   : > { %3908 = vmatmul.msk.f32.gmra.mxu0 %vm372_vm1, %v4627_v5  ;;  %431 = vst.msk [vmem:[#allocation2 + $0x31] sm:$0xff] %vm372_vm1, %v342_v62  ;;  %v521_v32 = vld [vmem:[#allocation2 + $0x150] sm:$0xff]  ;;  %v837_v49 = vld [vmem:[#allocation2 + $0x19] sm:$0xff] }
  0x7b   : > { %457 = vst.msk [vmem:[#allocation2 + $0x169] sm:$0xff] %vm372_vm1, %v368_v63  ;;  %v4680_v34 = vld [vmem:[#allocation2 + $0xa8] sm:$0xff] }
  0x7c   : > { %432 = vst.msk [vmem:[#allocation2 + $0x39] sm:$0xff] %vm372_vm1, %v343_v13  ;;  %v4692_v3 = vld [vmem:[#allocation2 + $0x108] sm:$0xff] }
  0x7d   : > { %3925 = vmatmul.msk.f32.gmra.mxu2 %vm372_vm1, %v4632_v7  ;;  %v4647_v15 = vld [vmem:[#allocation2 + $0x20] sm:$0xff]  ;;  %458 = vst.msk [vmem:[#allocation2 + $0x171] sm:$0xff] %vm372_vm1, %v369_v14  ;;  %v525_v14 = vld [vmem:[#allocation3] sm:$0xff] }
  0x7e   : > { %3932 = vmatmul.msk.f32.gmra.mxu3 %vm372_vm1, %v519_v9  ;;  %433 = vst.msk [vmem:[#allocation2 + $0x49] sm:$0xff] %vm372_vm1, %v344_v25  ;;  %v522_v37 = vld [vmem:[#allocation2 + $0x158] sm:$0xff]  ;;  %v838_v51 = vld [vmem:[#allocation2 + $0x21] sm:$0xff] }
  0x7f   : > { %3918 = vmatmul.msk.f32.gmra.mxu1 %vm372_vm1, %v4640_v12  ;;  %434 = vst.msk [vmem:[#allocation2 + $0x51] sm:$0xff] %vm372_vm1, %v345_v35  ;;  %v4695_v39 = vld [vmem:[#allocation2 + $0xb0] sm:$0xff]  ;;  %v1179_v52 = vld [vmem:[#allocation2 + $0x1a] sm:$0xff]  ;;  %v1180_v55 = vld [vmem:[#allocation2 + $0x22] sm:$0xff] }
  0x80   : > { %v4702_v41 = vld [vmem:[#allocation2 + $0x110] sm:$0xff] }
  0x81   : > { %v497_v27 = vld [vmem:[#allocation2 + $0x30] sm:$0xff] }
  0x82   : > { %3909 = vmatmul.msk.f32.gmra.mxu0 %vm372_vm1, %v4647_v15  ;;  %v523_v42 = vld [vmem:[#allocation2 + $0x168] sm:$0xff]  ;;  %v839_v54 = vld [vmem:[#allocation2 + $0x31] sm:$0xff] }
  0x83   : > { %v498_v1 = vld [vmem:[#allocation2 + $0x38] sm:$0xff] }
  0x84   : > { %v524_v47 = vld [vmem:[#allocation2 + $0x170] sm:$0xff]  ;;  %v840_v60 = vld [vmem:[#allocation2 + $0x39] sm:$0xff] }
  0x85   : > { %3926 = vmatmul.msk.f32.gmra.mxu2 %vm372_vm1, %v4657_v19  ;;  %v499_v40 = vld [vmem:[#allocation2 + $0x48] sm:$0xff]  ;;  %v1181_v61 = vld [vmem:[#allocation2 + $0x32] sm:$0xff]  ;;  %v1182_v63 = vld [vmem:[#allocation2 + $0x3a] sm:$0xff] }
  0x86   : > { %3933 = vmatmul.msk.f32.gmra.mxu3 %vm372_vm1, %v520_v20  ;;  %v500_v45 = vld [vmem:[#allocation2 + $0x50] sm:$0xff]  ;;  %v1185_v20 = vld [vmem:[#allocation2 + $0x62] sm:$0xff] }
  0x87   : > { %3919 = vmatmul.msk.f32.gmra.mxu1 %vm372_vm1, %v4662_v23  ;;  %v841_v62 = vld [vmem:[#allocation2 + $0x49] sm:$0xff]  ;;  %v842_v0 = vld [vmem:[#allocation2 + $0x51] sm:$0xff] }
  0x88   : > { %v1183_v4 = vld [vmem:[#allocation2 + $0x4a] sm:$0xff]  ;;  %v1184_v10 = vld [vmem:[#allocation2 + $0x52] sm:$0xff] }
  0x8a   : > { %3910 = vmatmul.msk.f32.gmra.mxu0 %vm372_vm1, %v497_v27 }
  0x8d   : > { %3927 = vmatmul.msk.f32.gmra.mxu2 %vm372_vm1, %v4676_v30 }
  0x8e   : > { %3934 = vmatmul.msk.f32.gmra.mxu3 %vm372_vm1, %v521_v32 }
  0x8f   : > { %3920 = vmatmul.msk.f32.gmra.mxu1 %vm372_vm1, %v4680_v34 }
  0x92   : > { %3911 = vmatmul.msk.f32.gmra.mxu0 %vm372_vm1, %v498_v1 }
  0x95   : > { %3928 = vmatmul.msk.f32.gmra.mxu2 %vm372_vm1, %v4692_v3 }
  0x96   : > { %3935 = vmatmul.msk.f32.gmra.mxu3 %vm372_vm1, %v522_v37  ;;  %v846_v37 = vld [vmem:[#allocation2 + $0x81] sm:$0xff] }
  0x97   : > { %3921 = vmatmul.msk.f32.gmra.mxu1 %vm372_vm1, %v4695_v39 }
  0x9a   : > { %3912 = vmatmul.msk.f32.gmra.mxu0 %vm372_vm1, %v499_v40 }
  0x9b   : > { %v699_v57 = vpop.f32.mrf.mxu1 }
  0x9c   : > { %v779_v58 = vadd.f32 %v699_v57, %v533_v56  ;;  %v1188_v56 = vld [vmem:[#allocation2 + $0x82] sm:$0xff]  ;;  %v537_v57 = vld [vmem:[#allocation3 + $0x60] sm:$0xff] }
  0x9d   : > { %3929 = vmatmul.msk.f32.gmra.mxu2 %vm372_vm1, %v4702_v41 }
  0x9e   : > { %3936 = vmatmul.msk.f32.gmra.mxu3 %vm372_vm1, %v523_v42  ;;  %811 = vst.msk [vmem:[#allocation3 + $0x40] sm:$0xff] %vm372_vm1, %v779_v58  ;;  %v1187_v42 = vld [vmem:[#allocation2 + $0x7a] sm:$0xff] }
  0x9f   : > { %3940 = vmatmul.msk.f32.vlgmr.msrb.gmra.mxu1 %vm372_vm1, %v835_v43  ;;  %v536_v43 = vld [vmem:[#allocation3 + $0x58] sm:$0xff] }
  0xa2   : > { %3913 = vmatmul.msk.f32.gmra.mxu0 %vm372_vm1, %v500_v45 }
  0xa5   : > { %3974 = vmatmul.msk.f32.vlgmr.msrb.gmra.mxu2 %vm372_vm1, %v1177_v46  ;;  %v543_v46 = vld [vmem:[#allocation3 + $0x90] sm:$0xff] }
  0xa6   : > { %3937 = vmatmul.msk.f32.gmra.mxu3 %vm372_vm1, %v524_v47  ;;  %v550_v47 = vld [vmem:[#allocation3 + $0xc8] sm:$0xff] }
  0xa7   : > { %3941 = vmatmul.msk.f32.gmra.mxu1 %vm372_vm1, %v836_v48 }
  0xaa   : > { %4042 = vmatmul.msk.f32.vlgmr.msrb.gmra.mxu0 %vm372_vm1, %v837_v49 }
  0xad   : > { %3975 = vmatmul.msk.f32.gmra.mxu2 %vm372_vm1, %v1178_v50 }
  0xae   : > { %4008 = vmatmul.msk.f32.vlgmr.msrb.gmra.mxu3 %vm372_vm1, %v4627_v5  ;;  %v534_v5 = vld [vmem:[#allocation3 + $0x48] sm:$0xff] }
  0xaf   : > { %3942 = vmatmul.msk.f32.gmra.mxu1 %vm372_vm1, %v837_v49 }
  0xb2   : > { %4043 = vmatmul.msk.f32.gmra.mxu0 %vm372_vm1, %v838_v51 }
  0xb5   : > { %3976 = vmatmul.msk.f32.gmra.mxu2 %vm372_vm1, %v1179_v52 }
  0xb6   : > { %4009 = vmatmul.msk.f32.gmra.mxu3 %vm372_vm1, %v4647_v15  ;;  %v675_v15 = vpop.f32.mrf.mxu0 }
  0xb7   : > { %3943 = vmatmul.msk.f32.gmra.mxu1 %vm372_vm1, %v838_v51  ;;  %v771_v17 = vadd.f32 %v675_v15, %v525_v14  ;;  %v529_v14 = vld [vmem:[#allocation3 + $0x20] sm:$0xff] }
  0xb8   : > { %v545_v15 = vld [vmem:[#allocation3 + $0xa0] sm:$0xff] }
  0xb9   : > { %803 = vst.msk [vmem:[#allocation3] sm:$0xff] %vm372_vm1, %v771_v17 }
  0xba   : > { %4044 = vmatmul.msk.f32.gmra.mxu0 %vm372_vm1, %v839_v54 }
  0xbd   : > { %3977 = vmatmul.msk.f32.gmra.mxu2 %vm372_vm1, %v1180_v55 }
  0xbe   : > { %4010 = vmatmul.msk.f32.gmra.mxu3 %vm372_vm1, %v497_v27  ;;  %v678_v24 = vpop.f32.mrf.mxu0  ;;  %v1186_v27 = vld [vmem:[#allocation2 + $0x6a] sm:$0xff] }
  0xbf   : > { %3944 = vmatmul.msk.f32.gmra.mxu1 %vm372_vm1, %v839_v54  ;;  %v772_v25 = vadd.f32 %v678_v24, %v526_v21  ;;  %v847_v54 = vld [vmem:[#allocation2 + $0x91] sm:$0xff] }
  0xc1   : > { %804 = vst.msk [vmem:[#allocation3 + $0x8] sm:$0xff] %vm372_vm1, %v772_v25  ;;  %v849_v25 = vld [vmem:[#allocation2 + $0xa9] sm:$0xff] }
  0xc2   : > { %4045 = vmatmul.msk.f32.gmra.mxu0 %vm372_vm1, %v840_v60 }
  0xc5   : > { %3978 = vmatmul.msk.f32.gmra.mxu2 %vm372_vm1, %v1181_v61  ;;  %v544_v61 = vld [vmem:[#allocation3 + $0x98] sm:$0xff] }
  0xc6   : > { %4011 = vmatmul.msk.f32.gmra.mxu3 %vm372_vm1, %v498_v1 }
  0xc7   : > { %3945 = vmatmul.msk.f32.gmra.mxu1 %vm372_vm1, %v840_v60  ;;  %v528_v60 = vld [vmem:[#allocation3 + $0x18] sm:$0xff] }
  0xca   : > { %4046 = vmatmul.msk.f32.gmra.mxu0 %vm372_vm1, %v841_v62 }
  0xcd   : > { %3979 = vmatmul.msk.f32.gmra.mxu2 %vm372_vm1, %v1182_v63 }
  0xce   : > { %4012 = vmatmul.msk.f32.gmra.mxu3 %vm372_vm1, %v499_v40 }
  0xcf   : > { %3946 = vmatmul.msk.f32.gmra.mxu1 %vm372_vm1, %v841_v62  ;;  %v551_v62 = vld [vmem:[#allocation3 + $0xd0] sm:$0xff] }
  0xd2   : > { %4047 = vmatmul.msk.f32.gmra.mxu0 %vm372_vm1, %v842_v0 }
  0xd5   : > { %3980 = vmatmul.msk.f32.gmra.mxu2 %vm372_vm1, %v1183_v4 }
  0xd6   : > { %4013 = vmatmul.msk.f32.gmra.mxu3 %vm372_vm1, %v500_v45  ;;  %v527_v45 = vld [vmem:[#allocation3 + $0x10] sm:$0xff] }
  0xd7   : > { %3947 = vmatmul.msk.f32.gmra.mxu1 %vm372_vm1, %v842_v0 }
  0xd8   : > { %v702_v6 = vpop.f32.mrf.mxu1 }
  0xd9   : > { %v780_v9 = vadd.f32 %v702_v6, %v534_v5 }
  0xda   : > { %4048 = vmatmul.msk.f32.gmra.mxu0 %vm372_vm1, %v843_v2 }
  0xdb   : > { %812 = vst.msk [vmem:[#allocation3 + $0x48] sm:$0xff] %vm372_vm1, %v780_v9 }
  0xdc   : > { %v723_v13 = vpop.f32.mrf.mxu2 }
  0xdd   : > { %3981 = vmatmul.msk.f32.gmra.mxu2 %vm372_vm1, %v1184_v10  ;;  %v787_v16 = vadd.f32 %v723_v13, %v541_v11  ;;  %v1189_v10 = vld [vmem:[#allocation2 + $0x92] sm:$0xff] }
  0xde   : > { %4014 = vmatmul.msk.f32.gmra.mxu3 %vm372_vm1, %v4340_v8  ;;  %v845_v8 = vld [vmem:[#allocation2 + $0x79] sm:$0xff] }
  0xdf   : > { %3948 = vmatmul.msk.f32.gmra.mxu1 %vm372_vm1, %v843_v2  ;;  %819 = vst.msk [vmem:[#allocation3 + $0x80] sm:$0xff] %vm372_vm1, %v787_v16  ;;  %v848_v2 = vld [vmem:[#allocation2 + $0x99] sm:$0xff]  ;;  %v552_v16 = vld [vmem:[#allocation3 + $0xd8] sm:$0xff] }
  0xe0   : > { %v538_v11 = vld [vmem:[#allocation3 + $0x68] sm:$0xff] }
  0xe2   : > { %4049 = vmatmul.msk.f32.gmra.mxu0 %vm372_vm1, %v844_v18 }
  0xe5   : > { %3982 = vmatmul.msk.f32.gmra.mxu2 %vm372_vm1, %v1185_v20 }
  0xe6   : > { %4015 = vmatmul.msk.f32.gmra.mxu3 %vm372_vm1, %v4491_v26  ;;  %v549_v26 = vld [vmem:[#allocation3 + $0xc0] sm:$0xff] }
  0xe7   : > { %3949 = vmatmul.msk.f32.gmra.mxu1 %vm372_vm1, %v844_v18 }
  0xea   : > { %4050 = vmatmul.msk.f32.gmra.mxu0 %vm372_vm1, %v845_v8 }
  0xec   : > { %v705_v29 = vpop.f32.mrf.mxu1 }
  0xed   : > { %3983 = vmatmul.msk.f32.gmra.mxu2 %vm372_vm1, %v1186_v27  ;;  %v781_v32 = vadd.f32 %v705_v29, %v535_v28  ;;  %v1190_v27 = vld [vmem:[#allocation2 + $0x9a] sm:$0xff] }
  0xee   : > { %4016 = vmatmul.msk.f32.gmra.mxu3 %vm372_vm1, %v4589_v38  ;;  %v539_v28 = vld [vmem:[#allocation3 + $0x70] sm:$0xff] }
  0xef   : > { %813 = vst.msk [vmem:[#allocation3 + $0x50] sm:$0xff] %vm372_vm1, %v781_v32  ;;  %3950 = vmatmul.msk.f32.gmra.mxu1 %vm372_vm1, %v845_v8  ;;  %v530_v32 = vld [vmem:[#allocation3 + $0x28] sm:$0xff] }
  0xf0   : > { %v726_v35 = vpop.f32.mrf.mxu2 }
  0xf1   : > { %v788_v36 = vadd.f32 %v726_v35, %v542_v33  ;;  %v747_v1 = vpop.f32.mrf.mxu3  ;;  %v546_v33 = vld [vmem:[#allocation3 + $0xa8] sm:$0xff] }
  0xf2   : > { %v795_v40 = vadd.f32 %v747_v1, %v549_v26  ;;  %4051 = vmatmul.msk.f32.gmra.mxu0 %vm372_vm1, %v846_v37  ;;  %v553_v26 = vld [vmem:[#allocation3 + $0xe0] sm:$0xff] }
  0xf3   : > { %820 = vst.msk [vmem:[#allocation3 + $0x88] sm:$0xff] %vm372_vm1, %v788_v36 }
  0xf4   : > { %827 = vst.msk [vmem:[#allocation3 + $0xc0] sm:$0xff] %vm372_vm1, %v795_v40  ;;  %v708_v38 = vpop.f32.mrf.mxu1 }
  0xf5   : > { %3984 = vmatmul.msk.f32.gmra.mxu2 %vm372_vm1, %v1187_v42  ;;  %v782_v44 = vadd.f32 %v708_v38, %v536_v43  ;;  %v850_v42 = vld [vmem:[#allocation2 + $0xb1] sm:$0xff] }
  0xf6   : > { %4017 = vmatmul.msk.f32.gmra.mxu3 %vm372_vm1, %v4613_v59  ;;  %v1191_v38 = vld [vmem:[#allocation2 + $0xaa] sm:$0xff] }
  0xf7   : > { %814 = vst.msk [vmem:[#allocation3 + $0x58] sm:$0xff] %vm372_vm1, %v782_v44  ;;  %3951 = vmatmul.msk.f32.gmra.mxu1 %vm372_vm1, %v846_v37  ;;  %v681_v48 = vpop.f32.mrf.mxu0  ;;  %v540_v44 = vld [vmem:[#allocation3 + $0x78] sm:$0xff] }
  0xf8   : > { %v729_v49 = vpop.f32.mrf.mxu2  ;;  %v773_v50 = vadd.f32 %v681_v48, %v527_v45  ;;  %v554_v48 = vld [vmem:[#allocation3 + $0xe8] sm:$0xff] }
  0xf9   : > { %v789_v51 = vadd.f32 %v729_v49, %v543_v46  ;;  %v750_v52 = vpop.f32.mrf.mxu3  ;;  %v531_v46 = vld [vmem:[#allocation3 + $0x30] sm:$0xff] }
  0xfa   : > { %v796_v55 = vadd.f32 %v750_v52, %v550_v47  ;;  %805 = vst.msk [vmem:[#allocation3 + $0x10] sm:$0xff] %vm372_vm1, %v773_v50  ;;  %4052 = vmatmul.msk.f32.gmra.mxu0 %vm372_vm1, %v847_v54  ;;  %v547_v47 = vld [vmem:[#allocation3 + $0xb0] sm:$0xff] }
  0xfb   : > { %821 = vst.msk [vmem:[#allocation3 + $0x90] sm:$0xff] %vm372_vm1, %v789_v51 }
  0xfc   : > { %828 = vst.msk [vmem:[#allocation3 + $0xc8] sm:$0xff] %vm372_vm1, %v796_v55  ;;  %v711_v59 = vpop.f32.mrf.mxu1  ;;  %v851_v55 = vld [vmem:[#allocation2 + $0xc1] sm:$0xff] }
  0xfd   : > { %3985 = vmatmul.msk.f32.gmra.mxu2 %vm372_vm1, %v1188_v56  ;;  %v783_v58 = vadd.f32 %v711_v59, %v537_v57  ;;  %v1192_v57 = vld [vmem:[#allocation2 + $0xb2] sm:$0xff] }
  0xfe   : > { %4018 = vmatmul.msk.f32.gmra.mxu3 %vm372_vm1, %v4640_v12 }
  0xff   : > { %815 = vst.msk [vmem:[#allocation3 + $0x60] sm:$0xff] %vm372_vm1, %v783_v58  ;;  %3952 = vmatmul.msk.f32.gmra.mxu1 %vm372_vm1, %v847_v54  ;;  %v684_v63 = vpop.f32.mrf.mxu0 }
 0x100   : > { %v732_v0 = vpop.f32.mrf.mxu2  ;;  %v774_v4 = vadd.f32 %v684_v63, %v528_v60  ;;  %v532_v60 = vld [vmem:[#allocation3 + $0x38] sm:$0xff] }
 0x101   : > { %v790_v5 = vadd.f32 %v732_v0, %v544_v61  ;;  %v753_v6 = vpop.f32.mrf.mxu3  ;;  %v548_v61 = vld [vmem:[#allocation3 + $0xb8] sm:$0xff] }
 0x102   : > { %v797_v9 = vadd.f32 %v753_v6, %v551_v62  ;;  %806 = vst.msk [vmem:[#allocation3 + $0x18] sm:$0xff] %vm372_vm1, %v774_v4  ;;  %4053 = vmatmul.msk.f32.gmra.mxu0 %vm372_vm1, %v848_v2  ;;  %v555_v62 = vld [vmem:[#allocation3 + $0xf0] sm:$0xff] }
 0x103   : > { %822 = vst.msk [vmem:[#allocation3 + $0x98] sm:$0xff] %vm372_vm1, %v790_v5 }
 0x104   : > { %829 = vst.msk [vmem:[#allocation3 + $0xd0] sm:$0xff] %vm372_vm1, %v797_v9  ;;  %v714_v12 = vpop.f32.mrf.mxu1 }
 0x105   : > { %3986 = vmatmul.msk.f32.gmra.mxu2 %vm372_vm1, %v1189_v10  ;;  %v784_v13 = vadd.f32 %v714_v12, %v538_v11  ;;  %v1193_v10 = vld [vmem:[#allocation2 + $0xc2] sm:$0xff] }
 0x106   : > { %4019 = vmatmul.msk.f32.gmra.mxu3 %vm372_vm1, %v4662_v23 }
 0x107   : > { %816 = vst.msk [vmem:[#allocation3 + $0x68] sm:$0xff] %vm372_vm1, %v784_v13  ;;  %3953 = vmatmul.msk.f32.gmra.mxu1 %vm372_vm1, %v848_v2  ;;  %v687_v17 = vpop.f32.mrf.mxu0  ;;  %v852_v2 = vld [vmem:[#allocation2 + $0xc9] sm:$0xff] }
 0x108   : > { %v735_v18 = vpop.f32.mrf.mxu2  ;;  %v775_v20 = vadd.f32 %v687_v17, %v529_v14  ;;  %v556_v14 = vld [vmem:[#allocation3 + $0xf8] sm:$0xff] }
 0x109   : > { %v791_v21 = vadd.f32 %v735_v18, %v545_v15  ;;  %v756_v24 = vpop.f32.mrf.mxu3 }
 0x10a   : > { %v798_v8 = vadd.f32 %v756_v24, %v552_v16  ;;  %807 = vst.msk [vmem:[#allocation3 + $0x20] sm:$0xff] %vm372_vm1, %v775_v20  ;;  %4054 = vmatmul.msk.f32.gmra.mxu0 %vm372_vm1, %v849_v25  ;;  %v853_v20 = vld [vmem:[#allocation2 + $0xd9] sm:$0xff]  ;;  %v1194_v24 = vld [vmem:[#allocation2 + $0xca] sm:$0xff] }
 0x10b   : > { %823 = vst.msk [vmem:[#allocation3 + $0xa0] sm:$0xff] %vm372_vm1, %v791_v21 }
 0x10c   : > { %830 = vst.msk [vmem:[#allocation3 + $0xd8] sm:$0xff] %vm372_vm1, %v798_v8  ;;  %v717_v23 = vpop.f32.mrf.mxu1 }
 0x10d   : > { %3987 = vmatmul.msk.f32.gmra.mxu2 %vm372_vm1, %v1190_v27  ;;  %v785_v29 = vadd.f32 %v717_v23, %v539_v28 }
 0x10e   : > { %4020 = vmatmul.msk.f32.gmra.mxu3 %vm372_vm1, %v4680_v34 }
 0x10f   : > { %817 = vst.msk [vmem:[#allocation3 + $0x70] sm:$0xff] %vm372_vm1, %v785_v29  ;;  %3954 = vmatmul.msk.f32.gmra.mxu1 %vm372_vm1, %v849_v25  ;;  %v690_v35 = vpop.f32.mrf.mxu0 }
 0x110   : > { %v738_v36 = vpop.f32.mrf.mxu2  ;;  %v776_v1 = vadd.f32 %v690_v35, %v530_v32  ;;  %v1195_v35 = vld [vmem:[#allocation2 + $0xda] sm:$0xff] }
 0x111   : > { %v792_v37 = vadd.f32 %v738_v36, %v546_v33  ;;  %v759_v40 = vpop.f32.mrf.mxu3  ;;  %v854_v33 = vld [vmem:[#allocation2 + $0xe1] sm:$0xff] }
 0x112   : > { %v799_v43 = vadd.f32 %v759_v40, %v553_v26  ;;  %808 = vst.msk [vmem:[#allocation3 + $0x28] sm:$0xff] %vm372_vm1, %v776_v1  ;;  %4055 = vmatmul.msk.f32.gmra.mxu0 %vm372_vm1, %v850_v42  ;;  %v870_v1 = vld [vmem:[#allocation3 + $0x18] sm:$0xff] }
 0x113   : > { %824 = vst.msk [vmem:[#allocation3 + $0xa8] sm:$0xff] %vm372_vm1, %v792_v37 }
 0x114   : > { %831 = vst.msk [vmem:[#allocation3 + $0xe0] sm:$0xff] %vm372_vm1, %v799_v43  ;;  %v720_v34 = vpop.f32.mrf.mxu1 }
 0x115   : > { %3988 = vmatmul.msk.f32.gmra.mxu2 %vm372_vm1, %v1191_v38  ;;  %v786_v45 = vadd.f32 %v720_v34, %v540_v44  ;;  %v855_v34 = vld [vmem:[#allocation2 + $0xf1] sm:$0xff] }
 0x116   : > { %4021 = vmatmul.msk.f32.gmra.mxu3 %vm372_vm1, %v4695_v39  ;;  %v867_v39 = vld [vmem:[#allocation3] sm:$0xff] }
 0x117   : > { %818 = vst.msk [vmem:[#allocation3 + $0x78] sm:$0xff] %vm372_vm1, %v786_v45  ;;  %3955 = vmatmul.msk.f32.gmra.mxu1 %vm372_vm1, %v850_v42  ;;  %v693_v49 = vpop.f32.mrf.mxu0 }
 0x118   : > { %v741_v50 = vpop.f32.mrf.mxu2  ;;  %v777_v51 = vadd.f32 %v693_v49, %v531_v46  ;;  %v1196_v46 = vld [vmem:[#allocation2 + $0xe2] sm:$0xff]  ;;  %v871_v49 = vld [vmem:[#allocation3 + $0x20] sm:$0xff] }
 0x119   : > { %v793_v52 = vadd.f32 %v741_v50, %v547_v47  ;;  %v762_v54 = vpop.f32.mrf.mxu3 }
 0x11a   : > { %v800_v56 = vadd.f32 %v762_v54, %v554_v48  ;;  %809 = vst.msk [vmem:[#allocation3 + $0x30] sm:$0xff] %vm372_vm1, %v777_v51  ;;  %4056 = vmatmul.msk.f32.gmra.mxu0 %vm372_vm1, %v851_v55 }
 0x11b   : > { %825 = vst.msk [vmem:[#allocation3 + $0xb0] sm:$0xff] %vm372_vm1, %v793_v52 }
 0x11c   : > { %832 = vst.msk [vmem:[#allocation3 + $0xe8] sm:$0xff] %vm372_vm1, %v800_v56  ;;  %v1017_v59 = vpop.f32.mrf.mxu1 }
 0x11d   : > { %3989 = vmatmul.msk.f32.gmra.mxu2 %vm372_vm1, %v1192_v57  ;;  %v1113_v58 = vadd.f32 %v1017_v59, %v867_v39  ;;  %v856_v39 = vld [vmem:[#allocation2 + $0xf9] sm:$0xff] }
 0x11e   : > { %4022 = vmatmul.msk.f32.gmra.mxu3 %vm372_vm1, %v4480_v22  ;;  %v868_v22 = vld [vmem:[#allocation3 + $0x8] sm:$0xff] }
 0x11f   : > { %1145 = vst.msk [vmem:[#allocation3] sm:$0xff] %vm372_vm1, %v1113_v58  ;;  %3956 = vmatmul.msk.f32.gmra.mxu1 %vm372_vm1, %v851_v55  ;;  %v696_v63 = vpop.f32.mrf.mxu0  ;;  %v1197_v58 = vld [vmem:[#allocation2 + $0xf2] sm:$0xff] }
 0x120   : > { %v744_v0 = vpop.f32.mrf.mxu2  ;;  %v778_v4 = vadd.f32 %v696_v63, %v532_v60 }
 0x121   : > { %v794_v5 = vadd.f32 %v744_v0, %v548_v61  ;;  %v765_v6 = vpop.f32.mrf.mxu3  ;;  %v872_v61 = vld [vmem:[#allocation3 + $0x28] sm:$0xff] }
 0x122   : > { %v801_v9 = vadd.f32 %v765_v6, %v555_v62  ;;  %810 = vst.msk [vmem:[#allocation3 + $0x38] sm:$0xff] %vm372_vm1, %v778_v4  ;;  %4057 = vmatmul.msk.f32.gmra.mxu0 %vm372_vm1, %v852_v2 }
 0x123   : > { %826 = vst.msk [vmem:[#allocation3 + $0xb8] sm:$0xff] %vm372_vm1, %v794_v5 }
 0x124   : > { %833 = vst.msk [vmem:[#allocation3 + $0xf0] sm:$0xff] %vm372_vm1, %v801_v9  ;;  %v1020_v11 = vpop.f32.mrf.mxu1 }
 0x125   : > { %3990 = vmatmul.msk.f32.gmra.mxu2 %vm372_vm1, %v1193_v10  ;;  %v1114_v12 = vadd.f32 %v1020_v11, %v868_v22  ;;  %v857_v10 = vld [vmem:[#allocation2 + $0x109] sm:$0xff]  ;;  %v1198_v11 = vld [vmem:[#allocation2 + $0xfa] sm:$0xff] }
 0x126   : > { %4023 = vmatmul.msk.f32.gmra.mxu3 %vm372_vm1, %v4579_v31  ;;  %v1209_v13 = vld [vmem:[#allocation3] sm:$0xff]  ;;  %v869_v31 = vld [vmem:[#allocation3 + $0x10] sm:$0xff] }
 0x127   : > { %1146 = vst.msk [vmem:[#allocation3 + $0x8] sm:$0xff] %vm372_vm1, %v1114_v12  ;;  %3957 = vmatmul.msk.f32.gmra.mxu1 %vm372_vm1, %v852_v2  ;;  %v2043_v15 = vpop.f32.mrf.mxu0 }
 0x128   : > { %v1359_v16 = vpop.f32.mrf.mxu2 }
 0x129   : > { %v1455_v17 = vadd.f32 %v1359_v16, %v1209_v13  ;;  %v768_v18 = vpop.f32.mrf.mxu3  ;;  %v873_v13 = vld [vmem:[#allocation3 + $0x30] sm:$0xff] }
 0x12a   : > { %v802_v21 = vadd.f32 %v768_v18, %v556_v14  ;;  %4058 = vmatmul.msk.f32.gmra.mxu0 %vm372_vm1, %v853_v20 }
 0x12b   : > { %1487 = vst.msk [vmem:[#allocation3] sm:$0xff] %vm372_vm1, %v1455_v17 }
 0x12c   : > { %834 = vst.msk [vmem:[#allocation3 + $0xf8] sm:$0xff] %vm372_vm1, %v802_v21  ;;  %v1023_v25 = vpop.f32.mrf.mxu1 }
 0x12d   : > { %3991 = vmatmul.msk.f32.gmra.mxu2 %vm372_vm1, %v1194_v24  ;;  %v1115_v8 = vadd.f32 %v1023_v25, %v869_v31  ;;  %v858_v31 = vld [vmem:[#allocation2 + $0x111] sm:$0xff] }
 0x12e   : > { %4024 = vmatmul.msk.f32.gmra.mxu3 %vm372_vm1, %v4607_v53  ;;  %v1210_v27 = vld [vmem:[#allocation3 + $0x8] sm:$0xff] }
 0x12f   : > { %1147 = vst.msk [vmem:[#allocation3 + $0x10] sm:$0xff] %vm372_vm1, %v1115_v8  ;;  %3958 = vmatmul.msk.f32.gmra.mxu1 %vm372_vm1, %v853_v20  ;;  %v2046_v28 = vpop.f32.mrf.mxu0  ;;  %v1199_v8 = vld [vmem:[#allocation2 + $0x10a] sm:$0xff] }
 0x130   : > { %v1362_v23 = vpop.f32.mrf.mxu2 }
 0x131   : > { %v1456_v29 = vadd.f32 %v1362_v23, %v1210_v27  ;;  %v1701_v32 = vpop.f32.mrf.mxu3 }
 0x132   : > { %v1551_v26 = vld [vmem:[#allocation3] sm:$0xff]  ;;  %4059 = vmatmul.msk.f32.gmra.mxu0 %vm372_vm1, %v854_v33 }
 0x133   : > { %1488 = vst.msk [vmem:[#allocation3 + $0x8] sm:$0xff] %vm372_vm1, %v1456_v29  ;;  %v1797_v36 = vadd.f32 %v1701_v32, %v1551_v26 }
 0x134   : > { %v1026_v37 = vpop.f32.mrf.mxu1 }
 0x135   : > { %1829 = vst.msk [vmem:[#allocation3] sm:$0xff] %vm372_vm1, %v1797_v36  ;;  %3992 = vmatmul.msk.f32.gmra.mxu2 %vm372_vm1, %v1195_v35  ;;  %v1116_v53 = vadd.f32 %v1026_v37, %v870_v1  ;;  %v859_v37 = vld [vmem:[#allocation2 + $0x121] sm:$0xff] }
 0x136   : > { %4025 = vmatmul.msk.f32.gmra.mxu3 %vm372_vm1, %v4632_v7  ;;  %v1211_v40 = vld [vmem:[#allocation3 + $0x10] sm:$0xff] }
 0x137   : > { %1148 = vst.msk [vmem:[#allocation3 + $0x18] sm:$0xff] %vm372_vm1, %v1116_v53  ;;  %3959 = vmatmul.msk.f32.gmra.mxu1 %vm372_vm1, %v854_v33  ;;  %v2049_v42 = vpop.f32.mrf.mxu0 }
 0x138   : > { %v1365_v43 = vpop.f32.mrf.mxu2 }
 0x139   : > { %v1457_v38 = vadd.f32 %v1365_v43, %v1211_v40  ;;  %v1704_v44 = vpop.f32.mrf.mxu3  ;;  %v1200_v40 = vld [vmem:[#allocation2 + $0x112] sm:$0xff] }
 0x13a   : > { %v1552_v45 = vld [vmem:[#allocation3 + $0x8] sm:$0xff]  ;;  %4060 = vmatmul.msk.f32.gmra.mxu0 %vm372_vm1, %v855_v34 }
 0x13b   : > { %1489 = vst.msk [vmem:[#allocation3 + $0x10] sm:$0xff] %vm372_vm1, %v1457_v38  ;;  %v1798_v47 = vadd.f32 %v1704_v44, %v1552_v45  ;;  %v875_v38 = vld [vmem:[#allocation3 + $0x40] sm:$0xff] }
 0x13c   : > { %v1893_v48 = vld [vmem:[#allocation3] sm:$0xff]  ;;  %v1029_v7 = vpop.f32.mrf.mxu1 }
 0x13d   : > { %1830 = vst.msk [vmem:[#allocation3 + $0x8] sm:$0xff] %vm372_vm1, %v1798_v47  ;;  %v2139_v50 = vadd.f32 %v2043_v15, %v1893_v48  ;;  %3993 = vmatmul.msk.f32.gmra.mxu2 %vm372_vm1, %v1196_v46  ;;  %v1117_v51 = vadd.f32 %v1029_v7, %v871_v49 }
 0x13e   : > { %4026 = vmatmul.msk.f32.gmra.mxu3 %vm372_vm1, %v4657_v19  ;;  %v1212_v52 = vld [vmem:[#allocation3 + $0x18] sm:$0xff] }
 0x13f   : > { %2171 = vst.msk [vmem:[#allocation3] sm:$0xff] %vm372_vm1, %v2139_v50  ;;  %3960 = vmatmul.msk.f32.gmra.mxu1 %vm372_vm1, %v855_v34  ;;  %v2052_v54 = vpop.f32.mrf.mxu0  ;;  %v860_v50 = vld [vmem:[#allocation2 + $0x129] sm:$0xff] }
 0x140   : > { %1149 = vst.msk [vmem:[#allocation3 + $0x20] sm:$0xff] %vm372_vm1, %v1117_v51  ;;  %v1368_v55 = vpop.f32.mrf.mxu2 }
 0x141   : > { %v1458_v56 = vadd.f32 %v1368_v55, %v1212_v52  ;;  %v1707_v57 = vpop.f32.mrf.mxu3  ;;  %v1201_v52 = vld [vmem:[#allocation2 + $0x122] sm:$0xff] }
 0x142   : > { %v1553_v59 = vld [vmem:[#allocation3 + $0x10] sm:$0xff]  ;;  %4061 = vmatmul.msk.f32.gmra.mxu0 %vm372_vm1, %v856_v39  ;;  %v1542_v55 = vld [vmem:[#allocation2 + $0x128] sm:$0xff] }
 0x143   : > { %1490 = vst.msk [vmem:[#allocation3 + $0x18] sm:$0xff] %vm372_vm1, %v1458_v56  ;;  %v1799_v60 = vadd.f32 %v1707_v57, %v1553_v59  ;;  %v876_v57 = vld [vmem:[#allocation3 + $0x48] sm:$0xff] }
 0x144   : > { %v1894_v19 = vld [vmem:[#allocation3 + $0x8] sm:$0xff]  ;;  %v1032_v62 = vpop.f32.mrf.mxu1 }
 0x145   : > { %1831 = vst.msk [vmem:[#allocation3 + $0x10] sm:$0xff] %vm372_vm1, %v1799_v60  ;;  %v2140_v63 = vadd.f32 %v2046_v28, %v1894_v19  ;;  %3994 = vmatmul.msk.f32.gmra.mxu2 %vm372_vm1, %v1197_v58  ;;  %v1118_v0 = vadd.f32 %v1032_v62, %v872_v61  ;;  %v874_v28 = vld [vmem:[#allocation3 + $0x38] sm:$0xff] }
 0x146   : > { %4027 = vmatmul.msk.f32.gmra.mxu3 %vm372_vm1, %v4676_v30 }
 0x147   : > { %2172 = vst.msk [vmem:[#allocation3 + $0x8] sm:$0xff] %vm372_vm1, %v2140_v63  ;;  %v1213_v4 = vld [vmem:[#allocation3 + $0x20] sm:$0xff]  ;;  %3961 = vmatmul.msk.f32.gmra.mxu1 %vm372_vm1, %v856_v39  ;;  %v2055_v5 = vpop.f32.mrf.mxu0 }
 0x148   : > { %1150 = vst.msk [vmem:[#allocation3 + $0x28] sm:$0xff] %vm372_vm1, %v1118_v0  ;;  %v1371_v6 = vpop.f32.mrf.mxu2  ;;  %v861_v0 = vld [vmem:[#allocation2 + $0x139] sm:$0xff] }
 0x149   : > { %v1459_v2 = vadd.f32 %v1371_v6, %v1213_v4  ;;  %v1710_v9 = vpop.f32.mrf.mxu3 }
 0x14a   : > { %v1554_v22 = vld [vmem:[#allocation3 + $0x18] sm:$0xff]  ;;  %4062 = vmatmul.msk.f32.gmra.mxu0 %vm372_vm1, %v857_v10 }
 0x14b   : > { %1491 = vst.msk [vmem:[#allocation3 + $0x20] sm:$0xff] %vm372_vm1, %v1459_v2  ;;  %v1800_v12 = vadd.f32 %v1710_v9, %v1554_v22  ;;  %v1543_v2 = vld [vmem:[#allocation2 + $0x138] sm:$0xff] }
 0x14c   : > { %v1895_v30 = vld [vmem:[#allocation3 + $0x10] sm:$0xff]  ;;  %v1035_v14 = vpop.f32.mrf.mxu1 }
 0x14d   : > { %1832 = vst.msk [vmem:[#allocation3 + $0x18] sm:$0xff] %vm372_vm1, %v1800_v12  ;;  %v2141_v15 = vadd.f32 %v2049_v42, %v1895_v30  ;;  %3995 = vmatmul.msk.f32.gmra.mxu2 %vm372_vm1, %v1198_v11  ;;  %v1119_v16 = vadd.f32 %v1035_v14, %v873_v13 }
 0x14e   : > { %4028 = vmatmul.msk.f32.gmra.mxu3 %vm372_vm1, %v4692_v3 }
 0x14f   : > { %2173 = vst.msk [vmem:[#allocation3 + $0x10] sm:$0xff] %vm372_vm1, %v2141_v15  ;;  %v1214_v17 = vld [vmem:[#allocation3 + $0x28] sm:$0xff]  ;;  %3962 = vmatmul.msk.f32.gmra.mxu1 %vm372_vm1, %v857_v10  ;;  %v2058_v18 = vpop.f32.mrf.mxu0  ;;  %v877_v10 = vld [vmem:[#allocation3 + $0x50] sm:$0xff]  ;;  %v268_v15 = vld [vmem:[%s4301_s27 + $0xf0] sm:$0xff] }
 0x150   : > { %1151 = vst.msk [vmem:[#allocation3 + $0x30] sm:$0xff] %vm372_vm1, %v1119_v16  ;;  %v1374_v20 = vpop.f32.mrf.mxu2 }
 0x151   : > { %v1460_v21 = vadd.f32 %v1374_v20, %v1214_v17  ;;  %v1713_v24 = vpop.f32.mrf.mxu3  ;;  %v4228_v20 = vld [vmem:[%s5563_s2] ss:$0 sm:$0xff] }
 0x152   : > { %v1555_v25 = vld [vmem:[#allocation3 + $0x20] sm:$0xff]  ;;  %4063 = vmatmul.msk.f32.gmra.mxu0 %vm372_vm1, %v858_v31 }
 0x153   : > { %1492 = vst.msk [vmem:[#allocation3 + $0x28] sm:$0xff] %vm372_vm1, %v1460_v21  ;;  %v1801_v27 = vadd.f32 %v1713_v24, %v1555_v25  ;;  %v303_v21 = vmul.f32 %v4228_v20, %v268_v15 }
 0x154   : > { %v1896_v3 = vld [vmem:[#allocation3 + $0x18] sm:$0xff]  ;;  %v1038_v23 = vpop.f32.mrf.mxu1 }
 0x155   : > { %1833 = vst.msk [vmem:[#allocation3 + $0x20] sm:$0xff] %vm372_vm1, %v1801_v27  ;;  %v2142_v29 = vadd.f32 %v2052_v54, %v1896_v3  ;;  %3996 = vmatmul.msk.f32.gmra.mxu2 %vm372_vm1, %v1199_v8  ;;  %v1120_v32 = vadd.f32 %v1038_v23, %v874_v28  ;;  %v1544_v8 = vld [vmem:[#allocation2 + $0x140] sm:$0xff]  ;;  %v878_v23 = vld [vmem:[#allocation3 + $0x58] sm:$0xff] }
 0x156   : > { %4029 = vmatmul.msk.f32.gmra.mxu3 %vm372_vm1, %v4702_v41  ;;  %v1541_v41 = vld [vmem:[#allocation2 + $0x120] sm:$0xff] }
 0x157   : > { %2174 = vst.msk [vmem:[#allocation3 + $0x18] sm:$0xff] %vm372_vm1, %v2142_v29  ;;  %v1215_v33 = vld [vmem:[#allocation3 + $0x30] sm:$0xff]  ;;  %3963 = vmatmul.msk.f32.gmra.mxu1 %vm372_vm1, %v858_v31  ;;  %v2061_v26 = vpop.f32.mrf.mxu0 }
 0x158   : > { %1152 = vst.msk [vmem:[#allocation3 + $0x38] sm:$0xff] %vm372_vm1, %v1120_v32  ;;  %v1377_v35 = vpop.f32.mrf.mxu2  ;;  %v1203_v31 = vld [vmem:[#allocation2 + $0x13a] sm:$0xff] }
 0x159   : > { %v1461_v36 = vadd.f32 %v1377_v35, %v1215_v33  ;;  %v1716_v1 = vpop.f32.mrf.mxu3  ;;  %v4229_v27 = vld [vmem:[%s5564_s3] ss:$0 sm:$0xff] }
 0x15a   : > { %v1556_v53 = vld [vmem:[#allocation3 + $0x28] sm:$0xff]  ;;  %4064 = vmatmul.msk.f32.gmra.mxu0 %vm372_vm1, %v859_v37  ;;  %v338_v3 = vadd.f32 %v4229_v27, %v303_v21 }
 0x15b   : > { %1493 = vst.msk [vmem:[#allocation3 + $0x30] sm:$0xff] %vm372_vm1, %v1461_v36  ;;  %v1802_v42 = vadd.f32 %v1716_v1, %v1556_v53 }
 0x15c   : > { %v1897_v43 = vld [vmem:[#allocation3 + $0x20] sm:$0xff]  ;;  %v1041_v44 = vpop.f32.mrf.mxu1 }
 0x15d   : > { %1834 = vst.msk [vmem:[#allocation3 + $0x28] sm:$0xff] %vm372_vm1, %v1802_v42  ;;  %v2143_v34 = vadd.f32 %v2055_v5, %v1897_v43  ;;  %3997 = vmatmul.msk.f32.gmra.mxu2 %vm372_vm1, %v1200_v40  ;;  %v1121_v45 = vadd.f32 %v1041_v44, %v875_v38  ;;  %v1202_v5 = vld [vmem:[#allocation2 + $0x12a] sm:$0xff]  ;;  %v1204_v38 = vld [vmem:[#allocation2 + $0x142] sm:$0xff] }
 0x15e   : > { %4030 = vmatmul.msk.f32.gmra.mxu3 %vm372_vm1, %v1541_v41  ;;  %v863_v42 = vld [vmem:[#allocation2 + $0x151] sm:$0xff] }
 0x15f   : > { %2175 = vst.msk [vmem:[#allocation3 + $0x20] sm:$0xff] %vm372_vm1, %v2143_v34  ;;  %v1216_v46 = vld [vmem:[#allocation3 + $0x38] sm:$0xff]  ;;  %3964 = vmatmul.msk.f32.gmra.mxu1 %vm372_vm1, %v859_v37  ;;  %v4885_v47 = vpop.f32.mrf.mxu0  ;;  %v269_v37 = vld [vmem:[%s4301_s27 + $0xf8] sm:$0xff]  ;;  %v1545_v34 = vld [vmem:[#allocation2 + $0x150] sm:$0xff] }
 0x160   : > { %1153 = vst.msk [vmem:[#allocation3 + $0x40] sm:$0xff] %vm372_vm1, %v1121_v45  ;;  %v1380_v48 = vpop.f32.mrf.mxu2  ;;  %v304_v41 = vmul.f32 %v4228_v20, %v269_v37 }
 0x161   : > { %v1462_v49 = vadd.f32 %v1380_v48, %v1216_v46  ;;  %v1719_v7 = vpop.f32.mrf.mxu3 }
 0x162   : > { %v1557_v51 = vld [vmem:[#allocation3 + $0x30] sm:$0xff]  ;;  %4065 = vmatmul.msk.f32.gmra.mxu0 %vm372_vm1, %v860_v50  ;;  %v339_v45 = vadd.f32 %v4229_v27, %v304_v41  ;;  %v1207_v27 = vld [vmem:[#allocation2 + $0x16a] sm:$0xff]  ;;  %v1208_v41 = vld [vmem:[#allocation2 + $0x172] sm:$0xff] }
 0x163   : > { %1494 = vst.msk [vmem:[#allocation3 + $0x38] sm:$0xff] %vm372_vm1, %v1462_v49  ;;  %v1803_v54 = vadd.f32 %v1719_v7, %v1557_v51 }
 0x164   : > { %v1898_v56 = vld [vmem:[#allocation3 + $0x28] sm:$0xff]  ;;  %v1044_v39 = vpop.f32.mrf.mxu1 }
 0x165   : > { %1835 = vst.msk [vmem:[#allocation3 + $0x30] sm:$0xff] %vm372_vm1, %v1803_v54  ;;  %v2144_v59 = vadd.f32 %v2058_v18, %v1898_v56  ;;  %3998 = vmatmul.msk.f32.gmra.mxu2 %vm372_vm1, %v1201_v52  ;;  %v1122_v58 = vadd.f32 %v1044_v39, %v876_v57  ;;  %v862_v18 = vld [vmem:[#allocation2 + $0x141] sm:$0xff]  ;;  %v864_v57 = vld [vmem:[#allocation2 + $0x159] sm:$0xff] }
 0x166   : > { %4031 = vmatmul.msk.f32.gmra.mxu3 %vm372_vm1, %v1542_v55 }
 0x167   : > { %2176 = vst.msk [vmem:[#allocation3 + $0x28] sm:$0xff] %vm372_vm1, %v2144_v59  ;;  %v1217_v60 = vld [vmem:[#allocation3 + $0x40] sm:$0xff]  ;;  %3965 = vmatmul.msk.f32.gmra.mxu1 %vm372_vm1, %v860_v50  ;;  %v4895_v19 = vpop.f32.mrf.mxu0  ;;  %v371_v50 = vmax.f32 %v339_v45, 0.0 }
 0x168   : > { %1154 = vst.msk [vmem:[#allocation3 + $0x48] sm:$0xff] %vm372_vm1, %v1122_v58  ;;  %v1383_v61 = vpop.f32.mrf.mxu2  ;;  %v1205_v59 = vld [vmem:[#allocation2 + $0x152] sm:$0xff] }
 0x169   : > { %v1463_v62 = vadd.f32 %v1383_v61, %v1217_v60  ;;  %v1722_v63 = vpop.f32.mrf.mxu3  ;;  %460 = vst.msk [vmem:[#allocation2 + $0x189] sm:$0xff] %vm372_vm1, %v371_v50  ;;  %v1546_v60 = vld [vmem:[#allocation2 + $0x158] sm:$0xff] }
 0x16a   : > { %v1558_v4 = vld [vmem:[#allocation3 + $0x38] sm:$0xff]  ;;  %4066 = vmatmul.msk.f32.gmra.mxu0 %vm372_vm1, %v861_v0  ;;  %v880_v61 = vld [vmem:[#allocation3 + $0x68] sm:$0xff] }
 0x16b   : > { %1495 = vst.msk [vmem:[#allocation3 + $0x40] sm:$0xff] %vm372_vm1, %v1463_v62  ;;  %v1804_v6 = vadd.f32 %v1722_v63, %v1558_v4 }
 0x16c   : > { %v1899_v9 = vld [vmem:[#allocation3 + $0x30] sm:$0xff]  ;;  %v1047_v22 = vpop.f32.mrf.mxu1 }
 0x16d   : > { %1836 = vst.msk [vmem:[#allocation3 + $0x38] sm:$0xff] %vm372_vm1, %v1804_v6  ;;  %v2145_v11 = vadd.f32 %v2061_v26, %v1899_v9  ;;  %3999 = vmatmul.msk.f32.gmra.mxu2 %vm372_vm1, %v1202_v5  ;;  %v1123_v12 = vadd.f32 %v1047_v22, %v877_v10  ;;  %v370_v26 = vmax.f32 %v338_v3, 0.0  ;;  %v865_v10 = vld [vmem:[#allocation2 + $0x169] sm:$0xff] }
 0x16e   : > { %4032 = vmatmul.msk.f32.gmra.mxu3 %vm372_vm1, %v1543_v2 }
 0x16f   : > { %2177 = vst.msk [vmem:[#allocation3 + $0x30] sm:$0xff] %vm372_vm1, %v2145_v11  ;;  %v1218_v30 = vld [vmem:[#allocation3 + $0x48] sm:$0xff]  ;;  %3966 = vmatmul.msk.f32.gmra.mxu1 %vm372_vm1, %v861_v0  ;;  %v4905_v13 = vpop.f32.mrf.mxu0 }
 0x170   : > { %1155 = vst.msk [vmem:[#allocation3 + $0x50] sm:$0xff] %vm372_vm1, %v1123_v12  ;;  %v1386_v14 = vpop.f32.mrf.mxu2  ;;  %v1206_v11 = vld [vmem:[#allocation2 + $0x15a] sm:$0xff]  ;;  %v1892_v50 = vld [vmem:[#allocation2 + $0x189] sm:$0xff] }
 0x171   : > { %v1464_v16 = vadd.f32 %v1386_v14, %v1218_v30  ;;  %v1725_v17 = vpop.f32.mrf.mxu3  ;;  %459 = vst.msk [vmem:[#allocation2 + $0x181] sm:$0xff] %vm372_vm1, %v370_v26  ;;  %v1547_v30 = vld [vmem:[#allocation2 + $0x168] sm:$0xff]  ;;  %v881_v14 = vld [vmem:[#allocation3 + $0x70] sm:$0xff] }
 0x172   : > { %v1559_v24 = vld [vmem:[#allocation3 + $0x40] sm:$0xff]  ;;  %4067 = vmatmul.msk.f32.gmra.mxu0 %vm372_vm1, %v862_v18 }
 0x173   : > { %1496 = vst.msk [vmem:[#allocation3 + $0x48] sm:$0xff] %vm372_vm1, %v1464_v16  ;;  %v1805_v25 = vadd.f32 %v1725_v17, %v1559_v24 }
 0x174   : > { %v1900_v28 = vld [vmem:[#allocation3 + $0x38] sm:$0xff]  ;;  %v1050_v29 = vpop.f32.mrf.mxu1 }
 0x175   : > { %1837 = vst.msk [vmem:[#allocation3 + $0x40] sm:$0xff] %vm372_vm1, %v1805_v25  ;;  %v2146_v32 = vadd.f32 %v4885_v47, %v1900_v28  ;;  %4000 = vmatmul.msk.f32.gmra.mxu2 %vm372_vm1, %v1203_v31  ;;  %v1124_v33 = vadd.f32 %v1050_v29, %v878_v23  ;;  %v879_v47 = vld [vmem:[#allocation3 + $0x60] sm:$0xff]  ;;  %v882_v29 = vld [vmem:[#allocation3 + $0x78] sm:$0xff] }
 0x176   : > { %4033 = vmatmul.msk.f32.gmra.mxu3 %vm372_vm1, %v1544_v8  ;;  %v866_v25 = vld [vmem:[#allocation2 + $0x171] sm:$0xff] }
 0x177   : > { %2178 = vst.msk [vmem:[#allocation3 + $0x38] sm:$0xff] %vm372_vm1, %v2146_v32  ;;  %v1219_v35 = vld [vmem:[#allocation3 + $0x50] sm:$0xff]  ;;  %3967 = vmatmul.msk.f32.gmra.mxu1 %vm372_vm1, %v862_v18  ;;  %v4923_v36 = vpop.f32.mrf.mxu0  ;;  %v1548_v28 = vld [vmem:[#allocation2 + $0x170] sm:$0xff] }
 0x178   : > { %1156 = vst.msk [vmem:[#allocation3 + $0x58] sm:$0xff] %vm372_vm1, %v1124_v33  ;;  %v1389_v1 = vpop.f32.mrf.mxu2 }
 0x179   : > { %v1465_v53 = vadd.f32 %v1389_v1, %v1219_v35  ;;  %v1728_v40 = vpop.f32.mrf.mxu3  ;;  %v1891_v1 = vld [vmem:[#allocation2 + $0x181] sm:$0xff] }
 0x17a   : > { %v1560_v43 = vld [vmem:[#allocation3 + $0x48] sm:$0xff]  ;;  %4068 = vmatmul.msk.f32.gmra.mxu0 %vm372_vm1, %v863_v42 }
 0x17b   : > { %1497 = vst.msk [vmem:[#allocation3 + $0x50] sm:$0xff] %vm372_vm1, %v1465_v53  ;;  %v1806_v44 = vadd.f32 %v1728_v40, %v1560_v43 }
 0x17c   : > { %v1901_v46 = vld [vmem:[#allocation3 + $0x40] sm:$0xff]  ;;  %v1053_v48 = vpop.f32.mrf.mxu1 }
 0x17d   : > { %1838 = vst.msk [vmem:[#allocation3 + $0x48] sm:$0xff] %vm372_vm1, %v1806_v44  ;;  %v2147_v49 = vadd.f32 %v4895_v19, %v1901_v46  ;;  %4001 = vmatmul.msk.f32.gmra.mxu2 %vm372_vm1, %v1204_v38  ;;  %v1125_v7 = vadd.f32 %v1053_v48, %v879_v47  ;;  %v1549_v38 = vld [vmem:[#allocation2 + $0x180] sm:$0xff] }
 0x17e   : > { %4034 = vmatmul.msk.f32.gmra.mxu3 %vm372_vm1, %v1545_v34  ;;  %v883_v34 = vld [vmem:[#allocation3 + $0x80] sm:$0xff]  ;;  %v2203_v46 = vld [vmem:[#allocation2 + $0x1a] sm:$0xff] }
 0x17f   : > { %2179 = vst.msk [vmem:[#allocation3 + $0x40] sm:$0xff] %vm372_vm1, %v2147_v49  ;;  %v1220_v51 = vld [vmem:[#allocation3 + $0x58] sm:$0xff]  ;;  %3968 = vmatmul.msk.f32.gmra.mxu1 %vm372_vm1, %v863_v42  ;;  %v4936_v52 = vpop.f32.mrf.mxu0 }
 0x180   : > { %1157 = vst.msk [vmem:[#allocation3 + $0x60] sm:$0xff] %vm372_vm1, %v1125_v7  ;;  %v1392_v54 = vpop.f32.mrf.mxu2 }
 0x181   : > { %v1466_v55 = vadd.f32 %v1392_v54, %v1220_v51  ;;  %v1731_v56 = vpop.f32.mrf.mxu3 }
 0x182   : > { %v1561_v39 = vld [vmem:[#allocation3 + $0x50] sm:$0xff]  ;;  %4069 = vmatmul.msk.f32.gmra.mxu0 %vm372_vm1, %v864_v57 }
 0x183   : > { %1498 = vst.msk [vmem:[#allocation3 + $0x58] sm:$0xff] %vm372_vm1, %v1466_v55  ;;  %v1807_v58 = vadd.f32 %v1731_v56, %v1561_v39  ;;  %v2546_v56 = vld [vmem:[#allocation2 + $0x30] sm:$0xff]  ;;  %v1550_v39 = vld [vmem:[#allocation2 + $0x188] sm:$0xff] }
 0x184   : > { %v1902_v19 = vld [vmem:[#allocation3 + $0x48] sm:$0xff]  ;;  %v1056_v62 = vpop.f32.mrf.mxu1 }
 0x185   : > { %1839 = vst.msk [vmem:[#allocation3 + $0x50] sm:$0xff] %vm372_vm1, %v1807_v58  ;;  %v2148_v63 = vadd.f32 %v4905_v13, %v1902_v19  ;;  %4002 = vmatmul.msk.f32.gmra.mxu2 %vm372_vm1, %v1205_v59  ;;  %v1126_v0 = vadd.f32 %v1056_v62, %v880_v61  ;;  %v884_v58 = vld [vmem:[#allocation3 + $0x88] sm:$0xff]  ;;  %v2204_v19 = vld [vmem:[#allocation2 + $0x22] sm:$0xff] }
 0x186   : > { %4035 = vmatmul.msk.f32.gmra.mxu3 %vm372_vm1, %v1546_v60 }
 0x187   : > { %2180 = vst.msk [vmem:[#allocation3 + $0x48] sm:$0xff] %vm372_vm1, %v2148_v63  ;;  %v1221_v4 = vld [vmem:[#allocation3 + $0x60] sm:$0xff]  ;;  %3969 = vmatmul.msk.f32.gmra.mxu1 %vm372_vm1, %v864_v57  ;;  %v4948_v5 = vpop.f32.mrf.mxu0 }
 0x188   : > { %1158 = vst.msk [vmem:[#allocation3 + $0x68] sm:$0xff] %vm372_vm1, %v1126_v0  ;;  %v1395_v6 = vpop.f32.mrf.mxu2 }
 0x189   : > { %v1467_v2 = vadd.f32 %v1395_v6, %v1221_v4  ;;  %v1734_v9 = vpop.f32.mrf.mxu3 }
 0x18a   : > { %v1562_v22 = vld [vmem:[#allocation3 + $0x58] sm:$0xff]  ;;  %4070 = vmatmul.msk.f32.gmra.mxu0 %vm372_vm1, %v865_v10 }
 0x18b   : > { %1499 = vst.msk [vmem:[#allocation3 + $0x60] sm:$0xff] %vm372_vm1, %v1467_v2  ;;  %v1808_v12 = vadd.f32 %v1734_v9, %v1562_v22  ;;  %v2205_v2 = vld [vmem:[#allocation2 + $0x32] sm:$0xff] }
 0x18c   : > { %v1903_v13 = vld [vmem:[#allocation3 + $0x50] sm:$0xff]  ;;  %v1059_v15 = vpop.f32.mrf.mxu1 }
 0x18d   : > { %1840 = vst.msk [vmem:[#allocation3 + $0x58] sm:$0xff] %vm372_vm1, %v1808_v12  ;;  %v2149_v16 = vadd.f32 %v4923_v36, %v1903_v13  ;;  %4003 = vmatmul.msk.f32.gmra.mxu2 %vm372_vm1, %v1206_v11  ;;  %v1127_v17 = vadd.f32 %v1059_v15, %v881_v14  ;;  %v2888_v11 = vld [vmem:[#allocation2 + $0x31] sm:$0xff] }
 0x18e   : > { %4036 = vmatmul.msk.f32.gmra.mxu3 %vm372_vm1, %v1547_v30  ;;  %v885_v30 = vld [vmem:[#allocation3 + $0x90] sm:$0xff] }
 0x18f   : > { %2181 = vst.msk [vmem:[#allocation3 + $0x50] sm:$0xff] %vm372_vm1, %v2149_v16  ;;  %v1222_v18 = vld [vmem:[#allocation3 + $0x68] sm:$0xff]  ;;  %3970 = vmatmul.msk.f32.gmra.mxu1 %vm372_vm1, %v865_v10  ;;  %v4959_v20 = vpop.f32.mrf.mxu0 }
 0x190   : > { %1159 = vst.msk [vmem:[#allocation3 + $0x70] sm:$0xff] %vm372_vm1, %v1127_v17  ;;  %v1398_v21 = vpop.f32.mrf.mxu2  ;;  %v2547_v10 = vld [vmem:[#allocation2 + $0x38] sm:$0xff] }
 0x191   : > { %v1468_v24 = vadd.f32 %v1398_v21, %v1222_v18  ;;  %v1737_v31 = vpop.f32.mrf.mxu3 }
 0x192   : > { %v1563_v8 = vld [vmem:[#allocation3 + $0x60] sm:$0xff]  ;;  %4071 = vmatmul.msk.f32.gmra.mxu0 %vm372_vm1, %v866_v25 }
 0x193   : > { %1500 = vst.msk [vmem:[#allocation3 + $0x68] sm:$0xff] %vm372_vm1, %v1468_v24  ;;  %v1809_v3 = vadd.f32 %v1737_v31, %v1563_v8  ;;  %v2206_v24 = vld [vmem:[#allocation2 + $0x3a] sm:$0xff] }
 0x194   : > { %v1904_v23 = vld [vmem:[#allocation3 + $0x58] sm:$0xff]  ;;  %v1062_v32 = vpop.f32.mrf.mxu1 }
 0x195   : > { %1841 = vst.msk [vmem:[#allocation3 + $0x60] sm:$0xff] %vm372_vm1, %v1809_v3  ;;  %v2150_v33 = vadd.f32 %v4936_v52, %v1904_v23  ;;  %4004 = vmatmul.msk.f32.gmra.mxu2 %vm372_vm1, %v1207_v27  ;;  %v1128_v26 = vadd.f32 %v1062_v32, %v882_v29  ;;  %v2889_v27 = vld [vmem:[#allocation2 + $0x39] sm:$0xff] }
 0x196   : > { %4037 = vmatmul.msk.f32.gmra.mxu3 %vm372_vm1, %v1548_v28  ;;  %v886_v28 = vld [vmem:[#allocation3 + $0x98] sm:$0xff] }
 0x197   : > { %2182 = vst.msk [vmem:[#allocation3 + $0x58] sm:$0xff] %vm372_vm1, %v2150_v33  ;;  %v1223_v35 = vld [vmem:[#allocation3 + $0x70] sm:$0xff]  ;;  %3971 = vmatmul.msk.f32.gmra.mxu1 %vm372_vm1, %v866_v25  ;;  %v4970_v36 = vpop.f32.mrf.mxu0  ;;  %v2548_v25 = vld [vmem:[#allocation2 + $0x48] sm:$0xff] }
 0x198   : > { %1160 = vst.msk [vmem:[#allocation3 + $0x78] sm:$0xff] %vm372_vm1, %v1128_v26  ;;  %v1401_v37 = vpop.f32.mrf.mxu2 }
 0x199   : > { %v1469_v53 = vadd.f32 %v1401_v37, %v1223_v35  ;;  %v1740_v40 = vpop.f32.mrf.mxu3  ;;  %v2207_v37 = vld [vmem:[#allocation2 + $0x4a] sm:$0xff] }
 0x19a   : > { %v1564_v42 = vld [vmem:[#allocation3 + $0x68] sm:$0xff]  ;;  %4072 = vmatmul.msk.f32.gmra.mxu0 %vm372_vm1, %v1891_v1 }
 0x19b   : > { %1501 = vst.msk [vmem:[#allocation3 + $0x70] sm:$0xff] %vm372_vm1, %v1469_v53  ;;  %v1810_v43 = vadd.f32 %v1740_v40, %v1564_v42  ;;  %v2549_v40 = vld [vmem:[#allocation2 + $0x50] sm:$0xff] }
 0x19c   : > { %v1905_v44 = vld [vmem:[#allocation3 + $0x60] sm:$0xff]  ;;  %v1065_v45 = vpop.f32.mrf.mxu1 }
 0x19d   : > { %1842 = vst.msk [vmem:[#allocation3 + $0x68] sm:$0xff] %vm372_vm1, %v1810_v43  ;;  %v2151_v47 = vadd.f32 %v4948_v5, %v1905_v44  ;;  %4005 = vmatmul.msk.f32.gmra.mxu2 %vm372_vm1, %v1208_v41  ;;  %v1129_v48 = vadd.f32 %v1065_v45, %v883_v34  ;;  %v2890_v41 = vld [vmem:[#allocation2 + $0x49] sm:$0xff] }
 0x19e   : > { %4038 = vmatmul.msk.f32.gmra.mxu3 %vm372_vm1, %v1549_v38  ;;  %v887_v38 = vld [vmem:[#allocation3 + $0xa0] sm:$0xff] }
 0x19f   : > { %2183 = vst.msk [vmem:[#allocation3 + $0x60] sm:$0xff] %vm372_vm1, %v2151_v47  ;;  %v1224_v49 = vld [vmem:[#allocation3 + $0x78] sm:$0xff]  ;;  %4076 = vmatmul.msk.f32.vlgmr.msra.gmra.mxu1 %vm372_vm1, %v2203_v46  ;;  %v4981_v7 = vpop.f32.mrf.mxu0 }
 0x1a0   : > { %1161 = vst.msk [vmem:[#allocation3 + $0x80] sm:$0xff] %vm372_vm1, %v1129_v48  ;;  %v1404_v51 = vpop.f32.mrf.mxu2 }
 0x1a1   : > { %v1470_v52 = vadd.f32 %v1404_v51, %v1224_v49  ;;  %v1743_v54 = vpop.f32.mrf.mxu3 }
 0x1a2   : > { %v1565_v55 = vld [vmem:[#allocation3 + $0x70] sm:$0xff]  ;;  %4073 = vmatmul.msk.f32.gmra.mxu0 %vm372_vm1, %v1892_v50  ;;  %v2208_v50 = vld [vmem:[#allocation2 + $0x52] sm:$0xff] }
 0x1a3   : > { %1502 = vst.msk [vmem:[#allocation3 + $0x78] sm:$0xff] %vm372_vm1, %v1470_v52  ;;  %v1811_v57 = vadd.f32 %v1743_v54, %v1565_v55  ;;  %v2550_v52 = vld [vmem:[#allocation2 + $0x60] sm:$0xff]  ;;  %v2891_v55 = vld [vmem:[#allocation2 + $0x51] sm:$0xff] }
 0x1a4   : > { %v1906_v59 = vld [vmem:[#allocation3 + $0x68] sm:$0xff]  ;;  %v1068_v60 = vpop.f32.mrf.mxu1 }
 0x1a5   : > { %1843 = vst.msk [vmem:[#allocation3 + $0x70] sm:$0xff] %vm372_vm1, %v1811_v57  ;;  %v2152_v61 = vadd.f32 %v4959_v20, %v1906_v59  ;;  %4110 = vmatmul.msk.f32.vlgmr.msra.gmra.mxu2 %vm372_vm1, %v2546_v56  ;;  %v1130_v62 = vadd.f32 %v1068_v60, %v884_v58  ;;  %v888_v57 = vld [vmem:[#allocation3 + $0xa8] sm:$0xff] }
 0x1a6   : > { %4039 = vmatmul.msk.f32.gmra.mxu3 %vm372_vm1, %v1550_v39 }
 0x1a7   : > { %2184 = vst.msk [vmem:[#allocation3 + $0x68] sm:$0xff] %vm372_vm1, %v2152_v61  ;;  %v1225_v63 = vld [vmem:[#allocation3 + $0x80] sm:$0xff]  ;;  %4077 = vmatmul.msk.f32.gmra.mxu1 %vm372_vm1, %v2204_v19  ;;  %v2091_v0 = vpop.f32.mrf.mxu0 }
 0x1a8   : > { %1162 = vst.msk [vmem:[#allocation3 + $0x88] sm:$0xff] %vm372_vm1, %v1130_v62  ;;  %v1407_v4 = vpop.f32.mrf.mxu2 }
 0x1a9   : > { %v1471_v5 = vadd.f32 %v1407_v4, %v1225_v63  ;;  %v1746_v6 = vpop.f32.mrf.mxu3 }
 0x1aa   : > { %v1566_v9 = vld [vmem:[#allocation3 + $0x78] sm:$0xff]  ;;  %4178 = vmatmul.msk.f32.vlgmr.msra.gmra.mxu0 %vm372_vm1, %v2205_v2 }
 0x1ab   : > { %1503 = vst.msk [vmem:[#allocation3 + $0x80] sm:$0xff] %vm372_vm1, %v1471_v5  ;;  %v1812_v22 = vadd.f32 %v1746_v6, %v1566_v9  ;;  %v2551_v5 = vld [vmem:[#allocation2 + $0x68] sm:$0xff] }
 0x1ac   : > { %v1907_v12 = vld [vmem:[#allocation3 + $0x70] sm:$0xff]  ;;  %v1071_v13 = vpop.f32.mrf.mxu1 }
 0x1ad   : > { %1844 = vst.msk [vmem:[#allocation3 + $0x78] sm:$0xff] %vm372_vm1, %v1812_v22  ;;  %v2153_v14 = vadd.f32 %v4970_v36, %v1907_v12  ;;  %4111 = vmatmul.msk.f32.gmra.mxu2 %vm372_vm1, %v2547_v10  ;;  %v1131_v15 = vadd.f32 %v1071_v13, %v885_v30  ;;  %v889_v10 = vld [vmem:[#allocation3 + $0xb0] sm:$0xff] }
 0x1ae   : > { %4144 = vmatmul.msk.f32.vlgmr.msra.gmra.mxu3 %vm372_vm1, %v2888_v11 }
 0x1af   : > { %2185 = vst.msk [vmem:[#allocation3 + $0x70] sm:$0xff] %vm372_vm1, %v2153_v14  ;;  %v1226_v16 = vld [vmem:[#allocation3 + $0x88] sm:$0xff]  ;;  %4078 = vmatmul.msk.f32.gmra.mxu1 %vm372_vm1, %v2205_v2  ;;  %v2094_v17 = vpop.f32.mrf.mxu0  ;;  %v2892_v2 = vld [vmem:[#allocation2 + $0x61] sm:$0xff] }
 0x1b0   : > { %1163 = vst.msk [vmem:[#allocation3 + $0x90] sm:$0xff] %vm372_vm1, %v1131_v15  ;;  %v1410_v18 = vpop.f32.mrf.mxu2 }
 0x1b1   : > { %v1472_v20 = vadd.f32 %v1410_v18, %v1226_v16  ;;  %v1749_v21 = vpop.f32.mrf.mxu3 }
 0x1b2   : > { %v1567_v31 = vld [vmem:[#allocation3 + $0x80] sm:$0xff]  ;;  %4179 = vmatmul.msk.f32.gmra.mxu0 %vm372_vm1, %v2206_v24 }
 0x1b3   : > { %1504 = vst.msk [vmem:[#allocation3 + $0x88] sm:$0xff] %vm372_vm1, %v1472_v20  ;;  %v1813_v8 = vadd.f32 %v1749_v21, %v1567_v31  ;;  %v2552_v20 = vld [vmem:[#allocation2 + $0x78] sm:$0xff] }
 0x1b4   : > { %v1908_v3 = vld [vmem:[#allocation3 + $0x78] sm:$0xff]  ;;  %v1074_v23 = vpop.f32.mrf.mxu1 }
 0x1b5   : > { %1845 = vst.msk [vmem:[#allocation3 + $0x80] sm:$0xff] %vm372_vm1, %v1813_v8  ;;  %v2154_v29 = vadd.f32 %v4981_v7, %v1908_v3  ;;  %4112 = vmatmul.msk.f32.gmra.mxu2 %vm372_vm1, %v2548_v25  ;;  %v1132_v32 = vadd.f32 %v1074_v23, %v886_v28  ;;  %v890_v25 = vld [vmem:[#allocation3 + $0xb8] sm:$0xff] }
 0x1b6   : > { %4145 = vmatmul.msk.f32.gmra.mxu3 %vm372_vm1, %v2889_v27 }
 0x1b7   : > { %2186 = vst.msk [vmem:[#allocation3 + $0x78] sm:$0xff] %vm372_vm1, %v2154_v29  ;;  %v1227_v33 = vld [vmem:[#allocation3 + $0x90] sm:$0xff]  ;;  %4079 = vmatmul.msk.f32.gmra.mxu1 %vm372_vm1, %v2206_v24  ;;  %v2097_v26 = vpop.f32.mrf.mxu0  ;;  %v2893_v24 = vld [vmem:[#allocation2 + $0x69] sm:$0xff] }
 0x1b8   : > { %1164 = vst.msk [vmem:[#allocation3 + $0x98] sm:$0xff] %vm372_vm1, %v1132_v32  ;;  %v1413_v35 = vpop.f32.mrf.mxu2 }
 0x1b9   : > { %v1473_v36 = vadd.f32 %v1413_v35, %v1227_v33  ;;  %v1752_v1 = vpop.f32.mrf.mxu3 }
 0x1ba   : > { %v1568_v53 = vld [vmem:[#allocation3 + $0x88] sm:$0xff]  ;;  %4180 = vmatmul.msk.f32.gmra.mxu0 %vm372_vm1, %v2207_v37 }
 0x1bb   : > { %1505 = vst.msk [vmem:[#allocation3 + $0x90] sm:$0xff] %vm372_vm1, %v1473_v36  ;;  %v1814_v42 = vadd.f32 %v1752_v1, %v1568_v53  ;;  %v2553_v36 = vld [vmem:[#allocation2 + $0x80] sm:$0xff] }
 0x1bc   : > { %v1909_v43 = vld [vmem:[#allocation3 + $0x80] sm:$0xff]  ;;  %v1077_v44 = vpop.f32.mrf.mxu1 }
 0x1bd   : > { %1846 = vst.msk [vmem:[#allocation3 + $0x88] sm:$0xff] %vm372_vm1, %v1814_v42  ;;  %v2155_v34 = vadd.f32 %v2091_v0, %v1909_v43  ;;  %4113 = vmatmul.msk.f32.gmra.mxu2 %vm372_vm1, %v2549_v40  ;;  %v1133_v45 = vadd.f32 %v1077_v44, %v887_v38  ;;  %v2209_v0 = vld [vmem:[#allocation2 + $0x62] sm:$0xff]  ;;  %v891_v40 = vld [vmem:[#allocation3 + $0xc0] sm:$0xff] }
 0x1be   : > { %4146 = vmatmul.msk.f32.gmra.mxu3 %vm372_vm1, %v2890_v41 }
 0x1bf   : > { %2187 = vst.msk [vmem:[#allocation3 + $0x80] sm:$0xff] %vm372_vm1, %v2155_v34  ;;  %v1228_v46 = vld [vmem:[#allocation3 + $0x98] sm:$0xff]  ;;  %4080 = vmatmul.msk.f32.gmra.mxu1 %vm372_vm1, %v2207_v37  ;;  %v2100_v47 = vpop.f32.mrf.mxu0  ;;  %v2894_v37 = vld [vmem:[#allocation2 + $0x79] sm:$0xff] }
 0x1c0   : > { %1165 = vst.msk [vmem:[#allocation3 + $0xa0] sm:$0xff] %vm372_vm1, %v1133_v45  ;;  %v1416_v48 = vpop.f32.mrf.mxu2 }
 0x1c1   : > { %v1474_v49 = vadd.f32 %v1416_v48, %v1228_v46  ;;  %v1755_v7 = vpop.f32.mrf.mxu3 }
 0x1c2   : > { %v1569_v51 = vld [vmem:[#allocation3 + $0x90] sm:$0xff]  ;;  %4181 = vmatmul.msk.f32.gmra.mxu0 %vm372_vm1, %v2208_v50 }
 0x1c3   : > { %1506 = vst.msk [vmem:[#allocation3 + $0x98] sm:$0xff] %vm372_vm1, %v1474_v49  ;;  %v1815_v54 = vadd.f32 %v1755_v7, %v1569_v51  ;;  %v2554_v49 = vld [vmem:[#allocation2 + $0x90] sm:$0xff] }
 0x1c4   : > { %v1910_v56 = vld [vmem:[#allocation3 + $0x88] sm:$0xff]  ;;  %v1080_v39 = vpop.f32.mrf.mxu1 }
 0x1c5   : > { %1847 = vst.msk [vmem:[#allocation3 + $0x90] sm:$0xff] %vm372_vm1, %v1815_v54  ;;  %v2156_v59 = vadd.f32 %v2094_v17, %v1910_v56  ;;  %4114 = vmatmul.msk.f32.gmra.mxu2 %vm372_vm1, %v2550_v52  ;;  %v1134_v58 = vadd.f32 %v1080_v39, %v888_v57  ;;  %v2210_v17 = vld [vmem:[#allocation2 + $0x6a] sm:$0xff]  ;;  %v892_v52 = vld [vmem:[#allocation3 + $0xc8] sm:$0xff] }
 0x1c6   : > { %4147 = vmatmul.msk.f32.gmra.mxu3 %vm372_vm1, %v2891_v55 }
 0x1c7   : > { %2188 = vst.msk [vmem:[#allocation3 + $0x88] sm:$0xff] %vm372_vm1, %v2156_v59  ;;  %v1229_v60 = vld [vmem:[#allocation3 + $0xa0] sm:$0xff]  ;;  %4081 = vmatmul.msk.f32.gmra.mxu1 %vm372_vm1, %v2208_v50  ;;  %v2103_v19 = vpop.f32.mrf.mxu0  ;;  %v2895_v50 = vld [vmem:[#allocation2 + $0x81] sm:$0xff] }
 0x1c8   : > { %1166 = vst.msk [vmem:[#allocation3 + $0xa8] sm:$0xff] %vm372_vm1, %v1134_v58  ;;  %v1419_v61 = vpop.f32.mrf.mxu2 }
 0x1c9   : > { %v1475_v62 = vadd.f32 %v1419_v61, %v1229_v60  ;;  %v1758_v63 = vpop.f32.mrf.mxu3 }
 0x1ca   : > { %v1570_v4 = vld [vmem:[#allocation3 + $0x98] sm:$0xff]  ;;  %4182 = vmatmul.msk.f32.gmra.mxu0 %vm372_vm1, %v2209_v0 }
 0x1cb   : > { %1507 = vst.msk [vmem:[#allocation3 + $0xa0] sm:$0xff] %vm372_vm1, %v1475_v62  ;;  %v1816_v6 = vadd.f32 %v1758_v63, %v1570_v4  ;;  %v2555_v62 = vld [vmem:[#allocation2 + $0x98] sm:$0xff] }
 0x1cc   : > { %v1911_v9 = vld [vmem:[#allocation3 + $0x90] sm:$0xff]  ;;  %v1083_v22 = vpop.f32.mrf.mxu1 }
 0x1cd   : > { %1848 = vst.msk [vmem:[#allocation3 + $0x98] sm:$0xff] %vm372_vm1, %v1816_v6  ;;  %v2157_v11 = vadd.f32 %v2097_v26, %v1911_v9  ;;  %4115 = vmatmul.msk.f32.gmra.mxu2 %vm372_vm1, %v2551_v5  ;;  %v1135_v12 = vadd.f32 %v1083_v22, %v889_v10  ;;  %v2211_v26 = vld [vmem:[#allocation2 + $0x7a] sm:$0xff] }
 0x1ce   : > { %4148 = vmatmul.msk.f32.gmra.mxu3 %vm372_vm1, %v2892_v2  ;;  %v893_v5 = vld [vmem:[#allocation3 + $0xd0] sm:$0xff] }
 0x1cf   : > { %2189 = vst.msk [vmem:[#allocation3 + $0x90] sm:$0xff] %vm372_vm1, %v2157_v11  ;;  %v1230_v30 = vld [vmem:[#allocation3 + $0xa8] sm:$0xff]  ;;  %4082 = vmatmul.msk.f32.gmra.mxu1 %vm372_vm1, %v2209_v0  ;;  %v2106_v13 = vpop.f32.mrf.mxu0 }
 0x1d0   : > { %1167 = vst.msk [vmem:[#allocation3 + $0xb0] sm:$0xff] %vm372_vm1, %v1135_v12  ;;  %v1422_v14 = vpop.f32.mrf.mxu2  ;;  %v2896_v0 = vld [vmem:[#allocation2 + $0x91] sm:$0xff] }
 0x1d1   : > { %v1476_v15 = vadd.f32 %v1422_v14, %v1230_v30  ;;  %v1761_v16 = vpop.f32.mrf.mxu3 }
 0x1d2   : > { %v1571_v18 = vld [vmem:[#allocation3 + $0xa0] sm:$0xff]  ;;  %4183 = vmatmul.msk.f32.gmra.mxu0 %vm372_vm1, %v2210_v17 }
 0x1d3   : > { %1508 = vst.msk [vmem:[#allocation3 + $0xa8] sm:$0xff] %vm372_vm1, %v1476_v15  ;;  %v1817_v21 = vadd.f32 %v1761_v16, %v1571_v18  ;;  %v2556_v15 = vld [vmem:[#allocation2 + $0xa8] sm:$0xff] }
 0x1d4   : > { %v1912_v31 = vld [vmem:[#allocation3 + $0x98] sm:$0xff]  ;;  %v1086_v8 = vpop.f32.mrf.mxu1 }
 0x1d5   : > { %1849 = vst.msk [vmem:[#allocation3 + $0xa0] sm:$0xff] %vm372_vm1, %v1817_v21  ;;  %v2158_v27 = vadd.f32 %v2100_v47, %v1912_v31  ;;  %4116 = vmatmul.msk.f32.gmra.mxu2 %vm372_vm1, %v2552_v20  ;;  %v1136_v3 = vadd.f32 %v1086_v8, %v890_v25  ;;  %v2212_v47 = vld [vmem:[#allocation2 + $0x82] sm:$0xff] }
 0x1d6   : > { %4149 = vmatmul.msk.f32.gmra.mxu3 %vm372_vm1, %v2893_v24  ;;  %v894_v20 = vld [vmem:[#allocation3 + $0xd8] sm:$0xff] }
 0x1d7   : > { %2190 = vst.msk [vmem:[#allocation3 + $0x98] sm:$0xff] %vm372_vm1, %v2158_v27  ;;  %v1231_v28 = vld [vmem:[#allocation3 + $0xb0] sm:$0xff]  ;;  %4083 = vmatmul.msk.f32.gmra.mxu1 %vm372_vm1, %v2210_v17  ;;  %v2109_v23 = vpop.f32.mrf.mxu0 }
 0x1d8   : > { %1168 = vst.msk [vmem:[#allocation3 + $0xb8] sm:$0xff] %vm372_vm1, %v1136_v3  ;;  %v1425_v29 = vpop.f32.mrf.mxu2  ;;  %v2897_v17 = vld [vmem:[#allocation2 + $0x99] sm:$0xff] }
 0x1d9   : > { %v1477_v32 = vadd.f32 %v1425_v29, %v1231_v28  ;;  %v1764_v33 = vpop.f32.mrf.mxu3 }
 0x1da   : > { %v1572_v35 = vld [vmem:[#allocation3 + $0xa8] sm:$0xff]  ;;  %4184 = vmatmul.msk.f32.gmra.mxu0 %vm372_vm1, %v2211_v26 }
 0x1db   : > { %1509 = vst.msk [vmem:[#allocation3 + $0xb0] sm:$0xff] %vm372_vm1, %v1477_v32  ;;  %v1818_v1 = vadd.f32 %v1764_v33, %v1572_v35  ;;  %v2557_v32 = vld [vmem:[#allocation2 + $0xb0] sm:$0xff] }
 0x1dc   : > { %v1913_v53 = vld [vmem:[#allocation3 + $0xa0] sm:$0xff]  ;;  %v1089_v42 = vpop.f32.mrf.mxu1 }
 0x1dd   : > { %1850 = vst.msk [vmem:[#allocation3 + $0xa8] sm:$0xff] %vm372_vm1, %v1818_v1  ;;  %v2159_v41 = vadd.f32 %v2103_v19, %v1913_v53  ;;  %4117 = vmatmul.msk.f32.gmra.mxu2 %vm372_vm1, %v2553_v36  ;;  %v1137_v43 = vadd.f32 %v1089_v42, %v891_v40  ;;  %v2213_v19 = vld [vmem:[#allocation2 + $0x92] sm:$0xff] }
 0x1de   : > { %4150 = vmatmul.msk.f32.gmra.mxu3 %vm372_vm1, %v2894_v37  ;;  %v895_v36 = vld [vmem:[#allocation3 + $0xe0] sm:$0xff] }
 0x1df   : > { %2191 = vst.msk [vmem:[#allocation3 + $0xa0] sm:$0xff] %vm372_vm1, %v2159_v41  ;;  %v1232_v38 = vld [vmem:[#allocation3 + $0xb8] sm:$0xff]  ;;  %4084 = vmatmul.msk.f32.gmra.mxu1 %vm372_vm1, %v2211_v26  ;;  %v2112_v44 = vpop.f32.mrf.mxu0 }
 0x1e0   : > { %1169 = vst.msk [vmem:[#allocation3 + $0xc0] sm:$0xff] %vm372_vm1, %v1137_v43  ;;  %v1428_v34 = vpop.f32.mrf.mxu2  ;;  %v2898_v26 = vld [vmem:[#allocation2 + $0xa9] sm:$0xff] }
 0x1e1   : > { %v1478_v45 = vadd.f32 %v1428_v34, %v1232_v38  ;;  %v1767_v46 = vpop.f32.mrf.mxu3 }
 0x1e2   : > { %v1573_v48 = vld [vmem:[#allocation3 + $0xb0] sm:$0xff]  ;;  %4185 = vmatmul.msk.f32.gmra.mxu0 %vm372_vm1, %v2212_v47 }
 0x1e3   : > { %1510 = vst.msk [vmem:[#allocation3 + $0xb8] sm:$0xff] %vm372_vm1, %v1478_v45  ;;  %v1819_v7 = vadd.f32 %v1767_v46, %v1573_v48  ;;  %v2558_v45 = vld [vmem:[#allocation2 + $0xc0] sm:$0xff] }
 0x1e4   : > { %v1914_v51 = vld [vmem:[#allocation3 + $0xa8] sm:$0xff]  ;;  %v1092_v54 = vpop.f32.mrf.mxu1 }
 0x1e5   : > { %1851 = vst.msk [vmem:[#allocation3 + $0xb0] sm:$0xff] %vm372_vm1, %v1819_v7  ;;  %v2160_v55 = vadd.f32 %v2106_v13, %v1914_v51  ;;  %4118 = vmatmul.msk.f32.gmra.mxu2 %vm372_vm1, %v2554_v49  ;;  %v1138_v56 = vadd.f32 %v1092_v54, %v892_v52  ;;  %v2214_v13 = vld [vmem:[#allocation2 + $0x9a] sm:$0xff] }
 0x1e6   : > { %4151 = vmatmul.msk.f32.gmra.mxu3 %vm372_vm1, %v2895_v50  ;;  %v896_v49 = vld [vmem:[#allocation3 + $0xe8] sm:$0xff] }
 0x1e7   : > { %2192 = vst.msk [vmem:[#allocation3 + $0xa8] sm:$0xff] %vm372_vm1, %v2160_v55  ;;  %v1233_v57 = vld [vmem:[#allocation3 + $0xc0] sm:$0xff]  ;;  %4085 = vmatmul.msk.f32.gmra.mxu1 %vm372_vm1, %v2212_v47  ;;  %v2115_v39 = vpop.f32.mrf.mxu0 }
 0x1e8   : > { %1170 = vst.msk [vmem:[#allocation3 + $0xc8] sm:$0xff] %vm372_vm1, %v1138_v56  ;;  %v1431_v59 = vpop.f32.mrf.mxu2  ;;  %v2899_v47 = vld [vmem:[#allocation2 + $0xb1] sm:$0xff] }
 0x1e9   : > { %v1479_v58 = vadd.f32 %v1431_v59, %v1233_v57  ;;  %v1770_v60 = vpop.f32.mrf.mxu3 }
 0x1ea   : > { %v1574_v61 = vld [vmem:[#allocation3 + $0xb8] sm:$0xff]  ;;  %4186 = vmatmul.msk.f32.gmra.mxu0 %vm372_vm1, %v2213_v19 }
 0x1eb   : > { %1511 = vst.msk [vmem:[#allocation3 + $0xc0] sm:$0xff] %vm372_vm1, %v1479_v58  ;;  %v1820_v63 = vadd.f32 %v1770_v60, %v1574_v61  ;;  %v2559_v58 = vld [vmem:[#allocation2 + $0xc8] sm:$0xff] }
 0x1ec   : > { %v1915_v4 = vld [vmem:[#allocation3 + $0xb0] sm:$0xff]  ;;  %v1095_v6 = vpop.f32.mrf.mxu1 }
 0x1ed   : > { %1852 = vst.msk [vmem:[#allocation3 + $0xb8] sm:$0xff] %vm372_vm1, %v1820_v63  ;;  %v2161_v2 = vadd.f32 %v2109_v23, %v1915_v4  ;;  %4119 = vmatmul.msk.f32.gmra.mxu2 %vm372_vm1, %v2555_v62  ;;  %v1139_v9 = vadd.f32 %v1095_v6, %v893_v5  ;;  %v2215_v23 = vld [vmem:[#allocation2 + $0xaa] sm:$0xff]  ;;  %v897_v62 = vld [vmem:[#allocation3 + $0xf0] sm:$0xff] }
 0x1ee   : > { %4152 = vmatmul.msk.f32.gmra.mxu3 %vm372_vm1, %v2896_v0 }
 0x1ef   : > { %2193 = vst.msk [vmem:[#allocation3 + $0xb0] sm:$0xff] %vm372_vm1, %v2161_v2  ;;  %v1234_v10 = vld [vmem:[#allocation3 + $0xc8] sm:$0xff]  ;;  %4086 = vmatmul.msk.f32.gmra.mxu1 %vm372_vm1, %v2213_v19  ;;  %v2118_v22 = vpop.f32.mrf.mxu0  ;;  %v2900_v19 = vld [vmem:[#allocation2 + $0xc1] sm:$0xff] }
 0x1f0   : > { %1171 = vst.msk [vmem:[#allocation3 + $0xd0] sm:$0xff] %vm372_vm1, %v1139_v9  ;;  %v1434_v11 = vpop.f32.mrf.mxu2 }
 0x1f1   : > { %v1480_v12 = vadd.f32 %v1434_v11, %v1234_v10  ;;  %v1773_v30 = vpop.f32.mrf.mxu3 }
 0x1f2   : > { %v1575_v14 = vld [vmem:[#allocation3 + $0xc0] sm:$0xff]  ;;  %4187 = vmatmul.msk.f32.gmra.mxu0 %vm372_vm1, %v2214_v13 }
 0x1f3   : > { %1512 = vst.msk [vmem:[#allocation3 + $0xc8] sm:$0xff] %vm372_vm1, %v1480_v12  ;;  %v1821_v16 = vadd.f32 %v1773_v30, %v1575_v14  ;;  %v2560_v12 = vld [vmem:[#allocation2 + $0xd8] sm:$0xff] }
 0x1f4   : > { %v1916_v18 = vld [vmem:[#allocation3 + $0xb8] sm:$0xff]  ;;  %v1098_v21 = vpop.f32.mrf.mxu1 }
 0x1f5   : > { %1853 = vst.msk [vmem:[#allocation3 + $0xc0] sm:$0xff] %vm372_vm1, %v1821_v16  ;;  %v2162_v24 = vadd.f32 %v2112_v44, %v1916_v18  ;;  %4120 = vmatmul.msk.f32.gmra.mxu2 %vm372_vm1, %v2556_v15  ;;  %v1140_v31 = vadd.f32 %v1098_v21, %v894_v20  ;;  %v2216_v44 = vld [vmem:[#allocation2 + $0xb2] sm:$0xff]  ;;  %v898_v15 = vld [vmem:[#allocation3 + $0xf8] sm:$0xff] }
 0x1f6   : > { %4153 = vmatmul.msk.f32.gmra.mxu3 %vm372_vm1, %v2897_v17 }
 0x1f7   : > { %2194 = vst.msk [vmem:[#allocation3 + $0xb8] sm:$0xff] %vm372_vm1, %v2162_v24  ;;  %v1235_v25 = vld [vmem:[#allocation3 + $0xd0] sm:$0xff]  ;;  %4087 = vmatmul.msk.f32.gmra.mxu1 %vm372_vm1, %v2214_v13  ;;  %v2121_v8 = vpop.f32.mrf.mxu0  ;;  %v2901_v13 = vld [vmem:[#allocation2 + $0xc9] sm:$0xff] }
 0x1f8   : > { %1172 = vst.msk [vmem:[#allocation3 + $0xd8] sm:$0xff] %vm372_vm1, %v1140_v31  ;;  %v1437_v27 = vpop.f32.mrf.mxu2 }
 0x1f9   : > { %v1481_v3 = vadd.f32 %v1437_v27, %v1235_v25  ;;  %v1776_v28 = vpop.f32.mrf.mxu3 }
 0x1fa   : > { %v1576_v29 = vld [vmem:[#allocation3 + $0xc8] sm:$0xff]  ;;  %4188 = vmatmul.msk.f32.gmra.mxu0 %vm372_vm1, %v2215_v23 }
 0x1fb   : > { %1513 = vst.msk [vmem:[#allocation3 + $0xd0] sm:$0xff] %vm372_vm1, %v1481_v3  ;;  %v1822_v33 = vadd.f32 %v1776_v28, %v1576_v29  ;;  %v2561_v3 = vld [vmem:[#allocation2 + $0xe0] sm:$0xff] }
 0x1fc   : > { %v1917_v35 = vld [vmem:[#allocation3 + $0xc0] sm:$0xff]  ;;  %v1101_v1 = vpop.f32.mrf.mxu1 }
 0x1fd   : > { %1854 = vst.msk [vmem:[#allocation3 + $0xc8] sm:$0xff] %vm372_vm1, %v1822_v33  ;;  %v2163_v37 = vadd.f32 %v2115_v39, %v1917_v35  ;;  %4121 = vmatmul.msk.f32.gmra.mxu2 %vm372_vm1, %v2557_v32  ;;  %v1141_v53 = vadd.f32 %v1101_v1, %v895_v36  ;;  %v2217_v39 = vld [vmem:[#allocation2 + $0xc2] sm:$0xff]  ;;  %v2235_v32 = vld [vmem:[#allocation3] sm:$0xff] }
 0x1fe   : > { %4154 = vmatmul.msk.f32.gmra.mxu3 %vm372_vm1, %v2898_v26 }
 0x1ff   : > { %2195 = vst.msk [vmem:[#allocation3 + $0xc0] sm:$0xff] %vm372_vm1, %v2163_v37  ;;  %v1236_v40 = vld [vmem:[#allocation3 + $0xd8] sm:$0xff]  ;;  %4088 = vmatmul.msk.f32.gmra.mxu1 %vm372_vm1, %v2215_v23  ;;  %v2124_v42 = vpop.f32.mrf.mxu0  ;;  %v2902_v23 = vld [vmem:[#allocation2 + $0xd9] sm:$0xff] }
 0x200   : > { %1173 = vst.msk [vmem:[#allocation3 + $0xe0] sm:$0xff] %vm372_vm1, %v1141_v53  ;;  %v1440_v41 = vpop.f32.mrf.mxu2 }
 0x201   : > { %v1482_v43 = vadd.f32 %v1440_v41, %v1236_v40  ;;  %v1779_v38 = vpop.f32.mrf.mxu3 }
 0x202   : > { %v1577_v34 = vld [vmem:[#allocation3 + $0xd0] sm:$0xff]  ;;  %4189 = vmatmul.msk.f32.gmra.mxu0 %vm372_vm1, %v2216_v44 }
 0x203   : > { %1514 = vst.msk [vmem:[#allocation3 + $0xd8] sm:$0xff] %vm372_vm1, %v1482_v43  ;;  %v1823_v46 = vadd.f32 %v1779_v38, %v1577_v34  ;;  %v2562_v43 = vld [vmem:[#allocation2 + $0xf0] sm:$0xff] }
 0x204   : > { %v1918_v48 = vld [vmem:[#allocation3 + $0xc8] sm:$0xff]  ;;  %v1104_v7 = vpop.f32.mrf.mxu1 }
 0x205   : > { %1855 = vst.msk [vmem:[#allocation3 + $0xd0] sm:$0xff] %vm372_vm1, %v1823_v46  ;;  %v2164_v50 = vadd.f32 %v2118_v22, %v1918_v48  ;;  %4122 = vmatmul.msk.f32.gmra.mxu2 %vm372_vm1, %v2558_v45  ;;  %v1142_v51 = vadd.f32 %v1104_v7, %v896_v49  ;;  %v2218_v22 = vld [vmem:[#allocation2 + $0xca] sm:$0xff]  ;;  %v2236_v45 = vld [vmem:[#allocation3 + $0x8] sm:$0xff] }
 0x206   : > { %4155 = vmatmul.msk.f32.gmra.mxu3 %vm372_vm1, %v2899_v47 }
 0x207   : > { %2196 = vst.msk [vmem:[#allocation3 + $0xc8] sm:$0xff] %vm372_vm1, %v2164_v50  ;;  %v1237_v52 = vld [vmem:[#allocation3 + $0xe0] sm:$0xff]  ;;  %4089 = vmatmul.msk.f32.gmra.mxu1 %vm372_vm1, %v2216_v44  ;;  %v2127_v54 = vpop.f32.mrf.mxu0  ;;  %v2903_v44 = vld [vmem:[#allocation2 + $0xe1] sm:$0xff] }
 0x208   : > { %1174 = vst.msk [vmem:[#allocation3 + $0xe8] sm:$0xff] %vm372_vm1, %v1142_v51  ;;  %v1443_v55 = vpop.f32.mrf.mxu2 }
 0x209   : > { %v1483_v56 = vadd.f32 %v1443_v55, %v1237_v52  ;;  %v1782_v57 = vpop.f32.mrf.mxu3 }
 0x20a   : > { %v1578_v59 = vld [vmem:[#allocation3 + $0xd8] sm:$0xff]  ;;  %4190 = vmatmul.msk.f32.gmra.mxu0 %vm372_vm1, %v2217_v39 }
 0x20b   : > { %1515 = vst.msk [vmem:[#allocation3 + $0xe0] sm:$0xff] %vm372_vm1, %v1483_v56  ;;  %v1824_v60 = vadd.f32 %v1782_v57, %v1578_v59  ;;  %v2563_v56 = vld [vmem:[#allocation2 + $0xf8] sm:$0xff] }
 0x20c   : > { %v1919_v61 = vld [vmem:[#allocation3 + $0xd0] sm:$0xff]  ;;  %v1107_v63 = vpop.f32.mrf.mxu1 }
 0x20d   : > { %1856 = vst.msk [vmem:[#allocation3 + $0xd8] sm:$0xff] %vm372_vm1, %v1824_v60  ;;  %v2165_v0 = vadd.f32 %v2121_v8, %v1919_v61  ;;  %4123 = vmatmul.msk.f32.gmra.mxu2 %vm372_vm1, %v2559_v58  ;;  %v1143_v4 = vadd.f32 %v1107_v63, %v897_v62  ;;  %v2219_v8 = vld [vmem:[#allocation2 + $0xda] sm:$0xff] }
 0x20e   : > { %4156 = vmatmul.msk.f32.gmra.mxu3 %vm372_vm1, %v2900_v19  ;;  %v2237_v58 = vld [vmem:[#allocation3 + $0x10] sm:$0xff] }
 0x20f   : > { %2197 = vst.msk [vmem:[#allocation3 + $0xd0] sm:$0xff] %vm372_vm1, %v2165_v0  ;;  %v1238_v5 = vld [vmem:[#allocation3 + $0xe8] sm:$0xff]  ;;  %4090 = vmatmul.msk.f32.gmra.mxu1 %vm372_vm1, %v2217_v39  ;;  %v2130_v6 = vpop.f32.mrf.mxu0 }
 0x210   : > { %1175 = vst.msk [vmem:[#allocation3 + $0xf0] sm:$0xff] %vm372_vm1, %v1143_v4  ;;  %v1446_v2 = vpop.f32.mrf.mxu2  ;;  %v2904_v39 = vld [vmem:[#allocation2 + $0xf1] sm:$0xff] }
 0x211   : > { %v1484_v9 = vadd.f32 %v1446_v2, %v1238_v5  ;;  %v1785_v10 = vpop.f32.mrf.mxu3 }
 0x212   : > { %v1579_v11 = vld [vmem:[#allocation3 + $0xe0] sm:$0xff]  ;;  %4191 = vmatmul.msk.f32.gmra.mxu0 %vm372_vm1, %v2218_v22 }
 0x213   : > { %1516 = vst.msk [vmem:[#allocation3 + $0xe8] sm:$0xff] %vm372_vm1, %v1484_v9  ;;  %v1825_v30 = vadd.f32 %v1785_v10, %v1579_v11  ;;  %v2564_v9 = vld [vmem:[#allocation2 + $0x108] sm:$0xff] }
 0x214   : > { %v1920_v14 = vld [vmem:[#allocation3 + $0xd8] sm:$0xff]  ;;  %v1110_v16 = vpop.f32.mrf.mxu1 }
 0x215   : > { %1857 = vst.msk [vmem:[#allocation3 + $0xe0] sm:$0xff] %vm372_vm1, %v1825_v30  ;;  %v2166_v17 = vadd.f32 %v2124_v42, %v1920_v14  ;;  %4124 = vmatmul.msk.f32.gmra.mxu2 %vm372_vm1, %v2560_v12  ;;  %v1144_v18 = vadd.f32 %v1110_v16, %v898_v15  ;;  %v2220_v42 = vld [vmem:[#allocation2 + $0xe2] sm:$0xff] }
 0x216   : > { %4157 = vmatmul.msk.f32.gmra.mxu3 %vm372_vm1, %v2901_v13  ;;  %v2238_v12 = vld [vmem:[#allocation3 + $0x18] sm:$0xff] }
 0x217   : > { %2198 = vst.msk [vmem:[#allocation3 + $0xd8] sm:$0xff] %vm372_vm1, %v2166_v17  ;;  %v1239_v20 = vld [vmem:[#allocation3 + $0xf0] sm:$0xff]  ;;  %4091 = vmatmul.msk.f32.gmra.mxu1 %vm372_vm1, %v2218_v22  ;;  %v2133_v21 = vpop.f32.mrf.mxu0 }
 0x218   : > { %1176 = vst.msk [vmem:[#allocation3 + $0xf8] sm:$0xff] %vm372_vm1, %v1144_v18  ;;  %v1449_v24 = vpop.f32.mrf.mxu2  ;;  %v2905_v22 = vld [vmem:[#allocation2 + $0xf9] sm:$0xff] }
 0x219   : > { %v1485_v31 = vadd.f32 %v1449_v24, %v1239_v20  ;;  %v1788_v25 = vpop.f32.mrf.mxu3 }
 0x21a   : > { %v1580_v27 = vld [vmem:[#allocation3 + $0xe8] sm:$0xff]  ;;  %4192 = vmatmul.msk.f32.gmra.mxu0 %vm372_vm1, %v2219_v8 }
 0x21b   : > { %1517 = vst.msk [vmem:[#allocation3 + $0xf0] sm:$0xff] %vm372_vm1, %v1485_v31  ;;  %v1826_v28 = vadd.f32 %v1788_v25, %v1580_v27  ;;  %v2565_v31 = vld [vmem:[#allocation2 + $0x110] sm:$0xff] }
 0x21c   : > { %v1921_v29 = vld [vmem:[#allocation3 + $0xe0] sm:$0xff]  ;;  %v2385_v33 = vpop.f32.mrf.mxu1 }
 0x21d   : > { %1858 = vst.msk [vmem:[#allocation3 + $0xe8] sm:$0xff] %vm372_vm1, %v1826_v28  ;;  %v2167_v26 = vadd.f32 %v2127_v54, %v1921_v29  ;;  %4125 = vmatmul.msk.f32.gmra.mxu2 %vm372_vm1, %v2561_v3  ;;  %v2481_v35 = vadd.f32 %v2385_v33, %v2235_v32  ;;  %v2221_v54 = vld [vmem:[#allocation2 + $0xf2] sm:$0xff] }
 0x21e   : > { %4158 = vmatmul.msk.f32.gmra.mxu3 %vm372_vm1, %v2902_v23  ;;  %v2239_v3 = vld [vmem:[#allocation3 + $0x20] sm:$0xff] }
 0x21f   : > { %2199 = vst.msk [vmem:[#allocation3 + $0xe0] sm:$0xff] %vm372_vm1, %v2167_v26  ;;  %v1240_v36 = vld [vmem:[#allocation3 + $0xf8] sm:$0xff]  ;;  %4092 = vmatmul.msk.f32.gmra.mxu1 %vm372_vm1, %v2219_v8  ;;  %v2136_v1 = vpop.f32.mrf.mxu0 }
 0x220   : > { %2513 = vst.msk [vmem:[#allocation3] sm:$0xff] %vm372_vm1, %v2481_v35  ;;  %v1452_v37 = vpop.f32.mrf.mxu2  ;;  %v2906_v8 = vld [vmem:[#allocation2 + $0x109] sm:$0xff] }
 0x221   : > { %v1486_v53 = vadd.f32 %v1452_v37, %v1240_v36  ;;  %v1791_v40 = vpop.f32.mrf.mxu3 }
 0x222   : > { %v1581_v41 = vld [vmem:[#allocation3 + $0xf0] sm:$0xff]  ;;  %4193 = vmatmul.msk.f32.gmra.mxu0 %vm372_vm1, %v2220_v42 }
 0x223   : > { %1518 = vst.msk [vmem:[#allocation3 + $0xf8] sm:$0xff] %vm372_vm1, %v1486_v53  ;;  %v1827_v38 = vadd.f32 %v1791_v40, %v1581_v41  ;;  %v2566_v53 = vld [vmem:[#allocation2 + $0x120] sm:$0xff] }
 0x224   : > { %v1922_v34 = vld [vmem:[#allocation3 + $0xe8] sm:$0xff]  ;;  %v2388_v46 = vpop.f32.mrf.mxu1 }
 0x225   : > { %1859 = vst.msk [vmem:[#allocation3 + $0xf0] sm:$0xff] %vm372_vm1, %v1827_v38  ;;  %v2168_v47 = vadd.f32 %v2130_v6, %v1922_v34  ;;  %4126 = vmatmul.msk.f32.gmra.mxu2 %vm372_vm1, %v2562_v43  ;;  %v2482_v48 = vadd.f32 %v2388_v46, %v2236_v45  ;;  %v2222_v6 = vld [vmem:[#allocation2 + $0xfa] sm:$0xff] }
 0x226   : > { %4159 = vmatmul.msk.f32.gmra.mxu3 %vm372_vm1, %v2903_v44  ;;  %v2240_v43 = vld [vmem:[#allocation3 + $0x28] sm:$0xff] }
 0x227   : > { %2200 = vst.msk [vmem:[#allocation3 + $0xe8] sm:$0xff] %vm372_vm1, %v2168_v47  ;;  %v2578_v49 = vld [vmem:[#allocation3] sm:$0xff]  ;;  %4093 = vmatmul.msk.f32.gmra.mxu1 %vm372_vm1, %v2220_v42  ;;  %v3412_v7 = vpop.f32.mrf.mxu0 }
 0x228   : > { %2514 = vst.msk [vmem:[#allocation3 + $0x8] sm:$0xff] %vm372_vm1, %v2482_v48  ;;  %v2728_v50 = vpop.f32.mrf.mxu2  ;;  %v2907_v42 = vld [vmem:[#allocation2 + $0x111] sm:$0xff] }
 0x229   : > { %v2824_v51 = vadd.f32 %v2728_v50, %v2578_v49  ;;  %v1794_v52 = vpop.f32.mrf.mxu3  ;;  %v2225_v50 = vld [vmem:[#allocation2 + $0x122] sm:$0xff] }
 0x22a   : > { %v1582_v55 = vld [vmem:[#allocation3 + $0xf8] sm:$0xff]  ;;  %4194 = vmatmul.msk.f32.gmra.mxu0 %vm372_vm1, %v2221_v54 }
 0x22b   : > { %2856 = vst.msk [vmem:[#allocation3] sm:$0xff] %vm372_vm1, %v2824_v51  ;;  %v1828_v57 = vadd.f32 %v1794_v52, %v1582_v55  ;;  %v2567_v52 = vld [vmem:[#allocation2 + $0x128] sm:$0xff] }
 0x22c   : > { %v1923_v59 = vld [vmem:[#allocation3 + $0xf0] sm:$0xff]  ;;  %v2391_v60 = vpop.f32.mrf.mxu1 }
 0x22d   : > { %1860 = vst.msk [vmem:[#allocation3 + $0xf8] sm:$0xff] %vm372_vm1, %v1828_v57  ;;  %v2169_v19 = vadd.f32 %v2133_v21, %v1923_v59  ;;  %4127 = vmatmul.msk.f32.gmra.mxu2 %vm372_vm1, %v2563_v56  ;;  %v2483_v61 = vadd.f32 %v2391_v60, %v2237_v58  ;;  %v2223_v21 = vld [vmem:[#allocation2 + $0x10a] sm:$0xff]  ;;  %v2908_v55 = vld [vmem:[#allocation2 + $0x121] sm:$0xff] }
 0x22e   : > { %4160 = vmatmul.msk.f32.gmra.mxu3 %vm372_vm1, %v2904_v39  ;;  %v2241_v57 = vld [vmem:[#allocation3 + $0x30] sm:$0xff] }
 0x22f   : > { %2201 = vst.msk [vmem:[#allocation3 + $0xf0] sm:$0xff] %vm372_vm1, %v2169_v19  ;;  %v2579_v62 = vld [vmem:[#allocation3 + $0x8] sm:$0xff]  ;;  %4094 = vmatmul.msk.f32.gmra.mxu1 %vm372_vm1, %v2221_v54  ;;  %v5130_v63 = vpop.f32.mrf.mxu0 }
 0x230   : > { %2515 = vst.msk [vmem:[#allocation3 + $0x10] sm:$0xff] %vm372_vm1, %v2483_v61  ;;  %v2731_v0 = vpop.f32.mrf.mxu2 }
 0x231   : > { %v2825_v4 = vadd.f32 %v2731_v0, %v2579_v62  ;;  %v3070_v5 = vpop.f32.mrf.mxu3 }
 0x232   : > { %v2920_v2 = vld [vmem:[#allocation3] sm:$0xff]  ;;  %4195 = vmatmul.msk.f32.gmra.mxu0 %vm372_vm1, %v2222_v6 }
 0x233   : > { %2857 = vst.msk [vmem:[#allocation3 + $0x8] sm:$0xff] %vm372_vm1, %v2825_v4  ;;  %v3166_v10 = vadd.f32 %v3070_v5, %v2920_v2 }
 0x234   : > { %v1924_v11 = vld [vmem:[#allocation3 + $0xf8] sm:$0xff]  ;;  %v2394_v30 = vpop.f32.mrf.mxu1 }
 0x235   : > { %3198 = vst.msk [vmem:[#allocation3] sm:$0xff] %vm372_vm1, %v3166_v10  ;;  %v2170_v13 = vadd.f32 %v2136_v1, %v1924_v11  ;;  %4128 = vmatmul.msk.f32.gmra.mxu2 %vm372_vm1, %v2564_v9  ;;  %v2484_v14 = vadd.f32 %v2394_v30, %v2238_v12  ;;  %v2224_v1 = vld [vmem:[#allocation2 + $0x112] sm:$0xff]  ;;  %v2226_v10 = vld [vmem:[#allocation2 + $0x12a] sm:$0xff] }
 0x236   : > { %4161 = vmatmul.msk.f32.gmra.mxu3 %vm372_vm1, %v2905_v22  ;;  %v2568_v30 = vld [vmem:[#allocation2 + $0x138] sm:$0xff] }
 0x237   : > { %2202 = vst.msk [vmem:[#allocation3 + $0xf8] sm:$0xff] %vm372_vm1, %v2170_v13  ;;  %v2580_v15 = vld [vmem:[#allocation3 + $0x10] sm:$0xff]  ;;  %4095 = vmatmul.msk.f32.gmra.mxu1 %vm372_vm1, %v2222_v6  ;;  %v5140_v16 = vpop.f32.mrf.mxu0 }
 0x238   : > { %2516 = vst.msk [vmem:[#allocation3 + $0x18] sm:$0xff] %vm372_vm1, %v2484_v14  ;;  %v2734_v17 = vpop.f32.mrf.mxu2 }
 0x239   : > { %v2826_v18 = vadd.f32 %v2734_v17, %v2580_v15  ;;  %v3073_v20 = vpop.f32.mrf.mxu3  ;;  %v2909_v15 = vld [vmem:[#allocation2 + $0x129] sm:$0xff] }
 0x23a   : > { %v2921_v24 = vld [vmem:[#allocation3 + $0x8] sm:$0xff]  ;;  %4196 = vmatmul.msk.f32.gmra.mxu0 %vm372_vm1, %v2223_v21  ;;  %v2242_v17 = vld [vmem:[#allocation3 + $0x38] sm:$0xff] }
 0x23b   : > { %2858 = vst.msk [vmem:[#allocation3 + $0x10] sm:$0xff] %vm372_vm1, %v2826_v18  ;;  %v3167_v25 = vadd.f32 %v3073_v20, %v2921_v24 }
 0x23c   : > { %v3262_v27 = vld [vmem:[#allocation3] sm:$0xff]  ;;  %v2397_v28 = vpop.f32.mrf.mxu1 }
 0x23d   : > { %3199 = vst.msk [vmem:[#allocation3 + $0x8] sm:$0xff] %vm372_vm1, %v3167_v25  ;;  %v3508_v23 = vadd.f32 %v3412_v7, %v3262_v27  ;;  %4129 = vmatmul.msk.f32.gmra.mxu2 %vm372_vm1, %v2565_v31  ;;  %v2485_v29 = vadd.f32 %v2397_v28, %v2239_v3 }
 0x23e   : > { %4162 = vmatmul.msk.f32.gmra.mxu3 %vm372_vm1, %v2906_v8 }
 0x23f   : > { %3540 = vst.msk [vmem:[#allocation3] sm:$0xff] %vm372_vm1, %v3508_v23  ;;  %v2581_v32 = vld [vmem:[#allocation3 + $0x18] sm:$0xff]  ;;  %4096 = vmatmul.msk.f32.gmra.mxu1 %vm372_vm1, %v2223_v21  ;;  %v5150_v33 = vpop.f32.mrf.mxu0 }
 0x240   : > { %2517 = vst.msk [vmem:[#allocation3 + $0x20] sm:$0xff] %vm372_vm1, %v2485_v29  ;;  %v2737_v26 = vpop.f32.mrf.mxu2 }
 0x241   : > { %v2827_v35 = vadd.f32 %v2737_v26, %v2581_v32  ;;  %v3076_v36 = vpop.f32.mrf.mxu3 }
 0x242   : > { %v2922_v37 = vld [vmem:[#allocation3 + $0x10] sm:$0xff]  ;;  %4197 = vmatmul.msk.f32.gmra.mxu0 %vm372_vm1, %v2224_v1 }
 0x243   : > { %2859 = vst.msk [vmem:[#allocation3 + $0x18] sm:$0xff] %vm372_vm1, %v2827_v35  ;;  %v3168_v40 = vadd.f32 %v3076_v36, %v2922_v37  ;;  %v2569_v36 = vld [vmem:[#allocation2 + $0x140] sm:$0xff] }
 0x244   : > { %v3263_v41 = vld [vmem:[#allocation3 + $0x8] sm:$0xff]  ;;  %v2400_v38 = vpop.f32.mrf.mxu1 }
 0x245   : > { %3200 = vst.msk [vmem:[#allocation3 + $0x10] sm:$0xff] %vm372_vm1, %v3168_v40  ;;  %v3509_v44 = vadd.f32 %v5130_v63, %v3263_v41  ;;  %4130 = vmatmul.msk.f32.gmra.mxu2 %vm372_vm1, %v2566_v53  ;;  %v2486_v34 = vadd.f32 %v2400_v38, %v2240_v43  ;;  %v2910_v37 = vld [vmem:[#allocation2 + $0x139] sm:$0xff]  ;;  %v2243_v40 = vld [vmem:[#allocation3 + $0x40] sm:$0xff] }
 0x246   : > { %v3572_v45 = vld [vmem:[#allocation3] sm:$0xff]  ;;  %4163 = vmatmul.msk.f32.gmra.mxu3 %vm372_vm1, %v2907_v42 }
 0x247   : > { %3604 = vst.msk [vmem:[%s5160_s30] sm:$0xff] %vm372_vm1, %v3572_v45  ;;  %v2582_v46 = vld [vmem:[#allocation3 + $0x20] sm:$0xff]  ;;  %4097 = vmatmul.msk.f32.gmra.mxu1 %vm372_vm1, %v2224_v1  ;;  %v5169_v47 = vpop.f32.mrf.mxu0  ;;  %v3705_v60 = vmul.f32 %v3572_v45, %v3572_v45  ;;  %v3636_v62 = vsel %vm372_vm1, %v3572_v45, 0.0 }
 0x248   : > { %3541 = vst.msk [vmem:[#allocation3 + $0x8] sm:$0xff] %vm372_vm1, %v3509_v44  ;;  %v2740_v48 = vpop.f32.mrf.mxu2 }
 0x249   : > { %2518 = vst.msk [vmem:[#allocation3 + $0x28] sm:$0xff] %vm372_vm1, %v2486_v34  ;;  %v2828_v49 = vadd.f32 %v2740_v48, %v2582_v46  ;;  %v3079_v7 = vpop.f32.mrf.mxu3  ;;  %v3737_v22 = vsel %vm372_vm1, %v3705_v60, 0.0 }
 0x24a   : > { %v2923_v51 = vld [vmem:[#allocation3 + $0x18] sm:$0xff]  ;;  %4198 = vmatmul.msk.f32.gmra.mxu0 %vm372_vm1, %v2225_v50 }
 0x24b   : > { %2860 = vst.msk [vmem:[#allocation3 + $0x20] sm:$0xff] %vm372_vm1, %v2828_v49  ;;  %v3169_v54 = vadd.f32 %v3079_v7, %v2923_v51 }
 0x24c   : > { %v3264_v56 = vld [vmem:[#allocation3 + $0x10] sm:$0xff]  ;;  %v2403_v39 = vpop.f32.mrf.mxu1 }
 0x24d   : > { %3201 = vst.msk [vmem:[#allocation3 + $0x18] sm:$0xff] %vm372_vm1, %v3169_v54  ;;  %v3510_v59 = vadd.f32 %v5140_v16, %v3264_v56  ;;  %4131 = vmatmul.msk.f32.gmra.mxu2 %vm372_vm1, %v2567_v52  ;;  %v2487_v58 = vadd.f32 %v2403_v39, %v2241_v57  ;;  %v2570_v54 = vld [vmem:[#allocation2 + $0x150] sm:$0xff]  ;;  %v2911_v57 = vld [vmem:[#allocation2 + $0x141] sm:$0xff] }
 0x24e   : > { %4164 = vmatmul.msk.f32.gmra.mxu3 %vm372_vm1, %v2908_v55 }
 0x24f   : > { %v3573_v19 = vld [vmem:[#allocation3 + $0x8] sm:$0xff]  ;;  %3542 = vst.msk [vmem:[#allocation3 + $0x10] sm:$0xff] %vm372_vm1, %v3510_v59  ;;  %4098 = vmatmul.msk.f32.gmra.mxu1 %vm372_vm1, %v2225_v50  ;;  %v5181_v61 = vpop.f32.mrf.mxu0  ;;  %v2228_v50 = vld [vmem:[#allocation2 + $0x142] sm:$0xff] }
 0x250   : > { %3605 = vst.msk [vmem:[%s5160_s30 + $0x8] sm:$0xff] %vm372_vm1, %v3573_v19  ;;  %v3637_v63 = vsel %vm372_vm1, %v3573_v19, 0.0  ;;  %v3706_v0 = vmul.f32 %v3573_v19, %v3573_v19  ;;  %v2583_v4 = vld [vmem:[#allocation3 + $0x28] sm:$0xff]  ;;  %v2743_v5 = vpop.f32.mrf.mxu2 }
 0x251   : > { %v3638_v6 = vadd.f32 %v3637_v63, %v3636_v62  ;;  %2519 = vst.msk [vmem:[#allocation3 + $0x30] sm:$0xff] %vm372_vm1, %v2487_v58  ;;  %v2829_v2 = vadd.f32 %v2743_v5, %v2583_v4  ;;  %v3082_v9 = vpop.f32.mrf.mxu3  ;;  %v2244_v59 = vld [vmem:[#allocation3 + $0x48] sm:$0xff] }
 0x252   : > { %v3738_v11 = vsel %vm372_vm1, %v3706_v0, 0.0  ;;  %v2924_v12 = vld [vmem:[#allocation3 + $0x20] sm:$0xff]  ;;  %4199 = vmatmul.msk.f32.gmra.mxu0 %vm372_vm1, %v2226_v10 }
 0x253   : > { %v3739_v13 = vadd.f32 %v3738_v11, %v3737_v22  ;;  %2861 = vst.msk [vmem:[#allocation3 + $0x28] sm:$0xff] %vm372_vm1, %v2829_v2  ;;  %v3170_v14 = vadd.f32 %v3082_v9, %v2924_v12  ;;  %v2229_v22 = vld [vmem:[#allocation2 + $0x152] sm:$0xff] }
 0x254   : > { %v3265_v16 = vld [vmem:[#allocation3 + $0x18] sm:$0xff]  ;;  %v2406_v18 = vpop.f32.mrf.mxu1 }
 0x255   : > { %3202 = vst.msk [vmem:[#allocation3 + $0x20] sm:$0xff] %vm372_vm1, %v3170_v14  ;;  %v3511_v20 = vadd.f32 %v5150_v33, %v3265_v16  ;;  %4132 = vmatmul.msk.f32.gmra.mxu2 %vm372_vm1, %v2568_v30  ;;  %v2488_v21 = vadd.f32 %v2406_v18, %v2242_v17  ;;  %v2227_v33 = vld [vmem:[#allocation2 + $0x13a] sm:$0xff]  ;;  %v2912_v14 = vld [vmem:[#allocation2 + $0x151] sm:$0xff] }
 0x256   : > { %v3574_v24 = vld [vmem:[#allocation3 + $0x10] sm:$0xff]  ;;  %4165 = vmatmul.msk.f32.gmra.mxu3 %vm372_vm1, %v2909_v15  ;;  %v2571_v30 = vld [vmem:[#allocation2 + $0x158] sm:$0xff] }
 0x257   : > { %3606 = vst.msk [vmem:[%s5160_s30 + $0x10] sm:$0xff] %vm372_vm1, %v3574_v24  ;;  %v3639_v31 = vsel %vm372_vm1, %v3574_v24, 0.0  ;;  %v3707_v25 = vmul.f32 %v3574_v24, %v3574_v24  ;;  %4099 = vmatmul.msk.f32.gmra.mxu1 %vm372_vm1, %v2226_v10  ;;  %v5200_v8 = vpop.f32.mrf.mxu0  ;;  %v2245_v16 = vld [vmem:[#allocation3 + $0x50] sm:$0xff] }
 0x258   : > { %v3640_v27 = vadd.f32 %v3639_v31, %v3638_v6  ;;  %3543 = vst.msk [vmem:[#allocation3 + $0x18] sm:$0xff] %vm372_vm1, %v3511_v20  ;;  %v2584_v3 = vld [vmem:[#allocation3 + $0x30] sm:$0xff]  ;;  %v2746_v28 = vpop.f32.mrf.mxu2 }
 0x259   : > { %v3740_v23 = vsel %vm372_vm1, %v3707_v25, 0.0  ;;  %2520 = vst.msk [vmem:[#allocation3 + $0x38] sm:$0xff] %vm372_vm1, %v2488_v21  ;;  %v2830_v29 = vadd.f32 %v2746_v28, %v2584_v3  ;;  %v3085_v32 = vpop.f32.mrf.mxu3 }
 0x25a   : > { %v3741_v26 = vadd.f32 %v3740_v23, %v3739_v13  ;;  %v2925_v35 = vld [vmem:[#allocation3 + $0x28] sm:$0xff]  ;;  %4200 = vmatmul.msk.f32.gmra.mxu0 %vm372_vm1, %v2227_v33 }
 0x25b   : > { %2862 = vst.msk [vmem:[#allocation3 + $0x30] sm:$0xff] %vm372_vm1, %v2830_v29  ;;  %v3171_v1 = vadd.f32 %v3085_v32, %v2925_v35  ;;  %v2230_v29 = vld [vmem:[#allocation2 + $0x15a] sm:$0xff] }
 0x25c   : > { %v3266_v53 = vld [vmem:[#allocation3 + $0x20] sm:$0xff]  ;;  %v2409_v42 = vpop.f32.mrf.mxu1 }
 0x25d   : > { %3203 = vst.msk [vmem:[#allocation3 + $0x28] sm:$0xff] %vm372_vm1, %v3171_v1  ;;  %v3512_v41 = vadd.f32 %v5169_v47, %v3266_v53  ;;  %4133 = vmatmul.msk.f32.gmra.mxu2 %vm372_vm1, %v2569_v36  ;;  %v2489_v43 = vadd.f32 %v2409_v42, %v2243_v40  ;;  %v2913_v1 = vld [vmem:[#allocation2 + $0x159] sm:$0xff]  ;;  %v2246_v53 = vld [vmem:[#allocation3 + $0x58] sm:$0xff] }
 0x25e   : > { %4166 = vmatmul.msk.f32.gmra.mxu3 %vm372_vm1, %v2910_v37 }
 0x25f   : > { %v3575_v38 = vld [vmem:[#allocation3 + $0x18] sm:$0xff]  ;;  %3544 = vst.msk [vmem:[#allocation3 + $0x20] sm:$0xff] %vm372_vm1, %v3512_v41  ;;  %4100 = vmatmul.msk.f32.gmra.mxu1 %vm372_vm1, %v2227_v33  ;;  %v5213_v44 = vpop.f32.mrf.mxu0 }
 0x260   : > { %3607 = vst.msk [vmem:[%s5160_s30 + $0x18] sm:$0xff] %vm372_vm1, %v3575_v38  ;;  %v3641_v34 = vsel %vm372_vm1, %v3575_v38, 0.0  ;;  %v3708_v45 = vmul.f32 %v3575_v38, %v3575_v38  ;;  %v2585_v46 = vld [vmem:[#allocation3 + $0x38] sm:$0xff]  ;;  %v2749_v48 = vpop.f32.mrf.mxu2 }
 0x261   : > { %v3642_v47 = vadd.f32 %v3641_v34, %v3640_v27  ;;  %2521 = vst.msk [vmem:[#allocation3 + $0x40] sm:$0xff] %vm372_vm1, %v2489_v43  ;;  %v2831_v49 = vadd.f32 %v2749_v48, %v2585_v46  ;;  %v3088_v7 = vpop.f32.mrf.mxu3 }
 0x262   : > { %v3742_v51 = vsel %vm372_vm1, %v3708_v45, 0.0  ;;  %v2926_v52 = vld [vmem:[#allocation3 + $0x30] sm:$0xff]  ;;  %4201 = vmatmul.msk.f32.gmra.mxu0 %vm372_vm1, %v2228_v50 }
 0x263   : > { %v3743_v55 = vadd.f32 %v3742_v51, %v3741_v26  ;;  %2863 = vst.msk [vmem:[#allocation3 + $0x38] sm:$0xff] %vm372_vm1, %v2831_v49  ;;  %v3172_v56 = vadd.f32 %v3088_v7, %v2926_v52  ;;  %v2572_v26 = vld [vmem:[#allocation2 + $0x168] sm:$0xff] }
 0x264   : > { %v3267_v39 = vld [vmem:[#allocation3 + $0x28] sm:$0xff]  ;;  %v2412_v58 = vpop.f32.mrf.mxu1 }
 0x265   : > { %3204 = vst.msk [vmem:[#allocation3 + $0x30] sm:$0xff] %vm372_vm1, %v3172_v56  ;;  %v3513_v60 = vadd.f32 %v5181_v61, %v3267_v39  ;;  %4134 = vmatmul.msk.f32.gmra.mxu2 %vm372_vm1, %v2570_v54  ;;  %v2490_v19 = vadd.f32 %v2412_v58, %v2244_v59  ;;  %v2573_v54 = vld [vmem:[#allocation2 + $0x170] sm:$0xff] }
 0x266   : > { %v3576_v62 = vld [vmem:[#allocation3 + $0x20] sm:$0xff]  ;;  %4167 = vmatmul.msk.f32.gmra.mxu3 %vm372_vm1, %v2911_v57 }
 0x267   : > { %3608 = vst.msk [vmem:[%s5160_s30 + $0x20] sm:$0xff] %vm372_vm1, %v3576_v62  ;;  %v3643_v63 = vsel %vm372_vm1, %v3576_v62, 0.0  ;;  %v3709_v0 = vmul.f32 %v3576_v62, %v3576_v62  ;;  %4101 = vmatmul.msk.f32.gmra.mxu1 %vm372_vm1, %v2228_v50  ;;  %v5230_v4 = vpop.f32.mrf.mxu0  ;;  %v2231_v50 = vld [vmem:[#allocation2 + $0x16a] sm:$0xff] }
 0x268   : > { %v3644_v5 = vadd.f32 %v3643_v63, %v3642_v47  ;;  %3545 = vst.msk [vmem:[#allocation3 + $0x28] sm:$0xff] %vm372_vm1, %v3513_v60  ;;  %v2586_v6 = vld [vmem:[#allocation3 + $0x40] sm:$0xff]  ;;  %v2752_v61 = vpop.f32.mrf.mxu2 }
 0x269   : > { %v3744_v2 = vsel %vm372_vm1, %v3709_v0, 0.0  ;;  %2522 = vst.msk [vmem:[#allocation3 + $0x48] sm:$0xff] %vm372_vm1, %v2490_v19  ;;  %v2832_v9 = vadd.f32 %v2752_v61, %v2586_v6  ;;  %v3091_v10 = vpop.f32.mrf.mxu3  ;;  %v2914_v56 = vld [vmem:[#allocation2 + $0x169] sm:$0xff] }
 0x26a   : > { %v3745_v11 = vadd.f32 %v3744_v2, %v3743_v55  ;;  %v2927_v12 = vld [vmem:[#allocation3 + $0x38] sm:$0xff]  ;;  %4202 = vmatmul.msk.f32.gmra.mxu0 %vm372_vm1, %v2229_v22  ;;  %v2247_v39 = vld [vmem:[#allocation3 + $0x60] sm:$0xff] }
 0x26b   : > { %2864 = vst.msk [vmem:[#allocation3 + $0x40] sm:$0xff] %vm372_vm1, %v2832_v9  ;;  %v3173_v13 = vadd.f32 %v3091_v10, %v2927_v12  ;;  %v2232_v9 = vld [vmem:[#allocation2 + $0x172] sm:$0xff] }
 0x26c   : > { %v3268_v15 = vld [vmem:[#allocation3 + $0x30] sm:$0xff]  ;;  %v2415_v17 = vpop.f32.mrf.mxu1 }
 0x26d   : > { %3205 = vst.msk [vmem:[#allocation3 + $0x38] sm:$0xff] %vm372_vm1, %v3173_v13  ;;  %v3514_v18 = vadd.f32 %v5200_v8, %v3268_v15  ;;  %4135 = vmatmul.msk.f32.gmra.mxu2 %vm372_vm1, %v2571_v30  ;;  %v2491_v20 = vadd.f32 %v2415_v17, %v2245_v16  ;;  %v2915_v13 = vld [vmem:[#allocation2 + $0x171] sm:$0xff] }
 0x26e   : > { %4168 = vmatmul.msk.f32.gmra.mxu3 %vm372_vm1, %v2912_v14  ;;  %v2248_v15 = vld [vmem:[#allocation3 + $0x68] sm:$0xff] }
 0x26f   : > { %v3577_v21 = vld [vmem:[#allocation3 + $0x28] sm:$0xff]  ;;  %3546 = vst.msk [vmem:[#allocation3 + $0x30] sm:$0xff] %vm372_vm1, %v3514_v18  ;;  %4102 = vmatmul.msk.f32.gmra.mxu1 %vm372_vm1, %v2229_v22  ;;  %v5243_v24 = vpop.f32.mrf.mxu0 }
 0x270   : > { %3609 = vst.msk [vmem:[%s5160_s30 + $0x28] sm:$0xff] %vm372_vm1, %v3577_v21  ;;  %v3645_v31 = vsel %vm372_vm1, %v3577_v21, 0.0  ;;  %v3710_v25 = vmul.f32 %v3577_v21, %v3577_v21  ;;  %v2587_v27 = vld [vmem:[#allocation3 + $0x48] sm:$0xff]  ;;  %v2755_v3 = vpop.f32.mrf.mxu2 }
 0x271   : > { %v3646_v8 = vadd.f32 %v3645_v31, %v3644_v5  ;;  %2523 = vst.msk [vmem:[#allocation3 + $0x50] sm:$0xff] %vm372_vm1, %v2491_v20  ;;  %v2833_v28 = vadd.f32 %v2755_v3, %v2587_v27  ;;  %v3094_v23 = vpop.f32.mrf.mxu3 }
 0x272   : > { %v3746_v32 = vsel %vm372_vm1, %v3710_v25, 0.0  ;;  %v2928_v33 = vld [vmem:[#allocation3 + $0x40] sm:$0xff]  ;;  %4203 = vmatmul.msk.f32.gmra.mxu0 %vm372_vm1, %v2230_v29 }
 0x273   : > { %v3747_v35 = vadd.f32 %v3746_v32, %v3745_v11  ;;  %2865 = vst.msk [vmem:[#allocation3 + $0x48] sm:$0xff] %vm372_vm1, %v2833_v28  ;;  %v3174_v36 = vadd.f32 %v3094_v23, %v2928_v33  ;;  %v2574_v11 = vld [vmem:[#allocation2 + $0x180] sm:$0xff] }
 0x274   : > { %v3269_v37 = vld [vmem:[#allocation3 + $0x38] sm:$0xff]  ;;  %v2418_v40 = vpop.f32.mrf.mxu1 }
 0x275   : > { %3206 = vst.msk [vmem:[#allocation3 + $0x40] sm:$0xff] %vm372_vm1, %v3174_v36  ;;  %v3515_v42 = vadd.f32 %v5213_v44, %v3269_v37  ;;  %4136 = vmatmul.msk.f32.gmra.mxu2 %vm372_vm1, %v2572_v26  ;;  %v2492_v41 = vadd.f32 %v2418_v40, %v2246_v53  ;;  %v2575_v26 = vld [vmem:[#allocation2 + $0x188] sm:$0xff]  ;;  %v2249_v37 = vld [vmem:[#allocation3 + $0x70] sm:$0xff] }
 0x276   : > { %v3578_v43 = vld [vmem:[#allocation3 + $0x30] sm:$0xff]  ;;  %4169 = vmatmul.msk.f32.gmra.mxu3 %vm372_vm1, %v2913_v1 }
 0x277   : > { %3610 = vst.msk [vmem:[%s5160_s30 + $0x30] sm:$0xff] %vm372_vm1, %v3578_v43  ;;  %v3647_v38 = vsel %vm372_vm1, %v3578_v43, 0.0  ;;  %v3711_v34 = vmul.f32 %v3578_v43, %v3578_v43  ;;  %4103 = vmatmul.msk.f32.gmra.mxu1 %vm372_vm1, %v2230_v29  ;;  %v5260_v45 = vpop.f32.mrf.mxu0  ;;  %v2233_v29 = vld [vmem:[#allocation2 + $0x182] sm:$0xff] }
 0x278   : > { %v3648_v46 = vadd.f32 %v3647_v38, %v3646_v8  ;;  %3547 = vst.msk [vmem:[#allocation3 + $0x38] sm:$0xff] %vm372_vm1, %v3515_v42  ;;  %v2588_v48 = vld [vmem:[#allocation3 + $0x50] sm:$0xff]  ;;  %v2758_v44 = vpop.f32.mrf.mxu2 }
 0x279   : > { %v3748_v47 = vsel %vm372_vm1, %v3711_v34, 0.0  ;;  %2524 = vst.msk [vmem:[#allocation3 + $0x58] sm:$0xff] %vm372_vm1, %v2492_v41  ;;  %v2834_v49 = vadd.f32 %v2758_v44, %v2588_v48  ;;  %v3097_v7 = vpop.f32.mrf.mxu3  ;;  %v2916_v36 = vld [vmem:[#allocation2 + $0x181] sm:$0xff] }
 0x27a   : > { %v3749_v51 = vadd.f32 %v3748_v47, %v3747_v35  ;;  %v2929_v52 = vld [vmem:[#allocation3 + $0x48] sm:$0xff]  ;;  %4204 = vmatmul.msk.f32.gmra.mxu0 %vm372_vm1, %v2231_v50 }
 0x27b   : > { %2866 = vst.msk [vmem:[#allocation3 + $0x50] sm:$0xff] %vm372_vm1, %v2834_v49  ;;  %v3175_v55 = vadd.f32 %v3097_v7, %v2929_v52  ;;  %v2234_v49 = vld [vmem:[#allocation2 + $0x18a] sm:$0xff] }
 0x27c   : > { %v3270_v57 = vld [vmem:[#allocation3 + $0x40] sm:$0xff]  ;;  %v2421_v59 = vpop.f32.mrf.mxu1 }
 0x27d   : > { %3207 = vst.msk [vmem:[#allocation3 + $0x48] sm:$0xff] %vm372_vm1, %v3175_v55  ;;  %v3516_v58 = vadd.f32 %v5230_v4, %v3270_v57  ;;  %4137 = vmatmul.msk.f32.gmra.mxu2 %vm372_vm1, %v2573_v54  ;;  %v2493_v60 = vadd.f32 %v2421_v59, %v2247_v39  ;;  %v2917_v55 = vld [vmem:[#allocation2 + $0x189] sm:$0xff] }
 0x27e   : > { %4170 = vmatmul.msk.f32.gmra.mxu3 %vm372_vm1, %v2914_v56  ;;  %v2250_v57 = vld [vmem:[#allocation3 + $0x78] sm:$0xff] }
 0x27f   : > { %v3579_v19 = vld [vmem:[#allocation3 + $0x38] sm:$0xff]  ;;  %3548 = vst.msk [vmem:[#allocation3 + $0x40] sm:$0xff] %vm372_vm1, %v3516_v58  ;;  %4104 = vmatmul.msk.f32.gmra.mxu1 %vm372_vm1, %v2231_v50  ;;  %v5273_v62 = vpop.f32.mrf.mxu0 }
 0x280   : > { %3611 = vst.msk [vmem:[%s5160_s30 + $0x38] sm:$0xff] %vm372_vm1, %v3579_v19  ;;  %v3649_v63 = vsel %vm372_vm1, %v3579_v19, 0.0  ;;  %v3712_v0 = vmul.f32 %v3579_v19, %v3579_v19  ;;  %v2589_v5 = vld [vmem:[#allocation3 + $0x58] sm:$0xff]  ;;  %v2761_v6 = vpop.f32.mrf.mxu2 }
 0x281   : > { %v3650_v4 = vadd.f32 %v3649_v63, %v3648_v46  ;;  %2525 = vst.msk [vmem:[#allocation3 + $0x60] sm:$0xff] %vm372_vm1, %v2493_v60  ;;  %v2835_v61 = vadd.f32 %v2761_v6, %v2589_v5  ;;  %v3100_v2 = vpop.f32.mrf.mxu3  ;;  %v3260_v5 = vld [vmem:[#allocation2 + $0x19a] sm:$0xff] }
 0x282   : > { %v3750_v10 = vsel %vm372_vm1, %v3712_v0, 0.0  ;;  %v2930_v22 = vld [vmem:[#allocation3 + $0x50] sm:$0xff]  ;;  %4205 = vmatmul.msk.f32.gmra.mxu0 %vm372_vm1, %v2232_v9 }
 0x283   : > { %v3751_v12 = vadd.f32 %v3750_v10, %v3749_v51  ;;  %2867 = vst.msk [vmem:[#allocation3 + $0x58] sm:$0xff] %vm372_vm1, %v2835_v61  ;;  %v3176_v30 = vadd.f32 %v3100_v2, %v2930_v22  ;;  %v2576_v51 = vld [vmem:[#allocation2 + $0x198] sm:$0xff] }
 0x284   : > { %v3271_v14 = vld [vmem:[#allocation3 + $0x48] sm:$0xff]  ;;  %v2424_v16 = vpop.f32.mrf.mxu1 }
 0x285   : > { %3208 = vst.msk [vmem:[#allocation3 + $0x50] sm:$0xff] %vm372_vm1, %v3176_v30  ;;  %v3517_v17 = vadd.f32 %v5243_v24, %v3271_v14  ;;  %4138 = vmatmul.msk.f32.gmra.mxu2 %vm372_vm1, %v2574_v11  ;;  %v2494_v18 = vadd.f32 %v2424_v16, %v2248_v15  ;;  %v2577_v11 = vld [vmem:[#allocation2 + $0x1a0] sm:$0xff]  ;;  %v2251_v14 = vld [vmem:[#allocation3 + $0x80] sm:$0xff] }
 0x286   : > { %v3580_v20 = vld [vmem:[#allocation3 + $0x40] sm:$0xff]  ;;  %4171 = vmatmul.msk.f32.gmra.mxu3 %vm372_vm1, %v2915_v13  ;;  %v2918_v30 = vld [vmem:[#allocation2 + $0x199] sm:$0xff] }
 0x287   : > { %3612 = vst.msk [vmem:[%s5160_s30 + $0x40] sm:$0xff] %vm372_vm1, %v3580_v20  ;;  %v3651_v21 = vsel %vm372_vm1, %v3580_v20, 0.0  ;;  %v3713_v31 = vmul.f32 %v3580_v20, %v3580_v20  ;;  %4105 = vmatmul.msk.f32.gmra.mxu1 %vm372_vm1, %v2232_v9  ;;  %v5290_v25 = vpop.f32.mrf.mxu0 }
 0x288   : > { %v3652_v27 = vadd.f32 %v3651_v21, %v3650_v4  ;;  %3549 = vst.msk [vmem:[#allocation3 + $0x48] sm:$0xff] %vm372_vm1, %v3517_v17  ;;  %v2590_v3 = vld [vmem:[#allocation3 + $0x60] sm:$0xff]  ;;  %v2764_v24 = vpop.f32.mrf.mxu2  ;;  %v3261_v21 = vld [vmem:[#allocation2 + $0x1a2] sm:$0xff] }
 0x289   : > { %v3752_v8 = vsel %vm372_vm1, %v3713_v31, 0.0  ;;  %2526 = vst.msk [vmem:[#allocation3 + $0x68] sm:$0xff] %vm372_vm1, %v2494_v18  ;;  %v2836_v28 = vadd.f32 %v2764_v24, %v2590_v3  ;;  %v3103_v23 = vpop.f32.mrf.mxu3 }
 0x28a   : > { %v3753_v32 = vadd.f32 %v3752_v8, %v3751_v12  ;;  %v2931_v33 = vld [vmem:[#allocation3 + $0x58] sm:$0xff]  ;;  %4206 = vmatmul.msk.f32.gmra.mxu0 %vm372_vm1, %v2233_v29 }
 0x28b   : > { %2868 = vst.msk [vmem:[#allocation3 + $0x60] sm:$0xff] %vm372_vm1, %v2836_v28  ;;  %v3177_v35 = vadd.f32 %v3103_v23, %v2931_v33 }
 0x28c   : > { %v3272_v1 = vld [vmem:[#allocation3 + $0x50] sm:$0xff]  ;;  %v2427_v53 = vpop.f32.mrf.mxu1 }
 0x28d   : > { %3209 = vst.msk [vmem:[#allocation3 + $0x58] sm:$0xff] %vm372_vm1, %v3177_v35  ;;  %v3518_v40 = vadd.f32 %v5260_v45, %v3272_v1  ;;  %4139 = vmatmul.msk.f32.gmra.mxu2 %vm372_vm1, %v2575_v26  ;;  %v2495_v42 = vadd.f32 %v2427_v53, %v2249_v37  ;;  %v2919_v26 = vld [vmem:[#allocation2 + $0x1a1] sm:$0xff] }
 0x28e   : > { %4172 = vmatmul.msk.f32.gmra.mxu3 %vm372_vm1, %v2916_v36  ;;  %v2252_v36 = vld [vmem:[#allocation3 + $0x88] sm:$0xff] }
 0x28f   : > { %v3581_v41 = vld [vmem:[#allocation3 + $0x48] sm:$0xff]  ;;  %3550 = vst.msk [vmem:[#allocation3 + $0x50] sm:$0xff] %vm372_vm1, %v3518_v40  ;;  %4106 = vmatmul.msk.f32.gmra.mxu1 %vm372_vm1, %v2233_v29  ;;  %v5303_v43 = vpop.f32.mrf.mxu0 }
 0x290   : > { %3613 = vst.msk [vmem:[%s5160_s30 + $0x48] sm:$0xff] %vm372_vm1, %v3581_v41  ;;  %v3653_v38 = vsel %vm372_vm1, %v3581_v41, 0.0  ;;  %v3714_v34 = vmul.f32 %v3581_v41, %v3581_v41  ;;  %v2591_v46 = vld [vmem:[#allocation3 + $0x68] sm:$0xff]  ;;  %v2767_v48 = vpop.f32.mrf.mxu2 }
 0x291   : > { %v3654_v45 = vadd.f32 %v3653_v38, %v3652_v27  ;;  %2527 = vst.msk [vmem:[#allocation3 + $0x70] sm:$0xff] %vm372_vm1, %v2495_v42  ;;  %v2837_v44 = vadd.f32 %v2767_v48, %v2591_v46  ;;  %v3106_v47 = vpop.f32.mrf.mxu3 }
 0x292   : > { %v3754_v7 = vsel %vm372_vm1, %v3714_v34, 0.0  ;;  %v2932_v50 = vld [vmem:[#allocation3 + $0x60] sm:$0xff]  ;;  %4207 = vmatmul.msk.f32.gmra.mxu0 %vm372_vm1, %v2234_v49 }
 0x293   : > { %v3755_v52 = vadd.f32 %v3754_v7, %v3753_v32  ;;  %2869 = vst.msk [vmem:[#allocation3 + $0x68] sm:$0xff] %vm372_vm1, %v2837_v44  ;;  %v3178_v54 = vadd.f32 %v3106_v47, %v2932_v50 }
 0x294   : > { %v3273_v56 = vld [vmem:[#allocation3 + $0x58] sm:$0xff]  ;;  %v2430_v39 = vpop.f32.mrf.mxu1 }
 0x295   : > { %3210 = vst.msk [vmem:[#allocation3 + $0x60] sm:$0xff] %vm372_vm1, %v3178_v54  ;;  %v3519_v59 = vadd.f32 %v5273_v62, %v3273_v56  ;;  %4140 = vmatmul.msk.f32.gmra.mxu2 %vm372_vm1, %v2576_v51  ;;  %v2496_v58 = vadd.f32 %v2430_v39, %v2250_v57  ;;  %v2253_v51 = vld [vmem:[#allocation3 + $0x90] sm:$0xff] }
 0x296   : > { %v3582_v60 = vld [vmem:[#allocation3 + $0x50] sm:$0xff]  ;;  %4173 = vmatmul.msk.f32.gmra.mxu3 %vm372_vm1, %v2917_v55 }
 0x297   : > { %3614 = vst.msk [vmem:[%s5160_s30 + $0x50] sm:$0xff] %vm372_vm1, %v3582_v60  ;;  %v3655_v19 = vsel %vm372_vm1, %v3582_v60, 0.0  ;;  %v3715_v63 = vmul.f32 %v3582_v60, %v3582_v60  ;;  %4107 = vmatmul.msk.f32.gmra.mxu1 %vm372_vm1, %v2234_v49  ;;  %v5320_v0 = vpop.f32.mrf.mxu0 }
 0x298   : > { %v3656_v6 = vadd.f32 %v3655_v19, %v3654_v45  ;;  %3551 = vst.msk [vmem:[#allocation3 + $0x58] sm:$0xff] %vm372_vm1, %v3519_v59  ;;  %v2592_v62 = vld [vmem:[#allocation3 + $0x70] sm:$0xff]  ;;  %v2770_v4 = vpop.f32.mrf.mxu2 }
 0x299   : > { %v3756_v61 = vsel %vm372_vm1, %v3715_v63, 0.0  ;;  %2528 = vst.msk [vmem:[#allocation3 + $0x78] sm:$0xff] %vm372_vm1, %v2496_v58  ;;  %v2838_v2 = vadd.f32 %v2770_v4, %v2592_v62  ;;  %v3109_v9 = vpop.f32.mrf.mxu3 }
 0x29a   : > { %v3757_v10 = vadd.f32 %v3756_v61, %v3755_v52  ;;  %v2933_v22 = vld [vmem:[#allocation3 + $0x68] sm:$0xff]  ;;  %4208 = vmatmul.msk.f32.gmra.mxu0 %vm372_vm1, %v3260_v5 }
 0x29b   : > { %2870 = vst.msk [vmem:[#allocation3 + $0x70] sm:$0xff] %vm372_vm1, %v2838_v2  ;;  %v3179_v12 = vadd.f32 %v3109_v9, %v2933_v22  ;;  %v2254_v2 = vld [vmem:[#allocation3 + $0x98] sm:$0xff] }
 0x29c   : > { %v3274_v13 = vld [vmem:[#allocation3 + $0x60] sm:$0xff]  ;;  %v2433_v15 = vpop.f32.mrf.mxu1 }
 0x29d   : > { %3211 = vst.msk [vmem:[#allocation3 + $0x68] sm:$0xff] %vm372_vm1, %v3179_v12  ;;  %v3520_v16 = vadd.f32 %v5290_v25, %v3274_v13  ;;  %4141 = vmatmul.msk.f32.gmra.mxu2 %vm372_vm1, %v2577_v11  ;;  %v2497_v17 = vadd.f32 %v2433_v15, %v2251_v14 }
 0x29e   : > { %4174 = vmatmul.msk.f32.gmra.mxu3 %vm372_vm1, %v2918_v30 }
 0x29f   : > { %v3583_v18 = vld [vmem:[#allocation3 + $0x58] sm:$0xff]  ;;  %3552 = vst.msk [vmem:[#allocation3 + $0x60] sm:$0xff] %vm372_vm1, %v3520_v16  ;;  %v5332_v20 = vpop.f32.mrf.mxu0 }
 0x2a0   : > { %3615 = vst.msk [vmem:[%s5160_s30 + $0x58] sm:$0xff] %vm372_vm1, %v3583_v18  ;;  %v3657_v31 = vsel %vm372_vm1, %v3583_v18, 0.0  ;;  %v3716_v27 = vmul.f32 %v3583_v18, %v3583_v18  ;;  %v2593_v3 = vld [vmem:[#allocation3 + $0x78] sm:$0xff]  ;;  %v2773_v24 = vpop.f32.mrf.mxu2 }
 0x2a1   : > { %v3658_v8 = vadd.f32 %v3657_v31, %v3656_v6  ;;  %2529 = vst.msk [vmem:[#allocation3 + $0x80] sm:$0xff] %vm372_vm1, %v2497_v17  ;;  %v2839_v25 = vadd.f32 %v2773_v24, %v2593_v3  ;;  %v3112_v28 = vpop.f32.mrf.mxu3  ;;  %v2255_v24 = vld [vmem:[#allocation3 + $0xa0] sm:$0xff] }
 0x2a2   : > { %v3758_v23 = vsel %vm372_vm1, %v3716_v27, 0.0  ;;  %v2934_v29 = vld [vmem:[#allocation3 + $0x70] sm:$0xff]  ;;  %4209 = vmatmul.msk.f32.gmra.mxu0 %vm372_vm1, %v3261_v21 }
 0x2a3   : > { %v3759_v32 = vadd.f32 %v3758_v23, %v3757_v10  ;;  %2871 = vst.msk [vmem:[#allocation3 + $0x78] sm:$0xff] %vm372_vm1, %v2839_v25  ;;  %v3180_v33 = vadd.f32 %v3112_v28, %v2934_v29 }
 0x2a4   : > { %v3275_v35 = vld [vmem:[#allocation3 + $0x68] sm:$0xff]  ;;  %v2436_v1 = vpop.f32.mrf.mxu1 }
 0x2a5   : > { %3212 = vst.msk [vmem:[#allocation3 + $0x70] sm:$0xff] %vm372_vm1, %v3180_v33  ;;  %v3521_v37 = vadd.f32 %v5303_v43, %v3275_v35  ;;  %v2498_v53 = vadd.f32 %v2436_v1, %v2252_v36 }
 0x2a6   : > { %v3584_v40 = vld [vmem:[#allocation3 + $0x60] sm:$0xff]  ;;  %4175 = vmatmul.msk.f32.gmra.mxu3 %vm372_vm1, %v2919_v26 }
 0x2a7   : > { %3616 = vst.msk [vmem:[%s5160_s30 + $0x60] sm:$0xff] %vm372_vm1, %v3584_v40  ;;  %v3659_v42 = vsel %vm372_vm1, %v3584_v40, 0.0  ;;  %v3717_v41 = vmul.f32 %v3584_v40, %v3584_v40  ;;  %v5347_v38 = vpop.f32.mrf.mxu0 }
 0x2a8   : > { %v3660_v34 = vadd.f32 %v3659_v42, %v3658_v8  ;;  %3553 = vst.msk [vmem:[#allocation3 + $0x68] sm:$0xff] %vm372_vm1, %v3521_v37  ;;  %v2594_v46 = vld [vmem:[#allocation3 + $0x80] sm:$0xff]  ;;  %v2776_v48 = vpop.f32.mrf.mxu2 }
 0x2a9   : > { %v3760_v45 = vsel %vm372_vm1, %v3717_v41, 0.0  ;;  %2530 = vst.msk [vmem:[#allocation3 + $0x88] sm:$0xff] %vm372_vm1, %v2498_v53  ;;  %v2840_v43 = vadd.f32 %v2776_v48, %v2594_v46  ;;  %v3115_v44 = vpop.f32.mrf.mxu3 }
 0x2aa   : > { %v3761_v47 = vadd.f32 %v3760_v45, %v3759_v32  ;;  %v2935_v49 = vld [vmem:[#allocation3 + $0x78] sm:$0xff] }
 0x2ab   : > { %2872 = vst.msk [vmem:[#allocation3 + $0x80] sm:$0xff] %vm372_vm1, %v2840_v43  ;;  %v3181_v7 = vadd.f32 %v3115_v44, %v2935_v49 }
 0x2ac   : > { %v3276_v50 = vld [vmem:[#allocation3 + $0x70] sm:$0xff]  ;;  %v2439_v52 = vpop.f32.mrf.mxu1 }
 0x2ad   : > { %3213 = vst.msk [vmem:[#allocation3 + $0x78] sm:$0xff] %vm372_vm1, %v3181_v7  ;;  %v3522_v54 = vadd.f32 %v5320_v0, %v3276_v50  ;;  %v2499_v55 = vadd.f32 %v2439_v52, %v2253_v51 }
 0x2af   : > { %v3585_v56 = vld [vmem:[#allocation3 + $0x68] sm:$0xff]  ;;  %3554 = vst.msk [vmem:[#allocation3 + $0x70] sm:$0xff] %vm372_vm1, %v3522_v54  ;;  %v5356_v57 = vpop.f32.mrf.mxu0 }
 0x2b0   : > { %3617 = vst.msk [vmem:[%s5160_s30 + $0x68] sm:$0xff] %vm372_vm1, %v3585_v56  ;;  %v3661_v39 = vsel %vm372_vm1, %v3585_v56, 0.0  ;;  %v3718_v59 = vmul.f32 %v3585_v56, %v3585_v56  ;;  %v2595_v58 = vld [vmem:[#allocation3 + $0x88] sm:$0xff]  ;;  %v2779_v60 = vpop.f32.mrf.mxu2 }
 0x2b1   : > { %v3662_v19 = vadd.f32 %v3661_v39, %v3660_v34  ;;  %2531 = vst.msk [vmem:[#allocation3 + $0x90] sm:$0xff] %vm372_vm1, %v2499_v55  ;;  %v2841_v63 = vadd.f32 %v2779_v60, %v2595_v58  ;;  %v3118_v5 = vpop.f32.mrf.mxu3  ;;  %v2256_v34 = vld [vmem:[#allocation3 + $0xa8] sm:$0xff]  ;;  %v2257_v58 = vld [vmem:[#allocation3 + $0xb0] sm:$0xff] }
 0x2b2   : > { %v3762_v0 = vsel %vm372_vm1, %v3718_v59, 0.0  ;;  %v2936_v6 = vld [vmem:[#allocation3 + $0x80] sm:$0xff] }
 0x2b3   : > { %v3763_v62 = vadd.f32 %v3762_v0, %v3761_v47  ;;  %2873 = vst.msk [vmem:[#allocation3 + $0x88] sm:$0xff] %vm372_vm1, %v2841_v63  ;;  %v3182_v4 = vadd.f32 %v3118_v5, %v2936_v6 }
 0x2b4   : > { %v3277_v61 = vld [vmem:[#allocation3 + $0x78] sm:$0xff]  ;;  %v2442_v9 = vpop.f32.mrf.mxu1 }
 0x2b5   : > { %3214 = vst.msk [vmem:[#allocation3 + $0x80] sm:$0xff] %vm372_vm1, %v3182_v4  ;;  %v3523_v10 = vadd.f32 %v5332_v20, %v3277_v61  ;;  %v2500_v22 = vadd.f32 %v2442_v9, %v2254_v2 }
 0x2b6   : > { %v3586_v11 = vld [vmem:[#allocation3 + $0x70] sm:$0xff] }
 0x2b7   : > { %3618 = vst.msk [vmem:[%s5160_s30 + $0x70] sm:$0xff] %vm372_vm1, %v3586_v11  ;;  %v3663_v12 = vsel %vm372_vm1, %v3586_v11, 0.0  ;;  %v3719_v30 = vmul.f32 %v3586_v11, %v3586_v11  ;;  %v5369_v13 = vpop.f32.mrf.mxu0 }
 0x2b8   : > { %v3664_v14 = vadd.f32 %v3663_v12, %v3662_v19  ;;  %3555 = vst.msk [vmem:[#allocation3 + $0x78] sm:$0xff] %vm372_vm1, %v3523_v10  ;;  %v2596_v15 = vld [vmem:[#allocation3 + $0x90] sm:$0xff]  ;;  %v2782_v16 = vpop.f32.mrf.mxu2 }
 0x2b9   : > { %v3764_v17 = vsel %vm372_vm1, %v3719_v30, 0.0  ;;  %2532 = vst.msk [vmem:[#allocation3 + $0x98] sm:$0xff] %vm372_vm1, %v2500_v22  ;;  %v2842_v18 = vadd.f32 %v2782_v16, %v2596_v15  ;;  %v3121_v20 = vpop.f32.mrf.mxu3 }
 0x2ba   : > { %v3765_v21 = vadd.f32 %v3764_v17, %v3763_v62  ;;  %v2937_v31 = vld [vmem:[#allocation3 + $0x88] sm:$0xff] }
 0x2bb   : > { %2874 = vst.msk [vmem:[#allocation3 + $0x90] sm:$0xff] %vm372_vm1, %v2842_v18  ;;  %v3183_v27 = vadd.f32 %v3121_v20, %v2937_v31 }
 0x2bc   : > { %v3278_v3 = vld [vmem:[#allocation3 + $0x80] sm:$0xff]  ;;  %v2445_v8 = vpop.f32.mrf.mxu1 }
 0x2bd   : > { %3215 = vst.msk [vmem:[#allocation3 + $0x88] sm:$0xff] %vm372_vm1, %v3183_v27  ;;  %v3524_v25 = vadd.f32 %v5347_v38, %v3278_v3  ;;  %v2501_v28 = vadd.f32 %v2445_v8, %v2255_v24 }
 0x2bf   : > { %v3587_v23 = vld [vmem:[#allocation3 + $0x78] sm:$0xff]  ;;  %3556 = vst.msk [vmem:[#allocation3 + $0x80] sm:$0xff] %vm372_vm1, %v3524_v25  ;;  %v5378_v29 = vpop.f32.mrf.mxu0 }
 0x2c0   : > { %3619 = vst.msk [vmem:[%s5160_s30 + $0x78] sm:$0xff] %vm372_vm1, %v3587_v23  ;;  %v3665_v32 = vsel %vm372_vm1, %v3587_v23, 0.0  ;;  %v3720_v33 = vmul.f32 %v3587_v23, %v3587_v23  ;;  %v2597_v26 = vld [vmem:[#allocation3 + $0x98] sm:$0xff]  ;;  %v2785_v35 = vpop.f32.mrf.mxu2 }
 0x2c1   : > { %v3666_v36 = vadd.f32 %v3665_v32, %v3664_v14  ;;  %2533 = vst.msk [vmem:[#allocation3 + $0xa0] sm:$0xff] %vm372_vm1, %v2501_v28  ;;  %v2843_v1 = vadd.f32 %v2785_v35, %v2597_v26  ;;  %v3124_v37 = vpop.f32.mrf.mxu3  ;;  %v2258_v14 = vld [vmem:[#allocation3 + $0xb8] sm:$0xff]  ;;  %v2259_v26 = vld [vmem:[#allocation3 + $0xc0] sm:$0xff] }
 0x2c2   : > { %v3766_v53 = vsel %vm372_vm1, %v3720_v33, 0.0  ;;  %v2938_v40 = vld [vmem:[#allocation3 + $0x90] sm:$0xff] }
 0x2c3   : > { %v3767_v42 = vadd.f32 %v3766_v53, %v3765_v21  ;;  %2875 = vst.msk [vmem:[#allocation3 + $0x98] sm:$0xff] %vm372_vm1, %v2843_v1  ;;  %v3184_v41 = vadd.f32 %v3124_v37, %v2938_v40 }
 0x2c4   : > { %v3279_v38 = vld [vmem:[#allocation3 + $0x88] sm:$0xff]  ;;  %v2448_v46 = vpop.f32.mrf.mxu1 }
 0x2c5   : > { %3216 = vst.msk [vmem:[#allocation3 + $0x90] sm:$0xff] %vm372_vm1, %v3184_v41  ;;  %v3525_v48 = vadd.f32 %v5356_v57, %v3279_v38  ;;  %v2502_v45 = vadd.f32 %v2448_v46, %v2256_v34 }
 0x2c6   : > { %v3588_v43 = vld [vmem:[#allocation3 + $0x80] sm:$0xff] }
 0x2c7   : > { %3620 = vst.msk [vmem:[%s5160_s30 + $0x80] sm:$0xff] %vm372_vm1, %v3588_v43  ;;  %v3667_v44 = vsel %vm372_vm1, %v3588_v43, 0.0  ;;  %v3721_v47 = vmul.f32 %v3588_v43, %v3588_v43  ;;  %v5391_v49 = vpop.f32.mrf.mxu0 }
 0x2c8   : > { %v3668_v7 = vadd.f32 %v3667_v44, %v3666_v36  ;;  %3557 = vst.msk [vmem:[#allocation3 + $0x88] sm:$0xff] %vm372_vm1, %v3525_v48  ;;  %v2598_v50 = vld [vmem:[#allocation3 + $0xa0] sm:$0xff]  ;;  %v2788_v51 = vpop.f32.mrf.mxu2 }
 0x2c9   : > { %v3768_v52 = vsel %vm372_vm1, %v3721_v47, 0.0  ;;  %2534 = vst.msk [vmem:[#allocation3 + $0xa8] sm:$0xff] %vm372_vm1, %v2502_v45  ;;  %v2844_v54 = vadd.f32 %v2788_v51, %v2598_v50  ;;  %v3127_v55 = vpop.f32.mrf.mxu3 }
 0x2ca   : > { %v3769_v56 = vadd.f32 %v3768_v52, %v3767_v42  ;;  %v2939_v57 = vld [vmem:[#allocation3 + $0x98] sm:$0xff] }
 0x2cb   : > { %2876 = vst.msk [vmem:[#allocation3 + $0xa0] sm:$0xff] %vm372_vm1, %v2844_v54  ;;  %v3185_v39 = vadd.f32 %v3127_v55, %v2939_v57 }
 0x2cc   : > { %v3280_v59 = vld [vmem:[#allocation3 + $0x90] sm:$0xff]  ;;  %v2451_v60 = vpop.f32.mrf.mxu1 }
 0x2cd   : > { %3217 = vst.msk [vmem:[#allocation3 + $0x98] sm:$0xff] %vm372_vm1, %v3185_v39  ;;  %v3526_v19 = vadd.f32 %v5369_v13, %v3280_v59  ;;  %v2503_v63 = vadd.f32 %v2451_v60, %v2257_v58 }
 0x2cf   : > { %v3589_v5 = vld [vmem:[#allocation3 + $0x88] sm:$0xff]  ;;  %3558 = vst.msk [vmem:[#allocation3 + $0x90] sm:$0xff] %vm372_vm1, %v3526_v19  ;;  %v5400_v0 = vpop.f32.mrf.mxu0 }
 0x2d0   : > { %3621 = vst.msk [vmem:[%s5160_s30 + $0x88] sm:$0xff] %vm372_vm1, %v3589_v5  ;;  %v3669_v6 = vsel %vm372_vm1, %v3589_v5, 0.0  ;;  %v3722_v62 = vmul.f32 %v3589_v5, %v3589_v5  ;;  %v2599_v4 = vld [vmem:[#allocation3 + $0xa8] sm:$0xff]  ;;  %v2791_v61 = vpop.f32.mrf.mxu2 }
 0x2d1   : > { %v3670_v2 = vadd.f32 %v3669_v6, %v3668_v7  ;;  %2535 = vst.msk [vmem:[#allocation3 + $0xb0] sm:$0xff] %vm372_vm1, %v2503_v63  ;;  %v2845_v9 = vadd.f32 %v2791_v61, %v2599_v4  ;;  %v3130_v10 = vpop.f32.mrf.mxu3  ;;  %v2260_v7 = vld [vmem:[#allocation3 + $0xc8] sm:$0xff] }
 0x2d2   : > { %v3770_v22 = vsel %vm372_vm1, %v3722_v62, 0.0  ;;  %v2940_v11 = vld [vmem:[#allocation3 + $0xa0] sm:$0xff]  ;;  %v2261_v62 = vld [vmem:[#allocation3 + $0xd0] sm:$0xff] }
 0x2d3   : > { %v3771_v12 = vadd.f32 %v3770_v22, %v3769_v56  ;;  %2877 = vst.msk [vmem:[#allocation3 + $0xa8] sm:$0xff] %vm372_vm1, %v2845_v9  ;;  %v3186_v30 = vadd.f32 %v3130_v10, %v2940_v11 }
 0x2d4   : > { %v3281_v13 = vld [vmem:[#allocation3 + $0x98] sm:$0xff]  ;;  %v2454_v15 = vpop.f32.mrf.mxu1 }
 0x2d5   : > { %3218 = vst.msk [vmem:[#allocation3 + $0xa0] sm:$0xff] %vm372_vm1, %v3186_v30  ;;  %v3527_v16 = vadd.f32 %v5378_v29, %v3281_v13  ;;  %v2504_v17 = vadd.f32 %v2454_v15, %v2258_v14 }
 0x2d6   : > { %v3590_v18 = vld [vmem:[#allocation3 + $0x90] sm:$0xff] }
 0x2d7   : > { %3622 = vst.msk [vmem:[%s5160_s30 + $0x90] sm:$0xff] %vm372_vm1, %v3590_v18  ;;  %v3671_v20 = vsel %vm372_vm1, %v3590_v18, 0.0  ;;  %v3723_v21 = vmul.f32 %v3590_v18, %v3590_v18  ;;  %v3478_v24 = vpop.f32.mrf.mxu0 }
 0x2d8   : > { %v3672_v31 = vadd.f32 %v3671_v20, %v3670_v2  ;;  %3559 = vst.msk [vmem:[#allocation3 + $0x98] sm:$0xff] %vm372_vm1, %v3527_v16  ;;  %v2600_v27 = vld [vmem:[#allocation3 + $0xb0] sm:$0xff]  ;;  %v2794_v3 = vpop.f32.mrf.mxu2  ;;  %v2262_v16 = vld [vmem:[#allocation3 + $0xd8] sm:$0xff] }
 0x2d9   : > { %v3772_v8 = vsel %vm372_vm1, %v3723_v21, 0.0  ;;  %2536 = vst.msk [vmem:[#allocation3 + $0xb8] sm:$0xff] %vm372_vm1, %v2504_v17  ;;  %v2846_v25 = vadd.f32 %v2794_v3, %v2600_v27  ;;  %v3133_v28 = vpop.f32.mrf.mxu3 }
 0x2da   : > { %v3773_v23 = vadd.f32 %v3772_v8, %v3771_v12  ;;  %v2941_v29 = vld [vmem:[#allocation3 + $0xa8] sm:$0xff] }
 0x2db   : > { %2878 = vst.msk [vmem:[#allocation3 + $0xb0] sm:$0xff] %vm372_vm1, %v2846_v25  ;;  %v3187_v32 = vadd.f32 %v3133_v28, %v2941_v29  ;;  %v2263_v29 = vld [vmem:[#allocation3 + $0xe0] sm:$0xff] }
 0x2dc   : > { %v3282_v33 = vld [vmem:[#allocation3 + $0xa0] sm:$0xff]  ;;  %v2457_v35 = vpop.f32.mrf.mxu1 }
 0x2dd   : > { %3219 = vst.msk [vmem:[#allocation3 + $0xa8] sm:$0xff] %vm372_vm1, %v3187_v32  ;;  %v3528_v36 = vadd.f32 %v5391_v49, %v3282_v33  ;;  %v2505_v1 = vadd.f32 %v2457_v35, %v2259_v26 }
 0x2df   : > { %v3591_v37 = vld [vmem:[#allocation3 + $0x98] sm:$0xff]  ;;  %3560 = vst.msk [vmem:[#allocation3 + $0xa0] sm:$0xff] %vm372_vm1, %v3528_v36  ;;  %v3481_v43 = vpop.f32.mrf.mxu0 }
 0x2e0   : > { %3623 = vst.msk [vmem:[%s5160_s30 + $0x98] sm:$0xff] %vm372_vm1, %v3591_v37  ;;  %v3673_v53 = vsel %vm372_vm1, %v3591_v37, 0.0  ;;  %v3724_v40 = vmul.f32 %v3591_v37, %v3591_v37  ;;  %v2601_v42 = vld [vmem:[#allocation3 + $0xb8] sm:$0xff]  ;;  %v2797_v41 = vpop.f32.mrf.mxu2 }
 0x2e1   : > { %v3674_v38 = vadd.f32 %v3673_v53, %v3672_v31  ;;  %2537 = vst.msk [vmem:[#allocation3 + $0xc0] sm:$0xff] %vm372_vm1, %v2505_v1  ;;  %v2847_v34 = vadd.f32 %v2797_v41, %v2601_v42  ;;  %v3136_v46 = vpop.f32.mrf.mxu3 }
 0x2e2   : > { %v3774_v48 = vsel %vm372_vm1, %v3724_v40, 0.0  ;;  %v2942_v45 = vld [vmem:[#allocation3 + $0xb0] sm:$0xff] }
 0x2e3   : > { %v3775_v44 = vadd.f32 %v3774_v48, %v3773_v23  ;;  %2879 = vst.msk [vmem:[#allocation3 + $0xb8] sm:$0xff] %vm372_vm1, %v2847_v34  ;;  %v3188_v47 = vadd.f32 %v3136_v46, %v2942_v45  ;;  %v2264_v34 = vld [vmem:[#allocation3 + $0xe8] sm:$0xff] }
 0x2e4   : > { %v3283_v49 = vld [vmem:[#allocation3 + $0xa8] sm:$0xff]  ;;  %v2460_v50 = vpop.f32.mrf.mxu1 }
 0x2e5   : > { %3220 = vst.msk [vmem:[#allocation3 + $0xb0] sm:$0xff] %vm372_vm1, %v3188_v47  ;;  %v3529_v51 = vadd.f32 %v5400_v0, %v3283_v49  ;;  %v2506_v52 = vadd.f32 %v2460_v50, %v2260_v7 }
 0x2e6   : > { %v3592_v54 = vld [vmem:[#allocation3 + $0xa0] sm:$0xff] }
 0x2e7   : > { %3624 = vst.msk [vmem:[%s5160_s30 + $0xa0] sm:$0xff] %vm372_vm1, %v3592_v54  ;;  %v3675_v55 = vsel %vm372_vm1, %v3592_v54, 0.0  ;;  %v3725_v56 = vmul.f32 %v3592_v54, %v3592_v54  ;;  %v3484_v61 = vpop.f32.mrf.mxu0 }
 0x2e8   : > { %v5431_v57 = vadd.f32 %v3675_v55, %v3674_v38  ;;  %3561 = vst.msk [vmem:[#allocation3 + $0xa8] sm:$0xff] %vm372_vm1, %v3529_v51  ;;  %v2602_v39 = vld [vmem:[#allocation3 + $0xc0] sm:$0xff]  ;;  %v2800_v59 = vpop.f32.mrf.mxu2  ;;  %v2265_v55 = vld [vmem:[#allocation3 + $0xf0] sm:$0xff] }
 0x2e9   : > { %v3776_v58 = vsel %vm372_vm1, %v3725_v56, 0.0  ;;  %2538 = vst.msk [vmem:[#allocation3 + $0xc8] sm:$0xff] %vm372_vm1, %v2506_v52  ;;  %v2848_v60 = vadd.f32 %v2800_v59, %v2602_v39  ;;  %v3139_v19 = vpop.f32.mrf.mxu3 }
 0x2ea   : > { %v5436_v63 = vadd.f32 %v3776_v58, %v3775_v44  ;;  %v2943_v5 = vld [vmem:[#allocation3 + $0xb8] sm:$0xff] }
 0x2eb   : > { %2880 = vst.msk [vmem:[#allocation3 + $0xc0] sm:$0xff] %vm372_vm1, %v2848_v60  ;;  %v3189_v0 = vadd.f32 %v3139_v19, %v2943_v5 }
 0x2ec   : > { %v3284_v6 = vld [vmem:[#allocation3 + $0xb0] sm:$0xff]  ;;  %v2463_v4 = vpop.f32.mrf.mxu1 }
 0x2ed   : > { %3221 = vst.msk [vmem:[#allocation3 + $0xb8] sm:$0xff] %vm372_vm1, %v3189_v0  ;;  %v3530_v2 = vadd.f32 %v3478_v24, %v3284_v6  ;;  %v2507_v9 = vadd.f32 %v2463_v4, %v2261_v62 }
 0x2ef   : > { %v5440_v10 = vld [vmem:[#allocation3 + $0xa8] sm:$0xff]  ;;  %3562 = vst.msk [vmem:[#allocation3 + $0xb0] sm:$0xff] %vm372_vm1, %v3530_v2  ;;  %v3487_v31 = vpop.f32.mrf.mxu0 }
 0x2f0   : > { %3625 = vst.msk [vmem:[%s5160_s30 + $0xa8] sm:$0xff] %vm372_vm1, %v5440_v10  ;;  %v2603_v22 = vld [vmem:[#allocation3 + $0xc8] sm:$0xff]  ;;  %v2803_v11 = vpop.f32.mrf.mxu2 }
 0x2f1   : > { %2539 = vst.msk [vmem:[#allocation3 + $0xd0] sm:$0xff] %vm372_vm1, %v2507_v9  ;;  %v2849_v12 = vadd.f32 %v2803_v11, %v2603_v22  ;;  %v3142_v30 = vpop.f32.mrf.mxu3 }
 0x2f2   : > { %v2944_v13 = vld [vmem:[#allocation3 + $0xc0] sm:$0xff] }
 0x2f3   : > { %2881 = vst.msk [vmem:[#allocation3 + $0xc8] sm:$0xff] %vm372_vm1, %v2849_v12  ;;  %v3190_v14 = vadd.f32 %v3142_v30, %v2944_v13 }
 0x2f4   : > { %v3285_v15 = vld [vmem:[#allocation3 + $0xb8] sm:$0xff]  ;;  %v2466_v17 = vpop.f32.mrf.mxu1 }
 0x2f5   : > { %3222 = vst.msk [vmem:[#allocation3 + $0xc0] sm:$0xff] %vm372_vm1, %v3190_v14  ;;  %v3531_v18 = vadd.f32 %v3481_v43, %v3285_v15  ;;  %v2508_v20 = vadd.f32 %v2466_v17, %v2262_v16 }
 0x2f6   : > { %v5449_v21 = vld [vmem:[#allocation3 + $0xb0] sm:$0xff] }
 0x2f7   : > { %3626 = vst.msk [vmem:[%s5160_s30 + $0xb0] sm:$0xff] %vm372_vm1, %v5449_v21  ;;  %v3490_v37 = vpop.f32.mrf.mxu0 }
 0x2f8   : > { %3563 = vst.msk [vmem:[#allocation3 + $0xb8] sm:$0xff] %vm372_vm1, %v3531_v18  ;;  %v2604_v27 = vld [vmem:[#allocation3 + $0xd0] sm:$0xff]  ;;  %v2806_v3 = vpop.f32.mrf.mxu2 }
 0x2f9   : > { %2540 = vst.msk [vmem:[#allocation3 + $0xd8] sm:$0xff] %vm372_vm1, %v2508_v20  ;;  %v2850_v24 = vadd.f32 %v2806_v3, %v2604_v27  ;;  %v3145_v8 = vpop.f32.mrf.mxu3 }
 0x2fa   : > { %v2945_v25 = vld [vmem:[#allocation3 + $0xc8] sm:$0xff] }
 0x2fb   : > { %2882 = vst.msk [vmem:[#allocation3 + $0xd0] sm:$0xff] %vm372_vm1, %v2850_v24  ;;  %v3191_v28 = vadd.f32 %v3145_v8, %v2945_v25 }
 0x2fc   : > { %v3286_v23 = vld [vmem:[#allocation3 + $0xc0] sm:$0xff]  ;;  %v2469_v32 = vpop.f32.mrf.mxu1 }
 0x2fd   : > { %3223 = vst.msk [vmem:[#allocation3 + $0xc8] sm:$0xff] %vm372_vm1, %v3191_v28  ;;  %v3532_v33 = vadd.f32 %v3484_v61, %v3286_v23  ;;  %v2509_v26 = vadd.f32 %v2469_v32, %v2263_v29  ;;  %v2266_v61 = vld [vmem:[#allocation3 + $0xf8] sm:$0xff] }
 0x2ff   : > { %v5458_v35 = vld [vmem:[#allocation3 + $0xb8] sm:$0xff]  ;;  %3564 = vst.msk [vmem:[#allocation3 + $0xc0] sm:$0xff] %vm372_vm1, %v3532_v33  ;;  %v3493_v51 = vpop.f32.mrf.mxu0 }
 0x300   : > { %3627 = vst.msk [vmem:[%s5160_s30 + $0xb8] sm:$0xff] %vm372_vm1, %v5458_v35  ;;  %v2605_v36 = vld [vmem:[#allocation3 + $0xd8] sm:$0xff]  ;;  %v2809_v1 = vpop.f32.mrf.mxu2 }
 0x301   : > { %2541 = vst.msk [vmem:[#allocation3 + $0xe0] sm:$0xff] %vm372_vm1, %v2509_v26  ;;  %v2851_v53 = vadd.f32 %v2809_v1, %v2605_v36  ;;  %v3148_v40 = vpop.f32.mrf.mxu3  ;;  %v3726_v26 = vmul.f32 %v5440_v10, %v5440_v10 }
 0x302   : > { %v2946_v42 = vld [vmem:[#allocation3 + $0xd0] sm:$0xff] }
 0x303   : > { %2883 = vst.msk [vmem:[#allocation3 + $0xd8] sm:$0xff] %vm372_vm1, %v2851_v53  ;;  %v3192_v41 = vadd.f32 %v3148_v40, %v2946_v42  ;;  %v3727_v53 = vmul.f32 %v5449_v21, %v5449_v21 }
 0x304   : > { %v3287_v38 = vld [vmem:[#allocation3 + $0xc8] sm:$0xff]  ;;  %v2472_v46 = vpop.f32.mrf.mxu1 }
 0x305   : > { %3224 = vst.msk [vmem:[#allocation3 + $0xd0] sm:$0xff] %vm372_vm1, %v3192_v41  ;;  %v3533_v48 = vadd.f32 %v3487_v31, %v3287_v38  ;;  %v2510_v45 = vadd.f32 %v2472_v46, %v2264_v34  ;;  %v3778_v41 = vsel %vm372_vm1, %v3726_v26, 0.0  ;;  %v3679_v38 = vsel %vm372_vm1, %v5449_v21, 0.0 }
 0x306   : > { %v5467_v43 = vld [vmem:[#allocation3 + $0xc0] sm:$0xff]  ;;  %v3728_v34 = vmul.f32 %v5458_v35, %v5458_v35  ;;  %v3779_v21 = vadd.f32 %v3778_v41, %v5436_v63 }
 0x307   : > { %3628 = vst.msk [vmem:[%s5160_s30 + $0xc0] sm:$0xff] %vm372_vm1, %v5467_v43  ;;  %v3496_v9 = vpop.f32.mrf.mxu0 }
 0x308   : > { %3565 = vst.msk [vmem:[#allocation3 + $0xc8] sm:$0xff] %vm372_vm1, %v3533_v48  ;;  %v2606_v44 = vld [vmem:[#allocation3 + $0xe0] sm:$0xff]  ;;  %v2812_v47 = vpop.f32.mrf.mxu2 }
 0x309   : > { %2542 = vst.msk [vmem:[#allocation3 + $0xe8] sm:$0xff] %vm372_vm1, %v2510_v45  ;;  %v2852_v49 = vadd.f32 %v2812_v47, %v2606_v44  ;;  %v3151_v7 = vpop.f32.mrf.mxu3  ;;  %v3780_v45 = vsel %vm372_vm1, %v3727_v53, 0.0  ;;  %v3681_v44 = vsel %vm372_vm1, %v5458_v35, 0.0  ;;  %v3729_v47 = vmul.f32 %v5467_v43, %v5467_v43 }
 0x30a   : > { %v2947_v50 = vld [vmem:[#allocation3 + $0xd8] sm:$0xff]  ;;  %v3781_v35 = vadd.f32 %v3780_v45, %v3779_v21 }
 0x30b   : > { %2884 = vst.msk [vmem:[#allocation3 + $0xe0] sm:$0xff] %vm372_vm1, %v2852_v49  ;;  %v3193_v52 = vadd.f32 %v3151_v7, %v2947_v50  ;;  %v3782_v50 = vsel %vm372_vm1, %v3728_v34, 0.0 }
 0x30c   : > { %v3288_v54 = vld [vmem:[#allocation3 + $0xd0] sm:$0xff]  ;;  %v2475_v56 = vpop.f32.mrf.mxu1 }
 0x30d   : > { %3225 = vst.msk [vmem:[#allocation3 + $0xd8] sm:$0xff] %vm372_vm1, %v3193_v52  ;;  %v3534_v39 = vadd.f32 %v3490_v37, %v3288_v54  ;;  %v2511_v59 = vadd.f32 %v2475_v56, %v2265_v55  ;;  %v3677_v37 = vsel %vm372_vm1, %v5440_v10, 0.0  ;;  %v3784_v54 = vsel %vm372_vm1, %v3729_v47, 0.0 }
 0x30e   : > { %v3678_v48 = vadd.f32 %v3677_v37, %v5431_v57  ;;  %v3683_v57 = vsel %vm372_vm1, %v5467_v43, 0.0 }
 0x30f   : > { %v5476_v58 = vld [vmem:[#allocation3 + $0xc8] sm:$0xff]  ;;  %3566 = vst.msk [vmem:[#allocation3 + $0xd0] sm:$0xff] %vm372_vm1, %v3534_v39  ;;  %v3499_v31 = vpop.f32.mrf.mxu0  ;;  %v3783_v39 = vadd.f32 %v3782_v50, %v3781_v35 }
 0x310   : > { %3629 = vst.msk [vmem:[%s5160_s30 + $0xc8] sm:$0xff] %vm372_vm1, %v5476_v58  ;;  %v2607_v60 = vld [vmem:[#allocation3 + $0xe8] sm:$0xff]  ;;  %v2815_v19 = vpop.f32.mrf.mxu2  ;;  %v3680_v49 = vadd.f32 %v3679_v38, %v3678_v48  ;;  %v3685_v63 = vsel %vm372_vm1, %v5476_v58, 0.0 }
 0x311   : > { %2543 = vst.msk [vmem:[#allocation3 + $0xf0] sm:$0xff] %vm372_vm1, %v2511_v59  ;;  %v2853_v5 = vadd.f32 %v2815_v19, %v2607_v60  ;;  %v3154_v0 = vpop.f32.mrf.mxu3 }
 0x312   : > { %v2948_v6 = vld [vmem:[#allocation3 + $0xe0] sm:$0xff]  ;;  %v3682_v52 = vadd.f32 %v3681_v44, %v3680_v49 }
 0x313   : > { %2885 = vst.msk [vmem:[#allocation3 + $0xe8] sm:$0xff] %vm372_vm1, %v2853_v5  ;;  %v3194_v62 = vadd.f32 %v3154_v0, %v2948_v6  ;;  %v3785_v0 = vadd.f32 %v3784_v54, %v3783_v39 }
 0x314   : > { %v3289_v4 = vld [vmem:[#allocation3 + $0xd8] sm:$0xff]  ;;  %v2478_v2 = vpop.f32.mrf.mxu1  ;;  %v3684_v59 = vadd.f32 %v3683_v57, %v3682_v52 }
 0x315   : > { %3226 = vst.msk [vmem:[#allocation3 + $0xe0] sm:$0xff] %vm372_vm1, %v3194_v62  ;;  %v3535_v22 = vadd.f32 %v3493_v51, %v3289_v4  ;;  %v2512_v11 = vadd.f32 %v2478_v2, %v2266_v61  ;;  %v3730_v51 = vmul.f32 %v5476_v58, %v5476_v58 }
 0x316   : > { %v5485_v12 = vld [vmem:[#allocation3 + $0xd0] sm:$0xff]  ;;  %v3686_v6 = vadd.f32 %v3685_v63, %v3684_v59 }
 0x317   : > { %3630 = vst.msk [vmem:[%s5160_s30 + $0xd0] sm:$0xff] %vm372_vm1, %v5485_v12  ;;  %v3502_v36 = vpop.f32.mrf.mxu0  ;;  %v3731_v55 = vmul.f32 %v5485_v12, %v5485_v12  ;;  %v3786_v43 = vsel %vm372_vm1, %v3730_v51, 0.0  ;;  %v3687_v60 = vsel %vm372_vm1, %v5485_v12, 0.0 }
 0x318   : > { %3567 = vst.msk [vmem:[#allocation3 + $0xd8] sm:$0xff] %vm372_vm1, %v3535_v22  ;;  %v2608_v30 = vld [vmem:[#allocation3 + $0xf0] sm:$0xff]  ;;  %v2818_v13 = vpop.f32.mrf.mxu2  ;;  %v3688_v22 = vadd.f32 %v3687_v60, %v3686_v6 }
 0x319   : > { %2544 = vst.msk [vmem:[#allocation3 + $0xf8] sm:$0xff] %vm372_vm1, %v2512_v11  ;;  %v2854_v14 = vadd.f32 %v2818_v13, %v2608_v30  ;;  %v3157_v15 = vpop.f32.mrf.mxu3  ;;  %v3788_v4 = vsel %vm372_vm1, %v3731_v55, 0.0 }
 0x31a   : > { %v2949_v16 = vld [vmem:[#allocation3 + $0xe8] sm:$0xff] }
 0x31b   : > { %2886 = vst.msk [vmem:[#allocation3 + $0xf0] sm:$0xff] %vm372_vm1, %v2854_v14  ;;  %v3195_v17 = vadd.f32 %v3157_v15, %v2949_v16 }
 0x31c   : > { %v3290_v18 = vld [vmem:[#allocation3 + $0xe0] sm:$0xff] }
 0x31d   : > { %3227 = vst.msk [vmem:[#allocation3 + $0xe8] sm:$0xff] %vm372_vm1, %v3195_v17  ;;  %v3536_v20 = vadd.f32 %v3496_v9, %v3290_v18  ;;  %v3787_v9 = vadd.f32 %v3786_v43, %v3785_v0 }
 0x31f   : > { %v3599_v27 = vld [vmem:[#allocation3 + $0xd8] sm:$0xff]  ;;  %3568 = vst.msk [vmem:[#allocation3 + $0xe0] sm:$0xff] %vm372_vm1, %v3536_v20  ;;  %v3505_v56 = vpop.f32.mrf.mxu0  ;;  %v3789_v13 = vadd.f32 %v3788_v4, %v3787_v9 }
 0x320   : > { %3631 = vst.msk [vmem:[%s5160_s30 + $0xd8] sm:$0xff] %vm372_vm1, %v3599_v27  ;;  %v2609_v3 = vld [vmem:[#allocation3 + $0xf8] sm:$0xff]  ;;  %v2821_v24 = vpop.f32.mrf.mxu2  ;;  %v3732_v19 = vmul.f32 %v3599_v27, %v3599_v27  ;;  %v3689_v58 = vsel %vm372_vm1, %v3599_v27, 0.0 }
 0x321   : > { %v2855_v8 = vadd.f32 %v2821_v24, %v2609_v3  ;;  %v3160_v25 = vpop.f32.mrf.mxu3  ;;  %v3690_v14 = vadd.f32 %v3689_v58, %v3688_v22 }
 0x322   : > { %v2950_v28 = vld [vmem:[#allocation3 + $0xf0] sm:$0xff]  ;;  %v3790_v11 = vsel %vm372_vm1, %v3732_v19, 0.0 }
 0x323   : > { %2887 = vst.msk [vmem:[#allocation3 + $0xf8] sm:$0xff] %vm372_vm1, %v2855_v8  ;;  %v3196_v23 = vadd.f32 %v3160_v25, %v2950_v28  ;;  %v3791_v18 = vadd.f32 %v3790_v11, %v3789_v13 }
 0x324   : > { %v3291_v29 = vld [vmem:[#allocation3 + $0xe8] sm:$0xff] }
 0x325   : > { %3228 = vst.msk [vmem:[#allocation3 + $0xf0] sm:$0xff] %vm372_vm1, %v3196_v23  ;;  %v3537_v32 = vadd.f32 %v3499_v31, %v3291_v29 }
 0x326   : > { %v3600_v33 = vld [vmem:[#allocation3 + $0xe0] sm:$0xff] }
 0x327   : > { %3632 = vst.msk [vmem:[%s5160_s30 + $0xe0] sm:$0xff] %vm372_vm1, %v3600_v33  ;;  %v3733_v61 = vmul.f32 %v3600_v33, %v3600_v33  ;;  %v3691_v30 = vsel %vm372_vm1, %v3600_v33, 0.0 }
 0x328   : > { %3569 = vst.msk [vmem:[#allocation3 + $0xe8] sm:$0xff] %vm372_vm1, %v3537_v32  ;;  %v3692_v20 = vadd.f32 %v3691_v30, %v3690_v14 }
 0x329   : > { %v3163_v1 = vpop.f32.mrf.mxu3  ;;  %v3792_v15 = vsel %vm372_vm1, %v3733_v61, 0.0 }
 0x32a   : > { %v2951_v40 = vld [vmem:[#allocation3 + $0xf8] sm:$0xff]  ;;  %v3793_v3 = vadd.f32 %v3792_v15, %v3791_v18 }
 0x32b   : > { %v3197_v42 = vadd.f32 %v3163_v1, %v2951_v40 }
 0x32c   : > { %v3292_v46 = vld [vmem:[#allocation3 + $0xf0] sm:$0xff] }
 0x32d   : > { %3229 = vst.msk [vmem:[#allocation3 + $0xf8] sm:$0xff] %vm372_vm1, %v3197_v42  ;;  %v3538_v10 = vadd.f32 %v3502_v36, %v3292_v46 }
 0x32f   : > { %v3601_v7 = vld [vmem:[#allocation3 + $0xe8] sm:$0xff]  ;;  %3570 = vst.msk [vmem:[#allocation3 + $0xf0] sm:$0xff] %vm372_vm1, %v3538_v10 }
 0x330   : > { %3633 = vst.msk [vmem:[%s5160_s30 + $0xe8] sm:$0xff] %vm372_vm1, %v3601_v7  ;;  %v3734_v12 = vmul.f32 %v3601_v7, %v3601_v7  ;;  %v3693_v16 = vsel %vm372_vm1, %v3601_v7, 0.0 }
 0x331   : > { %v3694_v24 = vadd.f32 %v3693_v16, %v3692_v20 }
 0x332   : > { %v3794_v31 = vsel %vm372_vm1, %v3734_v12, 0.0 }
 0x333   : > { %v3795_v25 = vadd.f32 %v3794_v31, %v3793_v3 }
 0x334   : > { %v3293_v5 = vld [vmem:[#allocation3 + $0xf8] sm:$0xff] }
 0x335   : > { %v3539_v62 = vadd.f32 %v3505_v56, %v3293_v5 }
 0x336   : > { %v3602_v2 = vld [vmem:[#allocation3 + $0xf0] sm:$0xff] }
 0x337   : > { %3634 = vst.msk [vmem:[%s5160_s30 + $0xf0] sm:$0xff] %vm372_vm1, %v3602_v2  ;;  %v3735_v17 = vmul.f32 %v3602_v2, %v3602_v2  ;;  %v3695_v27 = vsel %vm372_vm1, %v3602_v2, 0.0 }
 0x338   : > { %3571 = vst.msk [vmem:[#allocation3 + $0xf8] sm:$0xff] %vm372_vm1, %v3539_v62  ;;  %v3696_v28 = vadd.f32 %v3695_v27, %v3694_v24 }
 0x339   : > { %v3796_v8 = vsel %vm372_vm1, %v3735_v17, 0.0 }
 0x33a   : > { %v3797_v33 = vadd.f32 %v3796_v8, %v3795_v25 }
 0x33f   : > { %v3603_v23 = vld [vmem:[#allocation3 + $0xf8] sm:$0xff] }
 0x340   : > { %3635 = vst.msk [vmem:[%s5160_s30 + $0xf8] sm:$0xff] %vm372_vm1, %v3603_v23  ;;  %v3697_v29 = vsel %vm372_vm1, %v3603_v23, 0.0  ;;  %v3736_v32 = vmul.f32 %v3603_v23, %v3603_v23 }
 0x341   : > { %v3698_v26 = vadd.f32 %v3697_v29, %v3696_v28 }
 0x342   : > { %v3798_v36 = vsel %vm372_vm1, %v3736_v32, 0.0 }
 0x343   : > { %v3699_v1 = vrot.slane %v3698_v26, 4  ;;  %v3799_v37 = vadd.f32 %v3798_v36, %v3797_v33 }
 0x345   : > { %v3700_v53 = vadd.f32 %v3699_v1, %v3698_v26  ;;  %v3800_v40 = vrot.slane %v3799_v37, 4 }
 0x347   : > { %v3701_v42 = vrot.slane %v3700_v53, 2  ;;  %v3801_v41 = vadd.f32 %v3800_v40, %v3799_v37 }
 0x349   : > { %v3702_v38 = vadd.f32 %v3701_v42, %v3700_v53  ;;  %v3802_v34 = vrot.slane %v3801_v41, 2 }
 0x34b   : > { %v3703_v46 = vrot.slane %v3702_v38, 1  ;;  %v3803_v48 = vadd.f32 %v3802_v34, %v3801_v41 }
 0x34d   : > { %v3804_v10 = vrot.slane %v3803_v48, 1  ;;  %v3704_v45 = vadd.f32 %v3703_v46, %v3702_v38 }
 0x34f   : > { %v3805_v44 = vadd.f32 %v3804_v10, %v3803_v48 }
 0x351   : > { %v3807_v47 = vsel %vm3806_vm3, %v3704_v45, %v3805_v44 }
 0x352   : > { %3808 = vst.msk [vmem:[%s235_s8] sm:$0x3] %vm375_vm2, %v3807_v47 }
 0x353 PF: > { %s16_s18 = sadd.s32 1, %s4236_s18  }
 0x354   : > { %p13_p4 = scmp.ge.s32.totalorder %s16_s18, 4  }
 0x356   :  { %15 = sbr.rel (!%p13_p4) target bundleno = 1 (0x1), region = 88 }

</bundles_post_ra>
